<compile_context>
chip_gen: v5e
topology: v5e:2x2
jax: 0.10.0
libtpu: 0.0.40
codegen_flags: <defaults>
</compile_context>

<pallas_src>
import functools

import jax
import jax.numpy as jnp
from jax.experimental import pallas as pl
from jax.experimental.pallas import tpu as pltpu

EPS = 1e-5
LANE = 128


def _hw_caps():
    """Generation-aware VMEM limit and row-tile caps."""
    vmem_cap = 128 * 1024 * 1024
    try:
        info_fn = getattr(pltpu, "get_tpu_info", None)
        if info_fn is not None:
            vmem_cap = int(getattr(info_fn(), "vmem_capacity_bytes", vmem_cap))
    except Exception:
        pass
    if vmem_cap <= 80 * 1024 * 1024:          # v7x-class (64 MiB / TensorCore)
        return 40 * 1024 * 1024, 512, 2048
    return 48 * 1024 * 1024, 1024, 2048        # v5e / v6e (128 MiB)


VMEM_LIMIT, TM_CAP, TMD_CAP = _hw_caps()


def _round_up(x, m):
    return (x + m - 1) // m * m


def _pick_tm(M, cap):
    """Largest divisor of M that is <= cap and a multiple of 8 (else M itself,
    a full-extent block is always a legal BlockSpec).  Exact divisors mean no
    padding / masking / XLA pad+slice copies are ever needed."""
    cap = max(8, min(cap, M))
    for t in range(cap, 7, -1):
        if M % t == 0 and t % 8 == 0:
            return t
    return M


def _pick_rows(H2, W2, cap):
    best = 1
    for r in range(1, H2 + 1):
        if H2 % r == 0 and r * W2 <= cap:
            best = r
    return best


# --------------------------------------------------------------------------
# in-kernel helpers
# --------------------------------------------------------------------------

def _write_stats(ps_ref, a, inv_n):
    """Per-tile BN partials: [raw sum, mean-subtracted sum of squares]
    (Chan / parallel-variance form), emitted as a single store."""
    s = jnp.sum(a, axis=0, keepdims=True)                 # (1, C)
    d = a - s * inv_n
    m2 = jnp.sum(d * d, axis=0, keepdims=True)            # (1, C)
    ps_ref[...] = jnp.concatenate([s, m2], axis=0).reshape(ps_ref.shape)


# --------------------------------------------------------------------------
# kernels
# --------------------------------------------------------------------------

def conv1_kernel(x_ref, w_ref, out_ref, ps_ref, *, inv_rows):
    """1x1 conv (matmul, bf16 operands / f32 acc) + BN partial stats."""
    a = jnp.dot(x_ref[...], w_ref[...], preferred_element_type=jnp.float32)
    out_ref[...] = a.astype(out_ref.dtype)
    _write_stats(ps_ref, a, inv_rows)


def conv1_proj_strided_kernel(x_ref, w_ref, ws_ref, a1_ref, s_ref,
                              ps_ref, pss_ref, *, rows, cin):
    """1x1/stride-2 conv + 1x1/stride-2 projection-shortcut conv.

    x_ref is a (1, RH, 1, W2, 2*cin) window of the full-resolution input viewed
    as (N, H/2, 2, W/2, 2*C): the size-1 row-parity axis picks even rows and
    the first `cin` lanes pick even columns, so the stride-2 subsample happens
    in the DMA / a lane slice (no XLA strided-slice pass over the input)."""
    x2 = x_ref[...].reshape(rows, 2 * cin)[:, 0:cin]       # (rows, cin) bf16
    a = jnp.dot(x2, w_ref[...], preferred_element_type=jnp.float32)
    s = jnp.dot(x2, ws_ref[...], preferred_element_type=jnp.float32)
    a1_ref[...] = a.reshape(a1_ref.shape).astype(a1_ref.dtype)
    s_ref[...] = s.reshape(s_ref.shape).astype(s_ref.dtype)
    inv = 1.0 / rows
    _write_stats(ps_ref, a, inv)
    _write_stats(pss_ref, s, inv)


def conv1_proj_flat_kernel(x_ref, w_ref, ws_ref, a1_ref, s_ref,
                           ps_ref, pss_ref, *, inv_rows):
    """Fallback (pre-subsampled, flattened rows) projection stage A."""
    x = x_ref[...]
    a = jnp.dot(x, w_ref[...], preferred_element_type=jnp.float32)
    s = jnp.dot(x, ws_ref[...], preferred_element_type=jnp.float32)
    a1_ref[...] = a.astype(a1_ref.dtype)
    s_ref[...] = s.astype(s_ref.dtype)
    _write_stats(ps_ref, a, inv_rows)
    _write_stats(pss_ref, s, inv_rows)


def conv3x3_kernel(a1_ref, sc_ref, sh_ref, w2_ref, out_ref, ps_ref,
                   h1p_ref, acc_ref, *, H, W, C):
    """One image per grid step: BN1+ReLU applied lazily to the raw conv1
    output, stored once (bf16) into a dx-shifted, channel-stacked padded
    scratch; the 3x3 / pad-1 conv is then 3 matmuls with K = 3*C (dy taps),
    accumulated in an f32 VMEM scratch.  No im2col buffer, no big live
    accumulator, no per-tap unaligned slices in the matmul loop."""
    a1 = a1_ref[0].astype(jnp.float32)                     # (H, W, C)
    scale = sc_ref[...].reshape(1, 1, C)
    shift = sh_ref[...].reshape(1, 1, C)
    h1 = jnp.maximum(a1 * scale + shift, 0.0).astype(jnp.bfloat16)

    # Zero only the 1-pixel borders of the persistent scratch (cheap), never
    # the whole padded image.
    zrow = jnp.zeros((1, W, 3 * C), jnp.bfloat16)
    zcol = jnp.zeros((H, 1, C), jnp.bfloat16)
    h1p_ref[0:1, :, :] = zrow
    h1p_ref[H + 1:H + 2, :, :] = zrow
    h1p_ref[1:H + 1, 0:1, 0:C] = zcol
    h1p_ref[1:H + 1, W - 1:W, 2 * C:3 * C] = zcol

    # dx-shifted copies stacked along channels:
    #   h1p[y, x, dx*C:(dx+1)*C] == zero-padded h1 at (y-1, x-1+dx)
    h1p_ref[1:H + 1, :, C:2 * C] = h1
    h1p_ref[1:H + 1, 1:W, 0:C] = h1[:, 0:W - 1, :]
    h1p_ref[1:H + 1, 0:W - 1, 2 * C:3 * C] = h1[:, 1:W, :]

    # 3x3 conv = 3 dy-slab matmuls with K = 3*C, accumulated in VMEM f32.
    acc_ref[...] = jnp.dot(h1p_ref[0:H, :, :].reshape(H * W, 3 * C),
                           w2_ref[0], preferred_element_type=jnp.float32)
    acc_ref[...] += jnp.dot(h1p_ref[1:H + 1, :, :].reshape(H * W, 3 * C),
                            w2_ref[1], preferred_element_type=jnp.float32)
    acc_ref[...] += jnp.dot(h1p_ref[2:H + 2, :, :].reshape(H * W, 3 * C),
                            w2_ref[2], preferred_element_type=jnp.float32)

    acc = acc_ref[...]
    out_ref[...] = acc.reshape(1, H, W, C).astype(out_ref.dtype)
    _write_stats(ps_ref, acc, 1.0 / (H * W))


def norm_mm_kernel(x_ref, sc_ref, sh_ref, w_ref, out_ref, ps_ref, *, inv_rows):
    """h = relu(scale*x + shift) (previous BN applied lazily); out = h @ w,
    plus BN partial stats of out.  Tiles divide M exactly, so no masking."""
    h = jnp.maximum(x_ref[...].astype(jnp.float32) * sc_ref[...] + sh_ref[...],
                    0.0)
    a = jnp.dot(h.astype(jnp.bfloat16), w_ref[...],
                preferred_element_type=jnp.float32)
    out_ref[...] = a.astype(out_ref.dtype)
    _write_stats(ps_ref, a, inv_rows)


def residual_kernel(a3_ref, s_ref, sc3_ref, sh3_ref, scs_ref, shs_ref, out_ref):
    """out = relu(bn3(a3) + bn_s(s)); identity shortcut passes scale=1, shift=0.
    Output is aliased onto a3 (pure 3-stream memory-bound epilogue)."""
    y = a3_ref[...].astype(jnp.float32) * sc3_ref[...] + sh3_ref[...]
    s = s_ref[...].astype(jnp.float32) * scs_ref[...] + shs_ref[...]
    out_ref[...] = jnp.maximum(y + s, 0.0).astype(out_ref.dtype)


# --------------------------------------------------------------------------
# host-side BN finalize (tiny per-channel vectors, Chan parallel-variance)
# --------------------------------------------------------------------------

def _finalize_bn(ps, gamma, beta, n_tile, total):
    ps = ps.reshape(-1, 2, ps.shape[-1]).astype(jnp.float32)
    sums = ps[:, 0, :]                                     # (T, C)
    m2s = ps[:, 1, :]
    mean_t = sums / float(n_tile)
    mean = jnp.sum(sums, axis=0, keepdims=True) / float(total)
    m2 = (jnp.sum(m2s, axis=0, keepdims=True)
          + float(n_tile) * jnp.sum((mean_t - mean) ** 2, axis=0, keepdims=True))
    var = m2 / float(total)                                # biased (training BN)
    scale = gamma * jax.lax.rsqrt(var + EPS)
    shift = beta - mean * scale
    return scale, shift


# --------------------------------------------------------------------------
# one bottleneck block
# --------------------------------------------------------------------------

def bottleneck_block(x, p):
    """x: (N, H, W, cin_p) bf16 NHWC, channel-padded.  Returns NHWC bf16."""
    N, H, W, cin_p = x.shape
    ch_p, cout_p = p["ch_p"], p["cout_p"]
    proj = p["proj"]
    stride = 2 if proj else 1
    H2, W2 = -(-H // stride), -(-W // stride)
    M = N * H2 * W2
    tm = _pick_tm(M, TM_CAP)
    nt = M // tm

    par1 = pltpu.CompilerParams(dimension_semantics=("parallel",),
                                vmem_limit_bytes=VMEM_LIMIT)
    row = lambda C: pl.BlockSpec((tm, C), lambda i: (i, 0))
    vec = lambda C: pl.BlockSpec((1, C), lambda i: (0, 0))
    ps_s = lambda C: pl.BlockSpec((1, 2, C), lambda i: (i, 0, 0))
    mat = lambda a, b: pl.BlockSpec((a, b), lambda i: (0, 0))

    # ---- stage A: conv1 (1x1) [+ projection shortcut conv] + partial stats --
    if proj:
        fused = (H % 2 == 0) and (W % 2 == 0) and (W2 % 8 == 0)
        if fused:
            RH = _pick_rows(H2, W2, TM_CAP)
            nrt = H2 // RH
            rows = RH * W2
            x5 = x.reshape(N, H2, 2, W2, 2 * cin_p)        # free reshape
            ce = pl.CostEstimate(
                flops=2 * M * cin_p * (ch_p + cout_p), transcendentals=0,
                bytes_accessed=2 * (2 * M * cin_p + cin_p * (ch_p + cout_p)
                                    + M * (ch_p + cout_p)))
            a1_4d, s_4d, ps1, pss = pl.pallas_call(
                functools.partial(conv1_proj_strided_kernel,
                                  rows=rows, cin=cin_p),
                grid=(N, nrt),
                in_specs=[
                    pl.BlockSpec((1, RH, 1, W2, 2 * cin_p),
                                 lambda n, r: (n, r, 0, 0, 0)),
                    pl.BlockSpec((cin_p, ch_p), lambda n, r: (0, 0)),
                    pl.BlockSpec((cin_p, cout_p), lambda n, r: (0, 0)),
                ],
                out_specs=(
                    pl.BlockSpec((1, RH, W2, ch_p), lambda n, r: (n, r, 0, 0)),
                    pl.BlockSpec((1, RH, W2, cout_p), lambda n, r: (n, r, 0, 0)),
                    pl.BlockSpec((1, 1, 2, ch_p), lambda n, r: (n, r, 0, 0)),
                    pl.BlockSpec((1, 1, 2, cout_p), lambda n, r: (n, r, 0, 0)),
                ),
                out_shape=(
                    jax.ShapeDtypeStruct((N, H2, W2, ch_p), jnp.bfloat16),
                    jax.ShapeDtypeStruct((N, H2, W2, cout_p), jnp.bfloat16),
                    jax.ShapeDtypeStruct((N, nrt, 2, ch_p), jnp.float32),
                    jax.ShapeDtypeStruct((N, nrt, 2, cout_p), jnp.float32),
                ),
                compiler_params=pltpu.CompilerParams(
                    dimension_semantics=("parallel", "parallel"),
                    vmem_limit_bytes=VMEM_LIMIT),
                cost_estimate=ce,
            )(x5, p["w1"], p["ws"])
            s_flat = s_4d.reshape(M, cout_p)
            n_tile_a = rows
        else:
            # TODO(synk): fold odd-size / non-8-aligned stride-2 subsampling
            # into the DMA too; this fallback pays one XLA strided-slice pass.
            xf = x[:, ::stride, ::stride, :].reshape(M, cin_p)
            ce = pl.CostEstimate(
                flops=2 * M * cin_p * (ch_p + cout_p), transcendentals=0,
                bytes_accessed=2 * (M * cin_p + cin_p * (ch_p + cout_p)
                                    + M * (ch_p + cout_p)))
            a1, s_flat, ps1, pss = pl.pallas_call(
                functools.partial(conv1_proj_flat_kernel, inv_rows=1.0 / tm),
                grid=(nt,),
                in_specs=[row(cin_p), mat(cin_p, ch_p), mat(cin_p, cout_p)],
                out_specs=(row(ch_p), row(cout_p), ps_s(ch_p), ps_s(cout_p)),
                out_shape=(jax.ShapeDtypeStruct((M, ch_p), jnp.bfloat16),
                           jax.ShapeDtypeStruct((M, cout_p), jnp.bfloat16),
                           jax.ShapeDtypeStruct((nt, 2, ch_p), jnp.float32),
                           jax.ShapeDtypeStruct((nt, 2, cout_p), jnp.float32)),
                compiler_params=par1, cost_estimate=ce,
            )(xf, p["w1"], p["ws"])
            a1_4d = a1.reshape(N, H2, W2, ch_p)
            n_tile_a = tm
        scale_s, shift_s = _finalize_bn(pss, p["gs"], p["bes"], n_tile_a, M)
    else:
        # identity shortcut requires matching (padded) widths
        assert cin_p == cout_p, (cin_p, cout_p)
        xf = x.reshape(M, cin_p)
        ce = pl.CostEstimate(
            flops=2 * M * cin_p * ch_p, transcendentals=0,
            bytes_accessed=2 * (M * cin_p + cin_p * ch_p + M * ch_p))
        a1, ps1 = pl.pallas_call(
            functools.partial(conv1_kernel, inv_rows=1.0 / tm),
            grid=(nt,),
            in_specs=[row(cin_p), mat(cin_p, ch_p)],
            out_specs=(row(ch_p), ps_s(ch_p)),
            out_shape=(jax.ShapeDtypeStruct((M, ch_p), jnp.bfloat16),
                       jax.ShapeDtypeStruct((nt, 2, ch_p), jnp.float32)),
            compiler_params=par1, cost_estimate=ce,
        )(xf, p["w1"])
        a1_4d = a1.reshape(N, H2, W2, ch_p)
        s_flat = xf
        scale_s = jnp.ones((1, cout_p), jnp.float32)
        shift_s = jnp.zeros((1, cout_p), jnp.float32)
        n_tile_a = tm

    scale1, shift1 = _finalize_bn(ps1, p["g1"], p["be1"], n_tile_a, M)

    # ---- stage B: BN1+ReLU fused + 3x3 conv (pad 1, stride 1), no im2col ----
    # TODO(synk): row-tile stage B (grid=(N, H2//R) with a 2-row halo via
    # manual DMA) for large images / better megacore balance on v7x.
    ce = pl.CostEstimate(
        flops=2 * M * 9 * ch_p * ch_p, transcendentals=0,
        bytes_accessed=2 * (2 * M * ch_p + 9 * ch_p * ch_p))
    a2_4d, ps2 = pl.pallas_call(
        functools.partial(conv3x3_kernel, H=H2, W=W2, C=ch_p),
        grid=(N,),
        in_specs=[pl.BlockSpec((1, H2, W2, ch_p), lambda n: (n, 0, 0, 0)),
                  pl.BlockSpec((1, ch_p), lambda n: (0, 0)),
                  pl.BlockSpec((1, ch_p), lambda n: (0, 0)),
                  pl.BlockSpec((3, 3 * ch_p, ch_p), lambda n: (0, 0, 0))],
        out_specs=(pl.BlockSpec((1, H2, W2, ch_p), lambda n: (n, 0, 0, 0)),
                   pl.BlockSpec((1, 2, ch_p), lambda n: (n, 0, 0))),
        out_shape=(jax.ShapeDtypeStruct((N, H2, W2, ch_p), jnp.bfloat16),
                   jax.ShapeDtypeStruct((N, 2, ch_p), jnp.float32)),
        scratch_shapes=[pltpu.VMEM((H2 + 2, W2, 3 * ch_p), jnp.bfloat16),
                        pltpu.VMEM((H2 * W2, ch_p), jnp.float32)],
        compiler_params=par1, cost_estimate=ce,
    )(a1_4d, scale1, shift1, p["w2"])
    scale2, shift2 = _finalize_bn(ps2, p["g2"], p["be2"], H2 * W2, M)

    # ---- stage C: BN2+ReLU fused + conv3 (1x1) ------------------------------
    a2f = a2_4d.reshape(M, ch_p)                           # free reshape
    ce = pl.CostEstimate(
        flops=2 * M * ch_p * cout_p, transcendentals=0,
        bytes_accessed=2 * (M * ch_p + ch_p * cout_p + M * cout_p))
    a3, ps3 = pl.pallas_call(
        functools.partial(norm_mm_kernel, inv_rows=1.0 / tm),
        grid=(nt,),
        in_specs=[row(ch_p), vec(ch_p), vec(ch_p), mat(ch_p, cout_p)],
        out_specs=(row(cout_p), ps_s(cout_p)),
        out_shape=(jax.ShapeDtypeStruct((M, cout_p), jnp.bfloat16),
                   jax.ShapeDtypeStruct((nt, 2, cout_p), jnp.float32)),
        compiler_params=par1, cost_estimate=ce,
    )(a2f, scale2, shift2, p["w3"])
    scale3, shift3 = _finalize_bn(ps3, p["g3"], p["be3"], tm, M)

    # ---- stage D: BN3 + BN_s(shortcut) + residual add + ReLU ----------------
    tmd = _pick_tm(M, TMD_CAP)
    ntd = M // tmd
    rowd = lambda C: pl.BlockSpec((tmd, C), lambda i: (i, 0))
    vecd = lambda C: pl.BlockSpec((1, C), lambda i: (0, 0))
    out = pl.pallas_call(
        residual_kernel,
        grid=(ntd,),
        in_specs=[rowd(cout_p), rowd(cout_p),
                  vecd(cout_p), vecd(cout_p), vecd(cout_p), vecd(cout_p)],
        out_specs=rowd(cout_p),
        out_shape=jax.ShapeDtypeStruct((M, cout_p), jnp.bfloat16),
        input_output_aliases={0: 0},
        compiler_params=par1,
    )(a3, s_flat, scale3, shift3, scale_s, shift_s)

    return out.reshape(N, H2, W2, cout_p)


# --------------------------------------------------------------------------
# stacked forward + parameter init
# --------------------------------------------------------------------------

def stacked_forward(x_nchw, blocks):
    x = jnp.transpose(x_nchw, (0, 2, 3, 1))                # NCHW -> NHWC
    N, H, W, C = x.shape
    cin_p = blocks[0]["cin_p"]
    x = jnp.pad(x, ((0, 0), (0, 0), (0, 0), (0, cin_p - C))).astype(jnp.bfloat16)
    for p in blocks:
        x = bottleneck_block(x, p)
    out_c = blocks[-1]["out_c"]
    y = x[..., :out_c].astype(jnp.float32)
    return jnp.transpose(y, (0, 3, 1, 2))                  # NHWC -> NCHW


def init_block_params(key, in_c, hid_c, out_c):
    proj = in_c != out_c
    cin_p = _round_up(in_c, LANE)
    ch_p = _round_up(hid_c, LANE)
    cout_p = _round_up(out_c, LANE)
    ks = jax.random.split(key, 4)

    def u(k, shape, fan_in):
        b = 1.0 / float(fan_in) ** 0.5
        return jax.random.uniform(k, shape, jnp.float32, -b, b)

    def pad2(w, r, c):
        return jnp.zeros((r, c), jnp.float32).at[:w.shape[0], :w.shape[1]].set(w)

    def bn_par(c_real, c_pad):
        # gamma is zero for padded channels: var=0 there, but scale=gamma*rsqrt
        # is exactly 0 and shift=0, so padded lanes stay zero through the net.
        g = jnp.zeros((1, c_pad), jnp.float32).at[:, :c_real].set(1.0)
        b = jnp.zeros((1, c_pad), jnp.float32)
        return g, b

    p = dict(proj=proj, in_c=in_c, hid_c=hid_c, out_c=out_c,
             cin_p=cin_p, ch_p=ch_p, cout_p=cout_p)
    # Conv biases dropped: a per-channel constant before training-mode BN is
    # exactly cancelled by the mean subtraction.
    p["w1"] = pad2(u(ks[0], (in_c, hid_c), in_c), cin_p, ch_p).astype(jnp.bfloat16)
    w2 = jnp.zeros((3, 3, ch_p, ch_p), jnp.float32)
    w2 = w2.at[:, :, :hid_c, :hid_c].set(u(ks[1], (3, 3, hid_c, hid_c), 9 * hid_c))
    # dy-major, dx folded into K: (3, 3*C, C) with row index dx*C + ci.
    p["w2"] = w2.reshape(3, 3 * ch_p, ch_p).astype(jnp.bfloat16)
    p["w3"] = pad2(u(ks[2], (hid_c, out_c), hid_c), ch_p, cout_p).astype(jnp.bfloat16)
    p["g1"], p["be1"] = bn_par(hid_c, ch_p)
    p["g2"], p["be2"] = bn_par(hid_c, ch_p)
    p["g3"], p["be3"] = bn_par(out_c, cout_p)
    if proj:
        p["ws"] = pad2(u(ks[3], (in_c, out_c), in_c), cin_p, cout_p).astype(jnp.bfloat16)
        p["gs"], p["bes"] = bn_par(out_c, cout_p)
    return p


def init_stack_params(key, in_channels, hidden_channels, stack_counts):
    keys = jax.random.split(key, stack_counts)
    blocks = [init_block_params(keys[0], in_channels, hidden_channels,
                                hidden_channels * 4)]
    for i in range(1, stack_counts):
        blocks.append(init_block_params(keys[i], hidden_channels * 4,
                                        hidden_channels, hidden_channels * 4))
    return blocks


# --------------------------------------------------------------------------
# pure-JAX reference (f32) for validation
# --------------------------------------------------------------------------

def _ref_bn(x, g, b):
    mean = jnp.mean(x, axis=(0, 1, 2), keepdims=True)
    var = jnp.mean((x - mean) ** 2, axis=(0, 1, 2), keepdims=True)
    return (x - mean) * (g * jax.lax.rsqrt(var + EPS)) + b


def _ref_block(x, p):
    in_c, hid_c, out_c = p["in_c"], p["hid_c"], p["out_c"]
    stride = 2 if p["proj"] else 1
    w1 = p["w1"].astype(jnp.float32)[:in_c, :hid_c]
    w2 = p["w2"].astype(jnp.float32).reshape(3, 3, p["ch_p"], p["ch_p"])
    w2 = w2[:, :, :hid_c, :hid_c]
    w3 = p["w3"].astype(jnp.float32)[:hid_c, :out_c]

    xs = x[:, ::stride, ::stride, :]
    a1 = jnp.einsum('nhwc,cd->nhwd', xs, w1)
    h1 = jnp.maximum(_ref_bn(a1, p["g1"][:, :hid_c], p["be1"][:, :hid_c]), 0.0)
    a2 = jax.lax.conv_general_dilated(
        h1, w2, window_strides=(1, 1), padding='SAME',
        dimension_numbers=('NHWC', 'HWIO', 'NHWC'))
    h2 = jnp.maximum(_ref_bn(a2, p["g2"][:, :hid_c], p["be2"][:, :hid_c]), 0.0)
    a3 = jnp.einsum('nhwc,cd->nhwd', h2, w3)
    y = _ref_bn(a3, p["g3"][:, :out_c], p["be3"][:, :out_c])
    if p["proj"]:
        ws = p["ws"].astype(jnp.float32)[:in_c, :out_c]
        s = _ref_bn(jnp.einsum('nhwc,cd->nhwd', xs, ws),
                    p["gs"][:, :out_c], p["bes"][:, :out_c])
    else:
        s = x
    return jnp.maximum(y + s, 0.0)


def ref_forward(x_nchw, blocks):
    x = jnp.transpose(x_nchw, (0, 2, 3, 1))
    x = x.astype(jnp.bfloat16).astype(jnp.float32)   # match kernel input cast
    for p in blocks:
        x = _ref_block(x, p)
    return jnp.transpose(x, (0, 3, 1, 2))


# --------------------------------------------------------------------------
# demo
# --------------------------------------------------------------------------

if __name__ == "__main__":
    key = jax.random.PRNGKey(0)
    k_x, k_p = jax.random.split(key)

    N, Cin, H, W = 2, 4, 16, 16
    hidden, stacks = 8, 2
    x = jax.random.normal(k_x, (N, Cin, H, W), jnp.float32)
    blocks = init_stack_params(k_p, Cin, hidden, stacks)

    fwd = jax.jit(lambda xx: stacked_forward(xx, blocks))
    y = fwd(x)
    jax.block_until_ready(y)

    # block 1 projects (4 != 32) with stride 2, block 2 is identity
    assert y.shape == (N, hidden * 4, H // 2, W // 2), y.shape
    assert bool(jnp.all(y >= 0.0))

    # numerical check vs pure-JAX f32 reference (bf16 matmul tolerance)
    y_ref = ref_forward(x, blocks)
    max_err = float(jnp.max(jnp.abs(y - y_ref)))
    mean_err = float(jnp.mean(jnp.abs(y - y_ref)))
    assert max_err < 0.5, f"max abs err {max_err}"
    assert mean_err < 0.08, f"mean abs err {mean_err}"

    print("KERNEL_OK")
</pallas_src>

<mosaic_0001>
module attributes {stable_mosaic.version = 11 : i64} {
  func.func @conv1_proj_strided_kernel(%arg0: i32, %arg1: i32, %arg2: memref<1x8x1x8x256xbf16, #tpu.memory_space<vmem>>, %arg3: memref<128x128xbf16, #tpu.memory_space<vmem>>, %arg4: memref<128x128xbf16, #tpu.memory_space<vmem>>, %arg5: memref<1x8x8x128xbf16, #tpu.memory_space<vmem>>, %arg6: memref<1x8x8x128xbf16, #tpu.memory_space<vmem>>, %arg7: memref<1x1x2x128xf32, #tpu.memory_space<vmem>>, %arg8: memref<1x1x2x128xf32, #tpu.memory_space<vmem>>) attributes {dimension_semantics = [#tpu.dimension_semantics<parallel>, #tpu.dimension_semantics<parallel>], iteration_bounds = array<i64: 2, 1>, scalar_prefetch = 0 : i64, scratch_operands = 0 : i64, tpu.core_type = #tpu.core_type<tc>, window_params = [{transform_indices = @transform_0, window_bounds = array<i64: 1, 8, 1, 8, 256>}, {pipeline_mode = #tpu.pipeline_mode<synchronous>, transform_indices = @transform_1, window_bounds = array<i64: 128, 128>}, {pipeline_mode = #tpu.pipeline_mode<synchronous>, transform_indices = @transform_2, window_bounds = array<i64: 128, 128>}, {transform_indices = @transform_3, window_bounds = array<i64: 1, 8, 8, 128>}, {transform_indices = @transform_4, window_bounds = array<i64: 1, 8, 8, 128>}, {transform_indices = @transform_5, window_bounds = array<i64: 1, 1, 2, 128>}, {transform_indices = @transform_6, window_bounds = array<i64: 1, 1, 2, 128>}]} {
    %c0 = arith.constant 0 : index
    %c0_0 = arith.constant 0 : index
    %c0_1 = arith.constant 0 : index
    %c0_2 = arith.constant 0 : index
    %c0_3 = arith.constant 0 : index
    %0 = vector.load %arg2[%c0, %c0_0, %c0_1, %c0_2, %c0_3] : memref<1x8x1x8x256xbf16, #tpu.memory_space<vmem>>, vector<1x8x1x8x256xbf16>
    %1 = vector.shape_cast %0 : vector<1x8x1x8x256xbf16> to vector<64x256xbf16>
    %2 = vector.extract_strided_slice %1 {offsets = [0, 0], sizes = [64, 128], strides = [1, 1]} : vector<64x256xbf16> to vector<64x128xbf16>
    %c0_4 = arith.constant 0 : index
    %c0_5 = arith.constant 0 : index
    %3 = vector.load %arg3[%c0_4, %c0_5] : memref<128x128xbf16, #tpu.memory_space<vmem>>, vector<128x128xbf16>
    %cst = arith.constant dense<0.000000e+00> : vector<64x128xf32>
    %4 = tpu.matmul %2, %3, %cst {dimension_numbers = #tpu.dot_dimension_numbers<[1], [0], [0], [1], [0, 0, 1, 1], [], []>} : vector<64x128xbf16>, vector<128x128xbf16>, vector<64x128xf32> -> vector<64x128xf32>
    %c0_6 = arith.constant 0 : index
    %c0_7 = arith.constant 0 : index
    %5 = vector.load %arg4[%c0_6, %c0_7] : memref<128x128xbf16, #tpu.memory_space<vmem>>, vector<128x128xbf16>
    %cst_8 = arith.constant dense<0.000000e+00> : vector<64x128xf32>
    %6 = tpu.matmul %2, %5, %cst_8 {dimension_numbers = #tpu.dot_dimension_numbers<[1], [0], [0], [1], [0, 0, 1, 1], [], []>} : vector<64x128xbf16>, vector<128x128xbf16>, vector<64x128xf32> -> vector<64x128xf32>
    %7 = vector.shape_cast %4 : vector<64x128xf32> to vector<1x8x8x128xf32>
    %8 = arith.truncf %7 : vector<1x8x8x128xf32> to vector<1x8x8x128xbf16>
    %c0_9 = arith.constant 0 : index
    %c0_10 = arith.constant 0 : index
    %c0_11 = arith.constant 0 : index
    %c0_12 = arith.constant 0 : index
    %9 = vector.load %arg5[%c0_9, %c0_10, %c0_11, %c0_12] : memref<1x8x8x128xbf16, #tpu.memory_space<vmem>>, vector<1x8x8x128xbf16>
    tpu.vector_store %arg5[%c0_9, %c0_10, %c0_11, %c0_12], %8 {strides = array<i32>} : memref<1x8x8x128xbf16, #tpu.memory_space<vmem>>, vector<1x8x8x128xbf16>,
    %10 = vector.shape_cast %6 : vector<64x128xf32> to vector<1x8x8x128xf32>
    %11 = arith.truncf %10 : vector<1x8x8x128xf32> to vector<1x8x8x128xbf16>
    %c0_13 = arith.constant 0 : index
    %c0_14 = arith.constant 0 : index
    %c0_15 = arith.constant 0 : index
    %c0_16 = arith.constant 0 : index
    %12 = vector.load %arg6[%c0_13, %c0_14, %c0_15, %c0_16] : memref<1x8x8x128xbf16, #tpu.memory_space<vmem>>, vector<1x8x8x128xbf16>
    tpu.vector_store %arg6[%c0_13, %c0_14, %c0_15, %c0_16], %11 {strides = array<i32>} : memref<1x8x8x128xbf16, #tpu.memory_space<vmem>>, vector<1x8x8x128xbf16>,
    %cst_17 = arith.constant dense<0.000000e+00> : vector<128xf32>
    %13 = vector.multi_reduction <add>, %4, %cst_17 [0] : vector<64x128xf32> to vector<128xf32>
    %14 = vector.shape_cast %13 : vector<128xf32> to vector<1x128xf32>
    %cst_18 = arith.constant 1.562500e-02 : f32
    %15 = vector.broadcast %cst_18 : f32 to vector<1x128xf32>
    %16 = arith.mulf %14, %15 : vector<1x128xf32>
    %17 = vector.broadcast %16 : vector<1x128xf32> to vector<64x128xf32>
    %18 = arith.subf %4, %17 : vector<64x128xf32>
    %19 = arith.mulf %18, %18 : vector<64x128xf32>
    %cst_19 = arith.constant dense<0.000000e+00> : vector<128xf32>
    %20 = vector.multi_reduction <add>, %19, %cst_19 [0] : vector<64x128xf32> to vector<128xf32>
    %21 = vector.shape_cast %20 : vector<128xf32> to vector<1x128xf32>
    %22 = tpu.concatenate %14, %21 in 0 : vector<1x128xf32>, vector<1x128xf32> -> vector<2x128xf32>
    %23 = vector.shape_cast %22 : vector<2x128xf32> to vector<1x1x2x128xf32>
    %c0_20 = arith.constant 0 : index
    %c0_21 = arith.constant 0 : index
    %c0_22 = arith.constant 0 : index
    %c0_23 = arith.constant 0 : index
    %24 = vector.load %arg7[%c0_20, %c0_21, %c0_22, %c0_23] : memref<1x1x2x128xf32, #tpu.memory_space<vmem>>, vector<1x1x2x128xf32>
    tpu.vector_store %arg7[%c0_20, %c0_21, %c0_22, %c0_23], %23 {strides = array<i32>} : memref<1x1x2x128xf32, #tpu.memory_space<vmem>>, vector<1x1x2x128xf32>,
    %cst_24 = arith.constant dense<0.000000e+00> : vector<128xf32>
    %25 = vector.multi_reduction <add>, %6, %cst_24 [0] : vector<64x128xf32> to vector<128xf32>
    %26 = vector.shape_cast %25 : vector<128xf32> to vector<1x128xf32>
    %cst_25 = arith.constant 1.562500e-02 : f32
    %27 = vector.broadcast %cst_25 : f32 to vector<1x128xf32>
    %28 = arith.mulf %26, %27 : vector<1x128xf32>
    %29 = vector.broadcast %28 : vector<1x128xf32> to vector<64x128xf32>
    %30 = arith.subf %6, %29 : vector<64x128xf32>
    %31 = arith.mulf %30, %30 : vector<64x128xf32>
    %cst_26 = arith.constant dense<0.000000e+00> : vector<128xf32>
    %32 = vector.multi_reduction <add>, %31, %cst_26 [0] : vector<64x128xf32> to vector<128xf32>
    %33 = vector.shape_cast %32 : vector<128xf32> to vector<1x128xf32>
    %34 = tpu.concatenate %26, %33 in 0 : vector<1x128xf32>, vector<1x128xf32> -> vector<2x128xf32>
    %35 = vector.shape_cast %34 : vector<2x128xf32> to vector<1x1x2x128xf32>
    %c0_27 = arith.constant 0 : index
    %c0_28 = arith.constant 0 : index
    %c0_29 = arith.constant 0 : index
    %c0_30 = arith.constant 0 : index
    %36 = vector.load %arg8[%c0_27, %c0_28, %c0_29, %c0_30] : memref<1x1x2x128xf32, #tpu.memory_space<vmem>>, vector<1x1x2x128xf32>
    tpu.vector_store %arg8[%c0_27, %c0_28, %c0_29, %c0_30], %35 {strides = array<i32>} : memref<1x1x2x128xf32, #tpu.memory_space<vmem>>, vector<1x1x2x128xf32>,
    return
  }
  func.func @transform_0(%arg0: i32, %arg1: i32) -> (i32, i32, i32, i32, i32) {
    %c0_i32 = arith.constant 0 : i32
    %c0_i32_0 = arith.constant 0 : i32
    %c0_i32_1 = arith.constant 0 : i32
    %c0_i32_2 = arith.constant 0 : i32
    return %arg0, %arg1, %c0_i32, %c0_i32_0, %c0_i32_1 : i32, i32, i32, i32, i32
  }
  func.func @transform_1(%arg0: i32, %arg1: i32) -> (i32, i32) {
    %c0_i32 = arith.constant 0 : i32
    %c0_i32_0 = arith.constant 0 : i32
    %c0_i32_1 = arith.constant 0 : i32
    return %c0_i32, %c0_i32_0 : i32, i32
  }
  func.func @transform_2(%arg0: i32, %arg1: i32) -> (i32, i32) {
    %c0_i32 = arith.constant 0 : i32
    %c0_i32_0 = arith.constant 0 : i32
    %c0_i32_1 = arith.constant 0 : i32
    return %c0_i32, %c0_i32_0 : i32, i32
  }
  func.func @transform_3(%arg0: i32, %arg1: i32) -> (i32, i32, i32, i32) {
    %c0_i32 = arith.constant 0 : i32
    %c0_i32_0 = arith.constant 0 : i32
    %c0_i32_1 = arith.constant 0 : i32
    return %arg0, %arg1, %c0_i32, %c0_i32_0 : i32, i32, i32, i32
  }
  func.func @transform_4(%arg0: i32, %arg1: i32) -> (i32, i32, i32, i32) {
    %c0_i32 = arith.constant 0 : i32
    %c0_i32_0 = arith.constant 0 : i32
    %c0_i32_1 = arith.constant 0 : i32
    return %arg0, %arg1, %c0_i32, %c0_i32_0 : i32, i32, i32, i32
  }
  func.func @transform_5(%arg0: i32, %arg1: i32) -> (i32, i32, i32, i32) {
    %c0_i32 = arith.constant 0 : i32
    %c0_i32_0 = arith.constant 0 : i32
    %c0_i32_1 = arith.constant 0 : i32
    return %arg0, %arg1, %c0_i32, %c0_i32_0 : i32, i32, i32, i32
  }
  func.func @transform_6(%arg0: i32, %arg1: i32) -> (i32, i32, i32, i32) {
    %c0_i32 = arith.constant 0 : i32
    %c0_i32_0 = arith.constant 0 : i32
    %c0_i32_1 = arith.constant 0 : i32
    return %arg0, %arg1, %c0_i32, %c0_i32_0 : i32, i32, i32, i32
  }
}

module attributes {stable_mosaic.version = 11 : i64} {
  func.func @norm_mm_kernel(%arg0: i32, %arg1: memref<128x128xbf16, #tpu.memory_space<vmem>>, %arg2: memref<1x128xf32, #tpu.memory_space<vmem>>, %arg3: memref<1x128xf32, #tpu.memory_space<vmem>>, %arg4: memref<128x128xbf16, #tpu.memory_space<vmem>>, %arg5: memref<128x128xbf16, #tpu.memory_space<vmem>>, %arg6: memref<1x2x128xf32, #tpu.memory_space<vmem>>) attributes {dimension_semantics = [#tpu.dimension_semantics<parallel>], iteration_bounds = array<i64: 1>, scalar_prefetch = 0 : i64, scratch_operands = 0 : i64, tpu.core_type = #tpu.core_type<tc>, window_params = [{transform_indices = @transform_0, window_bounds = array<i64: 128, 128>}, {pipeline_mode = #tpu.pipeline_mode<synchronous>, transform_indices = @transform_1, window_bounds = array<i64: 1, 128>}, {pipeline_mode = #tpu.pipeline_mode<synchronous>, transform_indices = @transform_2, window_bounds = array<i64: 1, 128>}, {pipeline_mode = #tpu.pipeline_mode<synchronous>, transform_indices = @transform_3, window_bounds = array<i64: 128, 128>}, {transform_indices = @transform_4, window_bounds = array<i64: 128, 128>}, {transform_indices = @transform_5, window_bounds = array<i64: 1, 2, 128>}]} {
    %c0 = arith.constant 0 : index
    %c0_0 = arith.constant 0 : index
    %0 = vector.load %arg1[%c0, %c0_0] : memref<128x128xbf16, #tpu.memory_space<vmem>>, vector<128x128xbf16>
    %1 = arith.extf %0 : vector<128x128xbf16> to vector<128x128xf32>
    %c0_1 = arith.constant 0 : index
    %c0_2 = arith.constant 0 : index
    %2 = vector.load %arg2[%c0_1, %c0_2] : memref<1x128xf32, #tpu.memory_space<vmem>>, vector<1x128xf32>
    %3 = vector.broadcast %2 : vector<1x128xf32> to vector<128x128xf32>
    %4 = arith.mulf %1, %3 : vector<128x128xf32>
    %c0_3 = arith.constant 0 : index
    %c0_4 = arith.constant 0 : index
    %5 = vector.load %arg3[%c0_3, %c0_4] : memref<1x128xf32, #tpu.memory_space<vmem>>, vector<1x128xf32>
    %6 = vector.broadcast %5 : vector<1x128xf32> to vector<128x128xf32>
    %7 = arith.addf %4, %6 : vector<128x128xf32>
    %cst = arith.constant 0.000000e+00 : f32
    %8 = vector.broadcast %cst : f32 to vector<128x128xf32>
    %9 = arith.maximumf %7, %8 : vector<128x128xf32>
    %10 = arith.truncf %9 : vector<128x128xf32> to vector<128x128xbf16>
    %c0_5 = arith.constant 0 : index
    %c0_6 = arith.constant 0 : index
    %11 = vector.load %arg4[%c0_5, %c0_6] : memref<128x128xbf16, #tpu.memory_space<vmem>>, vector<128x128xbf16>
    %cst_7 = arith.constant dense<0.000000e+00> : vector<128x128xf32>
    %12 = tpu.matmul %10, %11, %cst_7 {dimension_numbers = #tpu.dot_dimension_numbers<[1], [0], [0], [1], [0, 0, 1, 1], [], []>} : vector<128x128xbf16>, vector<128x128xbf16>, vector<128x128xf32> -> vector<128x128xf32>
    %13 = arith.truncf %12 : vector<128x128xf32> to vector<128x128xbf16>
    %c0_8 = arith.constant 0 : index
    %c0_9 = arith.constant 0 : index
    %14 = vector.load %arg5[%c0_8, %c0_9] : memref<128x128xbf16, #tpu.memory_space<vmem>>, vector<128x128xbf16>
    tpu.vector_store %arg5[%c0_8, %c0_9], %13 {strides = array<i32>} : memref<128x128xbf16, #tpu.memory_space<vmem>>, vector<128x128xbf16>,
    %cst_10 = arith.constant dense<0.000000e+00> : vector<128xf32>
    %15 = vector.multi_reduction <add>, %12, %cst_10 [0] : vector<128x128xf32> to vector<128xf32>
    %16 = vector.shape_cast %15 : vector<128xf32> to vector<1x128xf32>
    %cst_11 = arith.constant 7.812500e-03 : f32
    %17 = vector.broadcast %cst_11 : f32 to vector<1x128xf32>
    %18 = arith.mulf %16, %17 : vector<1x128xf32>
    %19 = vector.broadcast %18 : vector<1x128xf32> to vector<128x128xf32>
    %20 = arith.subf %12, %19 : vector<128x128xf32>
    %21 = arith.mulf %20, %20 : vector<128x128xf32>
    %cst_12 = arith.constant dense<0.000000e+00> : vector<128xf32>
    %22 = vector.multi_reduction <add>, %21, %cst_12 [0] : vector<128x128xf32> to vector<128xf32>
    %23 = vector.shape_cast %22 : vector<128xf32> to vector<1x128xf32>
    %24 = tpu.concatenate %16, %23 in 0 : vector<1x128xf32>, vector<1x128xf32> -> vector<2x128xf32>
    %25 = vector.shape_cast %24 : vector<2x128xf32> to vector<1x2x128xf32>
    %c0_13 = arith.constant 0 : index
    %c0_14 = arith.constant 0 : index
    %c0_15 = arith.constant 0 : index
    %26 = vector.load %arg6[%c0_13, %c0_14, %c0_15] : memref<1x2x128xf32, #tpu.memory_space<vmem>>, vector<1x2x128xf32>
    tpu.vector_store %arg6[%c0_13, %c0_14, %c0_15], %25 {strides = array<i32>} : memref<1x2x128xf32, #tpu.memory_space<vmem>>, vector<1x2x128xf32>,
    return
  }
  func.func @transform_0(%arg0: i32) -> (i32, i32) {
    %c0_i32 = arith.constant 0 : i32
    %c0_i32_0 = arith.constant 0 : i32
    return %arg0, %c0_i32 : i32, i32
  }
  func.func @transform_1(%arg0: i32) -> (i32, i32) {
    %c0_i32 = arith.constant 0 : i32
    %c0_i32_0 = arith.constant 0 : i32
    %c0_i32_1 = arith.constant 0 : i32
    return %c0_i32, %c0_i32_0 : i32, i32
  }
  func.func @transform_2(%arg0: i32) -> (i32, i32) {
    %c0_i32 = arith.constant 0 : i32
    %c0_i32_0 = arith.constant 0 : i32
    %c0_i32_1 = arith.constant 0 : i32
    return %c0_i32, %c0_i32_0 : i32, i32
  }
  func.func @transform_3(%arg0: i32) -> (i32, i32) {
    %c0_i32 = arith.constant 0 : i32
    %c0_i32_0 = arith.constant 0 : i32
    %c0_i32_1 = arith.constant 0 : i32
    return %c0_i32, %c0_i32_0 : i32, i32
  }
  func.func @transform_4(%arg0: i32) -> (i32, i32) {
    %c0_i32 = arith.constant 0 : i32
    %c0_i32_0 = arith.constant 0 : i32
    return %arg0, %c0_i32 : i32, i32
  }
  func.func @transform_5(%arg0: i32) -> (i32, i32, i32) {
    %c0_i32 = arith.constant 0 : i32
    %c0_i32_0 = arith.constant 0 : i32
    %c0_i32_1 = arith.constant 0 : i32
    return %arg0, %c0_i32, %c0_i32_0 : i32, i32, i32
  }
}

module attributes {stable_mosaic.version = 11 : i64} {
  func.func @conv3x3_kernel(%arg0: i32, %arg1: memref<1x8x8x128xbf16, #tpu.memory_space<vmem>>, %arg2: memref<1x128xf32, #tpu.memory_space<vmem>>, %arg3: memref<1x128xf32, #tpu.memory_space<vmem>>, %arg4: memref<3x384x128xbf16, #tpu.memory_space<vmem>>, %arg5: memref<1x8x8x128xbf16, #tpu.memory_space<vmem>>, %arg6: memref<1x2x128xf32, #tpu.memory_space<vmem>>, %arg7: memref<10x8x384xbf16, #tpu.memory_space<vmem>>, %arg8: memref<64x128xf32, #tpu.memory_space<vmem>>) attributes {dimension_semantics = [#tpu.dimension_semantics<parallel>], iteration_bounds = array<i64: 2>, scalar_prefetch = 0 : i64, scratch_operands = 2 : i64, tpu.core_type = #tpu.core_type<tc>, window_params = [{transform_indices = @transform_0, window_bounds = array<i64: 1, 8, 8, 128>}, {pipeline_mode = #tpu.pipeline_mode<synchronous>, transform_indices = @transform_1, window_bounds = array<i64: 1, 128>}, {pipeline_mode = #tpu.pipeline_mode<synchronous>, transform_indices = @transform_2, window_bounds = array<i64: 1, 128>}, {pipeline_mode = #tpu.pipeline_mode<synchronous>, transform_indices = @transform_3, window_bounds = array<i64: 3, 384, 128>}, {transform_indices = @transform_4, window_bounds = array<i64: 1, 8, 8, 128>}, {transform_indices = @transform_5, window_bounds = array<i64: 1, 2, 128>}]} {
    %c0 = arith.constant 0 : index
    %c0_0 = arith.constant 0 : index
    %c0_1 = arith.constant 0 : index
    %c0_2 = arith.constant 0 : index
    %0 = vector.load %arg1[%c0, %c0_0, %c0_1, %c0_2] : memref<1x8x8x128xbf16, #tpu.memory_space<vmem>>, vector<1x8x8x128xbf16>
    %1 = vector.shape_cast %0 : vector<1x8x8x128xbf16> to vector<8x8x128xbf16>
    %2 = arith.extf %1 : vector<8x8x128xbf16> to vector<8x8x128xf32>
    %c0_3 = arith.constant 0 : index
    %c0_4 = arith.constant 0 : index
    %3 = vector.load %arg2[%c0_3, %c0_4] : memref<1x128xf32, #tpu.memory_space<vmem>>, vector<1x128xf32>
    %4 = vector.shape_cast %3 : vector<1x128xf32> to vector<1x1x128xf32>
    %c0_5 = arith.constant 0 : index
    %c0_6 = arith.constant 0 : index
    %5 = vector.load %arg3[%c0_5, %c0_6] : memref<1x128xf32, #tpu.memory_space<vmem>>, vector<1x128xf32>
    %6 = vector.shape_cast %5 : vector<1x128xf32> to vector<1x1x128xf32>
    %7 = vector.broadcast %4 : vector<1x1x128xf32> to vector<8x8x128xf32>
    %8 = arith.mulf %2, %7 : vector<8x8x128xf32>
    %9 = vector.broadcast %6 : vector<1x1x128xf32> to vector<8x8x128xf32>
    %10 = arith.addf %8, %9 : vector<8x8x128xf32>
    %cst = arith.constant 0.000000e+00 : f32
    %11 = vector.broadcast %cst : f32 to vector<8x8x128xf32>
    %12 = arith.maximumf %10, %11 : vector<8x8x128xf32>
    %13 = arith.truncf %12 : vector<8x8x128xf32> to vector<8x8x128xbf16>
    %cst_7 = arith.constant 0.000000e+00 : bf16
    %14 = vector.broadcast %cst_7 : bf16 to vector<1x8x384xbf16>
    %cst_8 = arith.constant 0.000000e+00 : bf16
    %15 = vector.broadcast %cst_8 : bf16 to vector<8x1x128xbf16>
    %c0_9 = arith.constant 0 : index
    %c0_10 = arith.constant 0 : index
    %c0_11 = arith.constant 0 : index
    %16 = vector.load %arg7[%c0_9, %c0_10, %c0_11] : memref<10x8x384xbf16, #tpu.memory_space<vmem>>, vector<1x8x384xbf16>
    tpu.vector_store %arg7[%c0_9, %c0_10, %c0_11], %14 {strides = array<i32>} : memref<10x8x384xbf16, #tpu.memory_space<vmem>>, vector<1x8x384xbf16>,
    %c9 = arith.constant 9 : index
    %c0_12 = arith.constant 0 : index
    %c0_13 = arith.constant 0 : index
    %17 = vector.load %arg7[%c9, %c0_12, %c0_13] : memref<10x8x384xbf16, #tpu.memory_space<vmem>>, vector<1x8x384xbf16>
    tpu.vector_store %arg7[%c9, %c0_12, %c0_13], %14 {strides = array<i32>} : memref<10x8x384xbf16, #tpu.memory_space<vmem>>, vector<1x8x384xbf16>,
    %c1 = arith.constant 1 : index
    %c0_14 = arith.constant 0 : index
    %c0_15 = arith.constant 0 : index
    %18 = vector.load %arg7[%c1, %c0_14, %c0_15] : memref<10x8x384xbf16, #tpu.memory_space<vmem>>, vector<8x1x128xbf16>
    tpu.vector_store %arg7[%c1, %c0_14, %c0_15], %15 {strides = array<i32>} : memref<10x8x384xbf16, #tpu.memory_space<vmem>>, vector<8x1x128xbf16>,
    %c1_16 = arith.constant 1 : index
    %c7 = arith.constant 7 : index
    %c256 = arith.constant 256 : index
    %19 = vector.load %arg7[%c1_16, %c7, %c256] : memref<10x8x384xbf16, #tpu.memory_space<vmem>>, vector<8x1x128xbf16>
    tpu.vector_store %arg7[%c1_16, %c7, %c256], %15 {strides = array<i32>} : memref<10x8x384xbf16, #tpu.memory_space<vmem>>, vector<8x1x128xbf16>,
    %c1_17 = arith.constant 1 : index
    %c0_18 = arith.constant 0 : index
    %c128 = arith.constant 128 : index
    %20 = vector.load %arg7[%c1_17, %c0_18, %c128] : memref<10x8x384xbf16, #tpu.memory_space<vmem>>, vector<8x8x128xbf16>
    tpu.vector_store %arg7[%c1_17, %c0_18, %c128], %13 {strides = array<i32>} : memref<10x8x384xbf16, #tpu.memory_space<vmem>>, vector<8x8x128xbf16>,
    %21 = vector.extract_strided_slice %13 {offsets = [0, 0, 0], sizes = [8, 7, 128], strides = [1, 1, 1]} : vector<8x8x128xbf16> to vector<8x7x128xbf16>
    %c1_19 = arith.constant 1 : index
    %c1_20 = arith.constant 1 : index
    %c0_21 = arith.constant 0 : index
    %22 = vector.load %arg7[%c1_19, %c1_20, %c0_21] : memref<10x8x384xbf16, #tpu.memory_space<vmem>>, vector<8x7x128xbf16>
    tpu.vector_store %arg7[%c1_19, %c1_20, %c0_21], %21 {strides = array<i32>} : memref<10x8x384xbf16, #tpu.memory_space<vmem>>, vector<8x7x128xbf16>,
    %23 = vector.extract_strided_slice %13 {offsets = [0, 1, 0], sizes = [8, 7, 128], strides = [1, 1, 1]} : vector<8x8x128xbf16> to vector<8x7x128xbf16>
    %c1_22 = arith.constant 1 : index
    %c0_23 = arith.constant 0 : index
    %c256_24 = arith.constant 256 : index
    %24 = vector.load %arg7[%c1_22, %c0_23, %c256_24] : memref<10x8x384xbf16, #tpu.memory_space<vmem>>, vector<8x7x128xbf16>
    tpu.vector_store %arg7[%c1_22, %c0_23, %c256_24], %23 {strides = array<i32>} : memref<10x8x384xbf16, #tpu.memory_space<vmem>>, vector<8x7x128xbf16>,
    %c0_25 = arith.constant 0 : index
    %c0_26 = arith.constant 0 : index
    %c0_27 = arith.constant 0 : index
    %25 = vector.load %arg7[%c0_25, %c0_26, %c0_27] : memref<10x8x384xbf16, #tpu.memory_space<vmem>>, vector<8x8x384xbf16>
    %26 = vector.shape_cast %25 : vector<8x8x384xbf16> to vector<64x384xbf16>
    %c0_28 = arith.constant 0 : index
    %c0_29 = arith.constant 0 : index
    %c0_30 = arith.constant 0 : index
    %27 = vector.load %arg4[%c0_28, %c0_29, %c0_30] : memref<3x384x128xbf16, #tpu.memory_space<vmem>>, vector<1x384x128xbf16>
    %28 = vector.shape_cast %27 : vector<1x384x128xbf16> to vector<384x128xbf16>
    %cst_31 = arith.constant dense<0.000000e+00> : vector<64x128xf32>
    %29 = tpu.matmul %26, %28, %cst_31 {dimension_numbers = #tpu.dot_dimension_numbers<[1], [0], [0], [1], [0, 0, 1, 1], [], []>} : vector<64x384xbf16>, vector<384x128xbf16>, vector<64x128xf32> -> vector<64x128xf32>
    %c0_32 = arith.constant 0 : index
    %c0_33 = arith.constant 0 : index
    %30 = vector.load %arg8[%c0_32, %c0_33] : memref<64x128xf32, #tpu.memory_space<vmem>>, vector<64x128xf32>
    tpu.vector_store %arg8[%c0_32, %c0_33], %29 {strides = array<i32>} : memref<64x128xf32, #tpu.memory_space<vmem>>, vector<64x128xf32>,
    %c0_34 = arith.constant 0 : index
    %c0_35 = arith.constant 0 : index
    %31 = vector.load %arg8[%c0_34, %c0_35] : memref<64x128xf32, #tpu.memory_space<vmem>>, vector<64x128xf32>
    %c1_36 = arith.constant 1 : index
    %c0_37 = arith.constant 0 : index
    %c0_38 = arith.constant 0 : index
    %32 = vector.load %arg7[%c1_36, %c0_37, %c0_38] : memref<10x8x384xbf16, #tpu.memory_space<vmem>>, vector<8x8x384xbf16>
    %33 = vector.shape_cast %32 : vector<8x8x384xbf16> to vector<64x384xbf16>
    %c1_39 = arith.constant 1 : index
    %c0_40 = arith.constant 0 : index
    %c0_41 = arith.constant 0 : index
    %34 = vector.load %arg4[%c1_39, %c0_40, %c0_41] : memref<3x384x128xbf16, #tpu.memory_space<vmem>>, vector<1x384x128xbf16>
    %35 = vector.shape_cast %34 : vector<1x384x128xbf16> to vector<384x128xbf16>
    %cst_42 = arith.constant dense<0.000000e+00> : vector<64x128xf32>
    %36 = tpu.matmul %33, %35, %cst_42 {dimension_numbers = #tpu.dot_dimension_numbers<[1], [0], [0], [1], [0, 0, 1, 1], [], []>} : vector<64x384xbf16>, vector<384x128xbf16>, vector<64x128xf32> -> vector<64x128xf32>
    %37 = arith.addf %31, %36 : vector<64x128xf32>
    %c0_43 = arith.constant 0 : index
    %c0_44 = arith.constant 0 : index
    %38 = vector.load %arg8[%c0_43, %c0_44] : memref<64x128xf32, #tpu.memory_space<vmem>>, vector<64x128xf32>
    tpu.vector_store %arg8[%c0_43, %c0_44], %37 {strides = array<i32>} : memref<64x128xf32, #tpu.memory_space<vmem>>, vector<64x128xf32>,
    %c0_45 = arith.constant 0 : index
    %c0_46 = arith.constant 0 : index
    %39 = vector.load %arg8[%c0_45, %c0_46] : memref<64x128xf32, #tpu.memory_space<vmem>>, vector<64x128xf32>
    %c2 = arith.constant 2 : index
    %c0_47 = arith.constant 0 : index
    %c0_48 = arith.constant 0 : index
    %40 = vector.load %arg7[%c2, %c0_47, %c0_48] : memref<10x8x384xbf16, #tpu.memory_space<vmem>>, vector<8x8x384xbf16>
    %41 = vector.shape_cast %40 : vector<8x8x384xbf16> to vector<64x384xbf16>
    %c2_49 = arith.constant 2 : index
    %c0_50 = arith.constant 0 : index
    %c0_51 = arith.constant 0 : index
    %42 = vector.load %arg4[%c2_49, %c0_50, %c0_51] : memref<3x384x128xbf16, #tpu.memory_space<vmem>>, vector<1x384x128xbf16>
    %43 = vector.shape_cast %42 : vector<1x384x128xbf16> to vector<384x128xbf16>
    %cst_52 = arith.constant dense<0.000000e+00> : vector<64x128xf32>
    %44 = tpu.matmul %41, %43, %cst_52 {dimension_numbers = #tpu.dot_dimension_numbers<[1], [0], [0], [1], [0, 0, 1, 1], [], []>} : vector<64x384xbf16>, vector<384x128xbf16>, vector<64x128xf32> -> vector<64x128xf32>
    %45 = arith.addf %39, %44 : vector<64x128xf32>
    %c0_53 = arith.constant 0 : index
    %c0_54 = arith.constant 0 : index
    %46 = vector.load %arg8[%c0_53, %c0_54] : memref<64x128xf32, #tpu.memory_space<vmem>>, vector<64x128xf32>
    tpu.vector_store %arg8[%c0_53, %c0_54], %45 {strides = array<i32>} : memref<64x128xf32, #tpu.memory_space<vmem>>, vector<64x128xf32>,
    %c0_55 = arith.constant 0 : index
    %c0_56 = arith.constant 0 : index
    %47 = vector.load %arg8[%c0_55, %c0_56] : memref<64x128xf32, #tpu.memory_space<vmem>>, vector<64x128xf32>
    %48 = vector.shape_cast %47 : vector<64x128xf32> to vector<1x8x8x128xf32>
    %49 = arith.truncf %48 : vector<1x8x8x128xf32> to vector<1x8x8x128xbf16>
    %c0_57 = arith.constant 0 : index
    %c0_58 = arith.constant 0 : index
    %c0_59 = arith.constant 0 : index
    %c0_60 = arith.constant 0 : index
    %50 = vector.load %arg5[%c0_57, %c0_58, %c0_59, %c0_60] : memref<1x8x8x128xbf16, #tpu.memory_space<vmem>>, vector<1x8x8x128xbf16>
    tpu.vector_store %arg5[%c0_57, %c0_58, %c0_59, %c0_60], %49 {strides = array<i32>} : memref<1x8x8x128xbf16, #tpu.memory_space<vmem>>, vector<1x8x8x128xbf16>,
    %cst_61 = arith.constant dense<0.000000e+00> : vector<128xf32>
    %51 = vector.multi_reduction <add>, %47, %cst_61 [0] : vector<64x128xf32> to vector<128xf32>
    %52 = vector.shape_cast %51 : vector<128xf32> to vector<1x128xf32>
    %cst_62 = arith.constant 1.562500e-02 : f32
    %53 = vector.broadcast %cst_62 : f32 to vector<1x128xf32>
    %54 = arith.mulf %52, %53 : vector<1x128xf32>
    %55 = vector.broadcast %54 : vector<1x128xf32> to vector<64x128xf32>
    %56 = arith.subf %47, %55 : vector<64x128xf32>
    %57 = arith.mulf %56, %56 : vector<64x128xf32>
    %cst_63 = arith.constant dense<0.000000e+00> : vector<128xf32>
    %58 = vector.multi_reduction <add>, %57, %cst_63 [0] : vector<64x128xf32> to vector<128xf32>
    %59 = vector.shape_cast %58 : vector<128xf32> to vector<1x128xf32>
    %60 = tpu.concatenate %52, %59 in 0 : vector<1x128xf32>, vector<1x128xf32> -> vector<2x128xf32>
    %61 = vector.shape_cast %60 : vector<2x128xf32> to vector<1x2x128xf32>
    %c0_64 = arith.constant 0 : index
    %c0_65 = arith.constant 0 : index
    %c0_66 = arith.constant 0 : index
    %62 = vector.load %arg6[%c0_64, %c0_65, %c0_66] : memref<1x2x128xf32, #tpu.memory_space<vmem>>, vector<1x2x128xf32>
    tpu.vector_store %arg6[%c0_64, %c0_65, %c0_66], %61 {strides = array<i32>} : memref<1x2x128xf32, #tpu.memory_space<vmem>>, vector<1x2x128xf32>,
    return
  }
  func.func @transform_0(%arg0: i32) -> (i32, i32, i32, i32) {
    %c0_i32 = arith.constant 0 : i32
    %c0_i32_0 = arith.constant 0 : i32
    %c0_i32_1 = arith.constant 0 : i32
    %c0_i32_2 = arith.constant 0 : i32
    return %arg0, %c0_i32, %c0_i32_0, %c0_i32_1 : i32, i32, i32, i32
  }
  func.func @transform_1(%arg0: i32) -> (i32, i32) {
    %c0_i32 = arith.constant 0 : i32
    %c0_i32_0 = arith.constant 0 : i32
    %c0_i32_1 = arith.constant 0 : i32
    return %c0_i32, %c0_i32_0 : i32, i32
  }
  func.func @transform_2(%arg0: i32) -> (i32, i32) {
    %c0_i32 = arith.constant 0 : i32
    %c0_i32_0 = arith.constant 0 : i32
    %c0_i32_1 = arith.constant 0 : i32
    return %c0_i32, %c0_i32_0 : i32, i32
  }
  func.func @transform_3(%arg0: i32) -> (i32, i32, i32) {
    %c0_i32 = arith.constant 0 : i32
    %c0_i32_0 = arith.constant 0 : i32
    %c0_i32_1 = arith.constant 0 : i32
    %c0_i32_2 = arith.constant 0 : i32
    return %c0_i32, %c0_i32_0, %c0_i32_1 : i32, i32, i32
  }
  func.func @transform_4(%arg0: i32) -> (i32, i32, i32, i32) {
    %c0_i32 = arith.constant 0 : i32
    %c0_i32_0 = arith.constant 0 : i32
    %c0_i32_1 = arith.constant 0 : i32
    %c0_i32_2 = arith.constant 0 : i32
    return %arg0, %c0_i32, %c0_i32_0, %c0_i32_1 : i32, i32, i32, i32
  }
  func.func @transform_5(%arg0: i32) -> (i32, i32, i32) {
    %c0_i32 = arith.constant 0 : i32
    %c0_i32_0 = arith.constant 0 : i32
    %c0_i32_1 = arith.constant 0 : i32
    return %arg0, %c0_i32, %c0_i32_0 : i32, i32, i32
  }
}

module attributes {stable_mosaic.version = 11 : i64} {
  func.func @residual_kernel(%arg0: i32, %arg1: memref<128x128xbf16, #tpu.memory_space<vmem>>, %arg2: memref<128x128xbf16, #tpu.memory_space<vmem>>, %arg3: memref<1x128xf32, #tpu.memory_space<vmem>>, %arg4: memref<1x128xf32, #tpu.memory_space<vmem>>, %arg5: memref<1x128xf32, #tpu.memory_space<vmem>>, %arg6: memref<1x128xf32, #tpu.memory_space<vmem>>, %arg7: memref<128x128xbf16, #tpu.memory_space<vmem>>) attributes {dimension_semantics = [#tpu.dimension_semantics<parallel>], iteration_bounds = array<i64: 1>, scalar_prefetch = 0 : i64, scratch_operands = 0 : i64, tpu.core_type = #tpu.core_type<tc>, window_params = [{transform_indices = @transform_0, window_bounds = array<i64: 128, 128>}, {transform_indices = @transform_1, window_bounds = array<i64: 128, 128>}, {pipeline_mode = #tpu.pipeline_mode<synchronous>, transform_indices = @transform_2, window_bounds = array<i64: 1, 128>}, {pipeline_mode = #tpu.pipeline_mode<synchronous>, transform_indices = @transform_3, window_bounds = array<i64: 1, 128>}, {pipeline_mode = #tpu.pipeline_mode<synchronous>, transform_indices = @transform_4, window_bounds = array<i64: 1, 128>}, {pipeline_mode = #tpu.pipeline_mode<synchronous>, transform_indices = @transform_5, window_bounds = array<i64: 1, 128>}, {transform_indices = @transform_6, window_bounds = array<i64: 128, 128>}]} {
    %c0 = arith.constant 0 : index
    %c0_0 = arith.constant 0 : index
    %0 = vector.load %arg1[%c0, %c0_0] : memref<128x128xbf16, #tpu.memory_space<vmem>>, vector<128x128xbf16>
    %1 = arith.extf %0 : vector<128x128xbf16> to vector<128x128xf32>
    %c0_1 = arith.constant 0 : index
    %c0_2 = arith.constant 0 : index
    %2 = vector.load %arg3[%c0_1, %c0_2] : memref<1x128xf32, #tpu.memory_space<vmem>>, vector<1x128xf32>
    %3 = vector.broadcast %2 : vector<1x128xf32> to vector<128x128xf32>
    %4 = arith.mulf %1, %3 : vector<128x128xf32>
    %c0_3 = arith.constant 0 : index
    %c0_4 = arith.constant 0 : index
    %5 = vector.load %arg4[%c0_3, %c0_4] : memref<1x128xf32, #tpu.memory_space<vmem>>, vector<1x128xf32>
    %6 = vector.broadcast %5 : vector<1x128xf32> to vector<128x128xf32>
    %7 = arith.addf %4, %6 : vector<128x128xf32>
    %c0_5 = arith.constant 0 : index
    %c0_6 = arith.constant 0 : index
    %8 = vector.load %arg2[%c0_5, %c0_6] : memref<128x128xbf16, #tpu.memory_space<vmem>>, vector<128x128xbf16>
    %9 = arith.extf %8 : vector<128x128xbf16> to vector<128x128xf32>
    %c0_7 = arith.constant 0 : index
    %c0_8 = arith.constant 0 : index
    %10 = vector.load %arg5[%c0_7, %c0_8] : memref<1x128xf32, #tpu.memory_space<vmem>>, vector<1x128xf32>
    %11 = vector.broadcast %10 : vector<1x128xf32> to vector<128x128xf32>
    %12 = arith.mulf %9, %11 : vector<128x128xf32>
    %c0_9 = arith.constant 0 : index
    %c0_10 = arith.constant 0 : index
    %13 = vector.load %arg6[%c0_9, %c0_10] : memref<1x128xf32, #tpu.memory_space<vmem>>, vector<1x128xf32>
    %14 = vector.broadcast %13 : vector<1x128xf32> to vector<128x128xf32>
    %15 = arith.addf %12, %14 : vector<128x128xf32>
    %16 = arith.addf %7, %15 : vector<128x128xf32>
    %cst = arith.constant 0.000000e+00 : f32
    %17 = vector.broadcast %cst : f32 to vector<128x128xf32>
    %18 = arith.maximumf %16, %17 : vector<128x128xf32>
    %19 = arith.truncf %18 : vector<128x128xf32> to vector<128x128xbf16>
    %c0_11 = arith.constant 0 : index
    %c0_12 = arith.constant 0 : index
    %20 = vector.load %arg7[%c0_11, %c0_12] : memref<128x128xbf16, #tpu.memory_space<vmem>>, vector<128x128xbf16>
    tpu.vector_store %arg7[%c0_11, %c0_12], %19 {strides = array<i32>} : memref<128x128xbf16, #tpu.memory_space<vmem>>, vector<128x128xbf16>,
    return
  }
  func.func @transform_0(%arg0: i32) -> (i32, i32) {
    %c0_i32 = arith.constant 0 : i32
    %c0_i32_0 = arith.constant 0 : i32
    return %arg0, %c0_i32 : i32, i32
  }
  func.func @transform_1(%arg0: i32) -> (i32, i32) {
    %c0_i32 = arith.constant 0 : i32
    %c0_i32_0 = arith.constant 0 : i32
    return %arg0, %c0_i32 : i32, i32
  }
  func.func @transform_2(%arg0: i32) -> (i32, i32) {
    %c0_i32 = arith.constant 0 : i32
    %c0_i32_0 = arith.constant 0 : i32
    %c0_i32_1 = arith.constant 0 : i32
    return %c0_i32, %c0_i32_0 : i32, i32
  }
  func.func @transform_3(%arg0: i32) -> (i32, i32) {
    %c0_i32 = arith.constant 0 : i32
    %c0_i32_0 = arith.constant 0 : i32
    %c0_i32_1 = arith.constant 0 : i32
    return %c0_i32, %c0_i32_0 : i32, i32
  }
  func.func @transform_4(%arg0: i32) -> (i32, i32) {
    %c0_i32 = arith.constant 0 : i32
    %c0_i32_0 = arith.constant 0 : i32
    %c0_i32_1 = arith.constant 0 : i32
    return %c0_i32, %c0_i32_0 : i32, i32
  }
  func.func @transform_5(%arg0: i32) -> (i32, i32) {
    %c0_i32 = arith.constant 0 : i32
    %c0_i32_0 = arith.constant 0 : i32
    %c0_i32_1 = arith.constant 0 : i32
    return %c0_i32, %c0_i32_0 : i32, i32
  }
  func.func @transform_6(%arg0: i32) -> (i32, i32) {
    %c0_i32 = arith.constant 0 : i32
    %c0_i32_0 = arith.constant 0 : i32
    return %arg0, %c0_i32 : i32, i32
  }
}

module attributes {stable_mosaic.version = 11 : i64} {
  func.func @conv1_kernel(%arg0: i32, %arg1: memref<128x128xbf16, #tpu.memory_space<vmem>>, %arg2: memref<128x128xbf16, #tpu.memory_space<vmem>>, %arg3: memref<128x128xbf16, #tpu.memory_space<vmem>>, %arg4: memref<1x2x128xf32, #tpu.memory_space<vmem>>) attributes {dimension_semantics = [#tpu.dimension_semantics<parallel>], iteration_bounds = array<i64: 1>, scalar_prefetch = 0 : i64, scratch_operands = 0 : i64, tpu.core_type = #tpu.core_type<tc>, window_params = [{transform_indices = @transform_0, window_bounds = array<i64: 128, 128>}, {pipeline_mode = #tpu.pipeline_mode<synchronous>, transform_indices = @transform_1, window_bounds = array<i64: 128, 128>}, {transform_indices = @transform_2, window_bounds = array<i64: 128, 128>}, {transform_indices = @transform_3, window_bounds = array<i64: 1, 2, 128>}]} {
    %c0 = arith.constant 0 : index
    %c0_0 = arith.constant 0 : index
    %0 = vector.load %arg1[%c0, %c0_0] : memref<128x128xbf16, #tpu.memory_space<vmem>>, vector<128x128xbf16>
    %c0_1 = arith.constant 0 : index
    %c0_2 = arith.constant 0 : index
    %1 = vector.load %arg2[%c0_1, %c0_2] : memref<128x128xbf16, #tpu.memory_space<vmem>>, vector<128x128xbf16>
    %cst = arith.constant dense<0.000000e+00> : vector<128x128xf32>
    %2 = tpu.matmul %0, %1, %cst {dimension_numbers = #tpu.dot_dimension_numbers<[1], [0], [0], [1], [0, 0, 1, 1], [], []>} : vector<128x128xbf16>, vector<128x128xbf16>, vector<128x128xf32> -> vector<128x128xf32>
    %3 = arith.truncf %2 : vector<128x128xf32> to vector<128x128xbf16>
    %c0_3 = arith.constant 0 : index
    %c0_4 = arith.constant 0 : index
    %4 = vector.load %arg3[%c0_3, %c0_4] : memref<128x128xbf16, #tpu.memory_space<vmem>>, vector<128x128xbf16>
    tpu.vector_store %arg3[%c0_3, %c0_4], %3 {strides = array<i32>} : memref<128x128xbf16, #tpu.memory_space<vmem>>, vector<128x128xbf16>,
    %cst_5 = arith.constant dense<0.000000e+00> : vector<128xf32>
    %5 = vector.multi_reduction <add>, %2, %cst_5 [0] : vector<128x128xf32> to vector<128xf32>
    %6 = vector.shape_cast %5 : vector<128xf32> to vector<1x128xf32>
    %cst_6 = arith.constant 7.812500e-03 : f32
    %7 = vector.broadcast %cst_6 : f32 to vector<1x128xf32>
    %8 = arith.mulf %6, %7 : vector<1x128xf32>
    %9 = vector.broadcast %8 : vector<1x128xf32> to vector<128x128xf32>
    %10 = arith.subf %2, %9 : vector<128x128xf32>
    %11 = arith.mulf %10, %10 : vector<128x128xf32>
    %cst_7 = arith.constant dense<0.000000e+00> : vector<128xf32>
    %12 = vector.multi_reduction <add>, %11, %cst_7 [0] : vector<128x128xf32> to vector<128xf32>
    %13 = vector.shape_cast %12 : vector<128xf32> to vector<1x128xf32>
    %14 = tpu.concatenate %6, %13 in 0 : vector<1x128xf32>, vector<1x128xf32> -> vector<2x128xf32>
    %15 = vector.shape_cast %14 : vector<2x128xf32> to vector<1x2x128xf32>
    %c0_8 = arith.constant 0 : index
    %c0_9 = arith.constant 0 : index
    %c0_10 = arith.constant 0 : index
    %16 = vector.load %arg4[%c0_8, %c0_9, %c0_10] : memref<1x2x128xf32, #tpu.memory_space<vmem>>, vector<1x2x128xf32>
    tpu.vector_store %arg4[%c0_8, %c0_9, %c0_10], %15 {strides = array<i32>} : memref<1x2x128xf32, #tpu.memory_space<vmem>>, vector<1x2x128xf32>,
    return
  }
  func.func @transform_0(%arg0: i32) -> (i32, i32) {
    %c0_i32 = arith.constant 0 : i32
    %c0_i32_0 = arith.constant 0 : i32
    return %arg0, %c0_i32 : i32, i32
  }
  func.func @transform_1(%arg0: i32) -> (i32, i32) {
    %c0_i32 = arith.constant 0 : i32
    %c0_i32_0 = arith.constant 0 : i32
    %c0_i32_1 = arith.constant 0 : i32
    return %c0_i32, %c0_i32_0 : i32, i32
  }
  func.func @transform_2(%arg0: i32) -> (i32, i32) {
    %c0_i32 = arith.constant 0 : i32
    %c0_i32_0 = arith.constant 0 : i32
    return %arg0, %c0_i32 : i32, i32
  }
  func.func @transform_3(%arg0: i32) -> (i32, i32, i32) {
    %c0_i32 = arith.constant 0 : i32
    %c0_i32_0 = arith.constant 0 : i32
    %c0_i32_1 = arith.constant 0 : i32
    return %arg0, %c0_i32, %c0_i32_0 : i32, i32, i32
  }
}

</mosaic_0001>

<bundles_post_ra>
// kernel: _lambda_.11
= control target key start
LH: loop header
LB: loop body
LE: loop exit
PB: predicated region body
PF: predicated region fallthrough
CT: control target
= control target key end

     0   :  { %s555_s0 = inlined_call_operand.vmem [shape: bf16[128,128], index: 0, kind: input, shape index: {}, may-alias: {0,6}]   ;;  %s556_s1 = inlined_call_operand.vmem [shape: bf16[128,128], index: 1, kind: input, shape index: {}]   ;;  %s557_s2 = inlined_call_operand.vmem [shape: f32[1,128], index: 2, kind: input, shape index: {}]   ;;  %s558_s3 = inlined_call_operand.vmem [shape: f32[1,128], index: 3, kind: input, shape index: {}]   ;;  %s559_s4 = inlined_call_operand.vmem [shape: f32[1,128], index: 4, kind: input, shape index: {}]   ;;  %s560_s5 = inlined_call_operand.vmem [shape: f32[1,128], index: 5, kind: input, shape index: {}]   ;;  %s561_s6 = inlined_call_operand.vmem [shape: bf16[128,128], index: 6, kind: output, shape index: {}, may-alias: {0,6}]  }
   0x1   :  { %v236_v0 = vld [vmem:[%s555_s0] sm:$0xff]   ;;  %v339_v12 = vld [vmem:[%s555_s0 + $0x8] sm:$0xff]   ;;  %v340_v18 = vld [vmem:[%s555_s0 + $0x10] sm:$0xff]  }
   0x2   :  { %v405_v1 = vld [vmem:[%s557_s2] ss:$0 sm:$0xff]  ;;  %v237_v2 = vunpack.c.l.bf16 %v236_v0  ;;  %v238_v3 = vunpack.c.h.bf16 %v236_v0  ;;  %v346_v13 = vld [vmem:[%s556_s1 + $0x8] sm:$0xff]   ;;  %v241_v16 = vunpack.c.l.bf16 %v339_v12  ;;  %v242_v17 = vunpack.c.h.bf16 %v339_v12  ;;  %v347_v31 = vld [vmem:[%s556_s1 + $0x10] sm:$0xff]  }
   0x3   :  { %v410_v4 = vld [vmem:[%s558_s3] ss:$0 sm:$0xff]  ;;  %v273_v21 = vunpack.c.l.bf16 %v346_v13  ;;  %v274_v22 = vunpack.c.h.bf16 %v346_v13  ;;  %v245_v29 = vunpack.c.l.bf16 %v340_v18  ;;  %v246_v30 = vunpack.c.h.bf16 %v340_v18  ;;  %v341_v40 = vld [vmem:[%s555_s0 + $0x18] sm:$0xff]  }
   0x4   :  { %v268_v5 = vld [vmem:[%s556_s1] sm:$0xff]   ;;  %v59_v9 = vmul.f32 %v405_v1, %v237_v2  ;;  %v60_v10 = vmul.f32 %v405_v1, %v238_v3  ;;  %v61_v25 = vmul.f32 %v405_v1, %v241_v16  ;;  %v62_v26 = vmul.f32 %v405_v1, %v242_v17  ;;  %v348_v45 = vld [vmem:[%s556_s1 + $0x18] sm:$0xff]  }
   0x5   :  { %v269_v6 = vunpack.c.l.bf16 %v268_v5  ;;  %v270_v7 = vunpack.c.h.bf16 %v268_v5  ;;  %v418_v8 = vld [vmem:[%s559_s4] ss:$0 sm:$0xff]  ;;  %v63_v38 = vmul.f32 %v405_v1, %v245_v29  ;;  %v64_v39 = vmul.f32 %v405_v1, %v246_v30 }
   0x6   :  { %v425_v11 = vld [vmem:[%s560_s5] ss:$0 sm:$0xff]  ;;  %v79_v19 = vadd.f32 %v410_v4, %v59_v9  ;;  %v80_v20 = vadd.f32 %v410_v4, %v60_v10  ;;  %v133_v27 = vmul.f32 %v418_v8, %v273_v21  ;;  %v134_v28 = vmul.f32 %v418_v8, %v274_v22 }
   0x7   :  { %v131_v14 = vmul.f32 %v418_v8, %v269_v6  ;;  %v132_v15 = vmul.f32 %v418_v8, %v270_v7  ;;  %v81_v34 = vadd.f32 %v410_v4, %v61_v25  ;;  %v82_v35 = vadd.f32 %v410_v4, %v62_v26  ;;  %v342_v54 = vld [vmem:[%s555_s0 + $0x20] sm:$0xff]   ;;  %v350_v25 = vld [vmem:[%s556_s1 + $0x28] sm:$0xff]  }
   0x8   :  { %v153_v36 = vadd.f32 %v425_v11, %v133_v27  ;;  %v154_v37 = vadd.f32 %v425_v11, %v134_v28  ;;  %v277_v43 = vunpack.c.l.bf16 %v347_v31  ;;  %v278_v44 = vunpack.c.h.bf16 %v347_v31  ;;  %v349_v5 = vld [vmem:[%s556_s1 + $0x20] sm:$0xff]  }
   0x9   :  { %v151_v23 = vadd.f32 %v425_v11, %v131_v14  ;;  %v152_v24 = vadd.f32 %v425_v11, %v132_v15  ;;  %v83_v48 = vadd.f32 %v410_v4, %v63_v38  ;;  %v84_v49 = vadd.f32 %v410_v4, %v64_v39 }
   0xa   :  { %v169_v46 = vadd.f32 %v153_v36, %v81_v34  ;;  %v170_v47 = vadd.f32 %v154_v37, %v82_v35  ;;  %v135_v51 = vmul.f32 %v418_v8, %v277_v43  ;;  %v136_v52 = vmul.f32 %v418_v8, %v278_v44  ;;  %v351_v43 = vld [vmem:[%s556_s1 + $0x30] sm:$0xff]  }
   0xb   :  { %v167_v32 = vadd.f32 %v151_v23, %v79_v19  ;;  %v168_v33 = vadd.f32 %v152_v24, %v80_v20  ;;  %v249_v53 = vunpack.c.l.bf16 %v341_v40  ;;  %v250_v57 = vunpack.c.h.bf16 %v341_v40 }
   0xc   :  { %v185_v55 = vmax.f32 %v169_v46, 0.0  ;;  %v186_v56 = vmax.f32 %v170_v47, 0.0  ;;  %v281_v58 = vunpack.c.l.bf16 %v348_v45  ;;  %v155_v59 = vadd.f32 %v425_v11, %v135_v51 }
   0xd   :  { %v183_v41 = vmax.f32 %v167_v32, 0.0  ;;  %v184_v42 = vmax.f32 %v168_v33, 0.0  ;;  %v156_v60 = vadd.f32 %v425_v11, %v136_v52  ;;  %v65_v61 = vmul.f32 %v405_v1, %v249_v53 }
   0xe   :  { %v282_v62 = vunpack.c.h.bf16 %v348_v45  ;;  %v307_v63 = vpack.c.bf16 %v186_v56, %v185_v55  ;;  %v66_v0 = vmul.f32 %v405_v1, %v250_v57  ;;  %v137_v2 = vmul.f32 %v418_v8, %v281_v58 }
   0xf   :  { %v302_v50 = vpack.c.bf16 %v184_v42, %v183_v41  ;;  %v253_v3 = vunpack.c.l.bf16 %v342_v54  ;;  %v171_v6 = vadd.f32 %v155_v59, %v83_v48  ;;  %v172_v7 = vadd.f32 %v156_v60, %v84_v49 }
  0x10   :  { %v85_v9 = vadd.f32 %v410_v4, %v65_v61  ;;  %v138_v10 = vmul.f32 %v418_v8, %v282_v62  ;;  %353 = vst [vmem:[%s561_s6 + $0x8] sm:$0xff] %v307_v63   ;;  %v86_v12 = vadd.f32 %v410_v4, %v66_v0  ;;  %v157_v13 = vadd.f32 %v425_v11, %v137_v2  ;;  %v352_v2 = vld [vmem:[%s556_s1 + $0x38] sm:$0xff]  }
  0x11   :  { %303 = vst [vmem:[%s561_s6] sm:$0xff] %v302_v50   ;;  %v254_v14 = vunpack.c.h.bf16 %v342_v54  ;;  %v67_v15 = vmul.f32 %v405_v1, %v253_v3  ;;  %v187_v17 = vmax.f32 %v171_v6, 0.0  ;;  %v188_v18 = vmax.f32 %v172_v7, 0.0 }
  0x12   :  { %v158_v19 = vadd.f32 %v425_v11, %v138_v10  ;;  %v285_v20 = vunpack.c.l.bf16 %v349_v5  ;;  %v173_v21 = vadd.f32 %v157_v13, %v85_v9  ;;  %v286_v24 = vunpack.c.h.bf16 %v349_v5 }
  0x13   :  { %v68_v22 = vmul.f32 %v405_v1, %v254_v14  ;;  %v87_v23 = vadd.f32 %v410_v4, %v67_v15  ;;  %v312_v26 = vpack.c.bf16 %v188_v18, %v187_v17  ;;  %v289_v38 = vunpack.c.l.bf16 %v350_v25 }
  0x14   :  { %v174_v27 = vadd.f32 %v158_v19, %v86_v12  ;;  %v139_v28 = vmul.f32 %v418_v8, %v285_v20  ;;  %v189_v31 = vmax.f32 %v173_v21, 0.0  ;;  %v140_v33 = vmul.f32 %v418_v8, %v286_v24 }
  0x15   :  { %v88_v32 = vadd.f32 %v410_v4, %v68_v22  ;;  %v290_v41 = vunpack.c.h.bf16 %v350_v25  ;;  %v141_v47 = vmul.f32 %v418_v8, %v289_v38  ;;  %v293_v56 = vunpack.c.l.bf16 %v351_v43 }
  0x16   :  { %v190_v35 = vmax.f32 %v174_v27, 0.0  ;;  %v159_v36 = vadd.f32 %v425_v11, %v139_v28  ;;  %v160_v39 = vadd.f32 %v425_v11, %v140_v33  ;;  %v294_v60 = vunpack.c.h.bf16 %v351_v43 }
  0x17   :  { %v142_v50 = vmul.f32 %v418_v8, %v290_v41  ;;  %v161_v54 = vadd.f32 %v425_v11, %v141_v47  ;;  %v143_v63 = vmul.f32 %v418_v8, %v293_v56  ;;  %v298_v17 = vunpack.c.h.bf16 %v352_v2 }
  0x18   :  { %v343_v16 = vld [vmem:[%s555_s0 + $0x28] sm:$0xff]   ;;  %v344_v30 = vld [vmem:[%s555_s0 + $0x30] sm:$0xff]   ;;  %v317_v44 = vpack.c.bf16 %v190_v35, %v189_v31  ;;  %v175_v45 = vadd.f32 %v159_v36, %v87_v23  ;;  %v176_v48 = vadd.f32 %v160_v39, %v88_v32  ;;  %v144_v7 = vmul.f32 %v418_v8, %v294_v60 }
  0x19   :  { %v257_v29 = vunpack.c.l.bf16 %v343_v16  ;;  %v258_v34 = vunpack.c.h.bf16 %v343_v16  ;;  %354 = vst [vmem:[%s561_s6 + $0x10] sm:$0xff] %v312_v26   ;;  %v261_v42 = vunpack.c.l.bf16 %v344_v30  ;;  %v262_v51 = vunpack.c.h.bf16 %v344_v30 }
  0x1a   :  { %v191_v53 = vmax.f32 %v175_v45, 0.0  ;;  %v192_v57 = vmax.f32 %v176_v48, 0.0  ;;  %v162_v58 = vadd.f32 %v425_v11, %v142_v50  ;;  %v163_v10 = vadd.f32 %v425_v11, %v143_v63 }
  0x1b   :  { %v69_v37 = vmul.f32 %v405_v1, %v257_v29  ;;  %v70_v40 = vmul.f32 %v405_v1, %v258_v34  ;;  %v71_v55 = vmul.f32 %v405_v1, %v261_v42  ;;  %v72_v59 = vmul.f32 %v405_v1, %v262_v51 }
  0x1c   :  { %v322_v3 = vpack.c.bf16 %v192_v57, %v191_v53  ;;  %v164_v15 = vadd.f32 %v425_v11, %v144_v7  ;;  %v297_v16 = vunpack.c.l.bf16 %v352_v2  ;;  %v146_v24 = vmul.f32 %v418_v8, %v298_v17 }
  0x1d   :  { %v89_v46 = vadd.f32 %v410_v4, %v69_v37  ;;  %v90_v49 = vadd.f32 %v410_v4, %v70_v40  ;;  %v91_v62 = vadd.f32 %v410_v4, %v71_v55  ;;  %v92_v6 = vadd.f32 %v410_v4, %v72_v59 }
  0x1e   :  { %v145_v23 = vmul.f32 %v418_v8, %v297_v16 }
  0x1f   :  { %v177_v61 = vadd.f32 %v161_v54, %v89_v46  ;;  %v178_v5 = vadd.f32 %v162_v58, %v90_v49  ;;  %v179_v18 = vadd.f32 %v163_v10, %v91_v62  ;;  %v180_v22 = vadd.f32 %v164_v15, %v92_v6 }
  0x20   :  { %v345_v52 = vld [vmem:[%s555_s0 + $0x38] sm:$0xff]   ;;  %v165_v28 = vadd.f32 %v425_v11, %v145_v23 }
  0x21   :  { %355 = vst [vmem:[%s561_s6 + $0x18] sm:$0xff] %v317_v44   ;;  %v265_v0 = vunpack.c.l.bf16 %v345_v52  ;;  %v193_v9 = vmax.f32 %v177_v61, 0.0  ;;  %v266_v12 = vunpack.c.h.bf16 %v345_v52  ;;  %v194_v14 = vmax.f32 %v178_v5, 0.0 }
  0x22   :  { %356 = vst [vmem:[%s561_s6 + $0x20] sm:$0xff] %v322_v3   ;;  %v195_v25 = vmax.f32 %v179_v18, 0.0  ;;  %v196_v27 = vmax.f32 %v180_v22, 0.0 }
  0x23   :  { %v73_v13 = vmul.f32 %v405_v1, %v265_v0  ;;  %v74_v19 = vmul.f32 %v405_v1, %v266_v12  ;;  %v327_v21 = vpack.c.bf16 %v194_v14, %v193_v9  ;;  %v166_v1 = vadd.f32 %v425_v11, %v146_v24 }
  0x24   :  { %v332_v29 = vpack.c.bf16 %v196_v27, %v195_v25 }
  0x25   :  { %v93_v20 = vadd.f32 %v410_v4, %v73_v13  ;;  %v94_v26 = vadd.f32 %v410_v4, %v74_v19  ;;  %357 = vst [vmem:[%s561_s6 + $0x28] sm:$0xff] %v327_v21  }
  0x26   :  { %358 = vst [vmem:[%s561_s6 + $0x30] sm:$0xff] %v332_v29  }
  0x27   :  { %v181_v30 = vadd.f32 %v165_v28, %v93_v20  ;;  %v182_v31 = vadd.f32 %v166_v1, %v94_v26 }
  0x29   :  { %v197_v8 = vmax.f32 %v181_v30, 0.0  ;;  %v198_v32 = vmax.f32 %v182_v31, 0.0 }
  0x2b   :  { %v337_v33 = vpack.c.bf16 %v198_v32, %v197_v8 }
  0x2d   :  { %359 = vst [vmem:[%s561_s6 + $0x38] sm:$0xff] %v337_v33  }

// kernel: _lambda_.10
= control target key start
LH: loop header
LB: loop body
LE: loop exit
PB: predicated region body
PF: predicated region fallthrough
CT: control target
= control target key end

     0   :  { %vm335_vm0 = vcmask 1040384   ;;  %s670_s3 = inlined_call_operand.vmem [shape: bf16[128,128], index: 3, kind: input, shape index: {}]   ;;  %s671_s1 = inlined_call_operand.vmem [shape: f32[1,128], index: 1, kind: input, shape index: {}]   ;;  %s672_s2 = inlined_call_operand.vmem [shape: f32[1,128], index: 2, kind: input, shape index: {}]   ;;  %s673_s0 = inlined_call_operand.vmem [shape: bf16[128,128], index: 0, kind: input, shape index: {}]   ;;  %s674_s4 = inlined_call_operand.vmem [shape: bf16[128,128], index: 4, kind: output, shape index: {0}]   ;;  %s675_s5 = inlined_call_operand.vmem [shape: f32[1,2,128], index: 5, kind: output, shape index: {1}]  }
   0x1   :  { %v385_v0 = vld [vmem:[%s670_s3 + $0x38] sm:$0xff]  ;;  %v384_v1 = vld [vmem:[%s670_s3 + $0x30] sm:$0xff]  ;;  %v383_v2 = vld [vmem:[%s670_s3 + $0x28] sm:$0xff] }
   0x2   :  { %179 = vmatpush.bf16.msra.mxu0 %v385_v0  ;;  %472 = vmatpush.bf16.msra.mxu1 %v385_v0  ;;  %v387_v3 = vld [vmem:[%s673_s0] sm:$0xff]   ;;  %v459_v5 = vld [vmem:[%s673_s0 + $0x10] sm:$0xff]   ;;  %v381_v15 = vld [vmem:[%s670_s3 + $0x18] sm:$0xff] }
   0x3   :  { %473 = vmatpush.bf16.msra.mxu2 %v385_v0  ;;  %474 = vmatpush.bf16.msra.mxu3 %v385_v0  ;;  %v382_v4 = vld [vmem:[%s670_s3 + $0x20] sm:$0xff]  ;;  %v463_v7 = vld [vmem:[%s673_s0 + $0x30] sm:$0xff]   ;;  %v388_v8 = vunpack.c.l.bf16 %v387_v3  ;;  %v389_v9 = vunpack.c.h.bf16 %v387_v3  ;;  %v396_v11 = vunpack.c.l.bf16 %v459_v5  ;;  %v397_v12 = vunpack.c.h.bf16 %v459_v5  ;;  %v379_v34 = vld [vmem:[%s670_s3 + $0x8] sm:$0xff] }
   0x4   :  { %v461_v6 = vld [vmem:[%s673_s0 + $0x20] sm:$0xff]   ;;  %v412_v16 = vunpack.c.l.bf16 %v463_v7  ;;  %v413_v17 = vunpack.c.h.bf16 %v463_v7  ;;  %v380_v25 = vld [vmem:[%s670_s3 + $0x10] sm:$0xff]  ;;  %v458_v43 = vld [vmem:[%s673_s0 + $0x8] sm:$0xff]  }
   0x5   :  { %v555_v10 = vld [vmem:[%s671_s1] ss:$0 sm:$0xff]  ;;  %v404_v13 = vunpack.c.l.bf16 %v461_v6  ;;  %v405_v14 = vunpack.c.h.bf16 %v461_v6  ;;  %v460_v44 = vld [vmem:[%s673_s0 + $0x18] sm:$0xff]   ;;  %v462_v48 = vld [vmem:[%s673_s0 + $0x28] sm:$0xff]   ;;  %v392_v51 = vunpack.c.l.bf16 %v458_v43  ;;  %v393_v52 = vunpack.c.h.bf16 %v458_v43 }
   0x6   :  { %180 = vmatpush.bf16.msra.mxu0 %v384_v1  ;;  %475 = vmatpush.bf16.msra.mxu1 %v384_v1  ;;  %v55_v18 = vmul.f32 %v555_v10, %v388_v8  ;;  %v56_v19 = vmul.f32 %v555_v10, %v389_v9  ;;  %v565_v20 = vld [vmem:[%s672_s2] ss:$0 sm:$0xff]  ;;  %v59_v21 = vmul.f32 %v555_v10, %v396_v11  ;;  %v464_v49 = vld [vmem:[%s673_s0 + $0x38] sm:$0xff]   ;;  %v400_v53 = vunpack.c.l.bf16 %v460_v44 }
   0x7   :  { %476 = vmatpush.bf16.msra.mxu2 %v384_v1  ;;  %477 = vmatpush.bf16.msra.mxu3 %v384_v1  ;;  %v60_v22 = vmul.f32 %v555_v10, %v397_v12  ;;  %v63_v23 = vmul.f32 %v555_v10, %v404_v13  ;;  %v64_v24 = vmul.f32 %v555_v10, %v405_v14  ;;  %v378_v45 = vld [vmem:[%s670_s3] sm:$0xff]  ;;  %v401_v56 = vunpack.c.h.bf16 %v460_v44 }
   0x8   :  { %v67_v26 = vmul.f32 %v555_v10, %v412_v16  ;;  %v68_v27 = vmul.f32 %v555_v10, %v413_v17  ;;  %v75_v28 = vadd.f32 %v565_v20, %v55_v18  ;;  %v76_v29 = vadd.f32 %v565_v20, %v56_v19 }
   0x9   :  { %v79_v30 = vadd.f32 %v565_v20, %v59_v21  ;;  %v80_v31 = vadd.f32 %v565_v20, %v60_v22  ;;  %v83_v32 = vadd.f32 %v565_v20, %v63_v23  ;;  %v84_v33 = vadd.f32 %v565_v20, %v64_v24 }
   0xa   :  { %181 = vmatpush.bf16.msra.mxu0 %v383_v2  ;;  %478 = vmatpush.bf16.msra.mxu1 %v383_v2  ;;  %v87_v35 = vadd.f32 %v565_v20, %v67_v26  ;;  %v88_v36 = vadd.f32 %v565_v20, %v68_v27  ;;  %v91_v37 = vmax.f32 %v75_v28, 0.0  ;;  %v92_v38 = vmax.f32 %v76_v29, 0.0 }
   0xb   :  { %479 = vmatpush.bf16.msra.mxu2 %v383_v2  ;;  %480 = vmatpush.bf16.msra.mxu3 %v383_v2  ;;  %v95_v39 = vmax.f32 %v79_v30, 0.0  ;;  %v96_v40 = vmax.f32 %v80_v31, 0.0  ;;  %v99_v41 = vmax.f32 %v83_v32, 0.0  ;;  %v100_v42 = vmax.f32 %v84_v33, 0.0 }
   0xc   :  { %v103_v46 = vmax.f32 %v87_v35, 0.0  ;;  %v104_v47 = vmax.f32 %v88_v36, 0.0  ;;  %v107_v50 = vpack.c.bf16 %v92_v38, %v91_v37  ;;  %v408_v57 = vunpack.c.l.bf16 %v462_v48 }
   0xd   :  { %v109_v54 = vpack.c.bf16 %v96_v40, %v95_v39  ;;  %v111_v55 = vpack.c.bf16 %v100_v42, %v99_v41  ;;  %v409_v59 = vunpack.c.h.bf16 %v462_v48  ;;  %v416_v60 = vunpack.c.l.bf16 %v464_v49 }
   0xe   :  { %182 = vmatpush.bf16.msra.mxu0 %v382_v4  ;;  %481 = vmatpush.bf16.msra.mxu1 %v382_v4  ;;  %v113_v58 = vpack.c.bf16 %v104_v47, %v103_v46  ;;  %v417_v61 = vunpack.c.h.bf16 %v464_v49  ;;  %v57_v62 = vmul.f32 %v555_v10, %v392_v51  ;;  %v58_v63 = vmul.f32 %v555_v10, %v393_v52 }
   0xf   :  { %482 = vmatpush.bf16.msra.mxu2 %v382_v4  ;;  %483 = vmatpush.bf16.msra.mxu3 %v382_v4  ;;  %v61_v0 = vmul.f32 %v555_v10, %v400_v53  ;;  %v62_v1 = vmul.f32 %v555_v10, %v401_v56  ;;  %v65_v2 = vmul.f32 %v555_v10, %v408_v57 }
  0x10   :  { %v66_v3 = vmul.f32 %v555_v10, %v409_v59  ;;  %v69_v4 = vmul.f32 %v555_v10, %v416_v60  ;;  %v70_v5 = vmul.f32 %v555_v10, %v417_v61  ;;  %v77_v6 = vadd.f32 %v565_v20, %v57_v62 }
  0x11   :  { %v78_v7 = vadd.f32 %v565_v20, %v58_v63  ;;  %v81_v8 = vadd.f32 %v565_v20, %v61_v0  ;;  %v82_v9 = vadd.f32 %v565_v20, %v62_v1  ;;  %v85_v11 = vadd.f32 %v565_v20, %v65_v2 }
  0x12   :  { %183 = vmatpush.bf16.msra.mxu0 %v381_v15  ;;  %484 = vmatpush.bf16.msra.mxu1 %v381_v15  ;;  %v86_v12 = vadd.f32 %v565_v20, %v66_v3  ;;  %v89_v13 = vadd.f32 %v565_v20, %v69_v4  ;;  %v90_v14 = vadd.f32 %v565_v20, %v70_v5 }
  0x13   :  { %485 = vmatpush.bf16.msra.mxu2 %v381_v15  ;;  %486 = vmatpush.bf16.msra.mxu3 %v381_v15  ;;  %v93_v15 = vmax.f32 %v77_v6, 0.0  ;;  %v94_v16 = vmax.f32 %v78_v7, 0.0  ;;  %v97_v17 = vmax.f32 %v81_v8, 0.0  ;;  %v98_v10 = vmax.f32 %v82_v9, 0.0 }
  0x14   :  { %v101_v18 = vmax.f32 %v85_v11, 0.0  ;;  %v102_v19 = vmax.f32 %v86_v12, 0.0  ;;  %v105_v21 = vmax.f32 %v89_v13, 0.0  ;;  %v106_v22 = vmax.f32 %v90_v14, 0.0 }
  0x15   :  { %v108_v23 = vpack.c.bf16 %v94_v16, %v93_v15  ;;  %v110_v24 = vpack.c.bf16 %v98_v10, %v97_v17 }
  0x16   :  { %184 = vmatpush.bf16.msra.mxu0 %v380_v25  ;;  %487 = vmatpush.bf16.msra.mxu1 %v380_v25  ;;  %v114_v26 = vpack.c.bf16 %v106_v22, %v105_v21 }
  0x17   :  { %488 = vmatpush.bf16.msra.mxu2 %v380_v25  ;;  %489 = vmatpush.bf16.msra.mxu3 %v380_v25  ;;  %v112_v25 = vpack.c.bf16 %v102_v19, %v101_v18 }
  0x1a   :  { %185 = vmatpush.bf16.msra.mxu0 %v379_v34  ;;  %490 = vmatpush.bf16.msra.mxu1 %v379_v34 }
  0x1b   :  { %491 = vmatpush.bf16.msra.mxu2 %v379_v34  ;;  %492 = vmatpush.bf16.msra.mxu3 %v379_v34 }
  0x1e   :  { %186 = vmatpush.bf16.msra.mxu0 %v378_v45  ;;  %493 = vmatpush.bf16.msra.mxu1 %v378_v45 }
  0x1f   :  { %494 = vmatpush.bf16.msra.mxu2 %v378_v45  ;;  %495 = vmatpush.bf16.msra.mxu3 %v378_v45 }
  0x21   :  { %187 = vmatmul.bf16.vlgmr.msra.gmra.mxu0 %v107_v50  ;;  %197 = vmatmul.bf16.vlgmr.msra.gmra.mxu1 %v109_v54 }
  0x22   :  { %207 = vmatmul.bf16.vlgmr.msra.gmra.mxu2 %v111_v55  ;;  %217 = vmatmul.bf16.vlgmr.msra.gmra.mxu3 %v113_v58 }
  0x31   :  { %192 = vmatmul.bf16.gmra.mxu0 %v108_v23  ;;  %202 = vmatmul.bf16.gmra.mxu1 %v110_v24 }
  0x32   :  { %212 = vmatmul.bf16.gmra.mxu2 %v112_v25  ;;  %222 = vmatmul.bf16.gmra.mxu3 %v114_v26 }
  0x9e   :  { %v188_v27 = vpop.f32.mrf.mxu0  ;;  %v198_v28 = vpop.f32.mrf.mxu1 }
  0xa5   :  { %v618_v29 = vpop.f32.mrf.mxu2  ;;  %v620_v20 = vpop.f32.mrf.mxu3 }
  0xa6   :  { %v190_v30 = vpop.f32.mrf.mxu0  ;;  %v200_v31 = vpop.f32.mrf.mxu1 }
  0xa7   :  { %v421_v32 = vpack.c.bf16 %v190_v30, %v188_v27  ;;  %v431_v33 = vpack.c.bf16 %v200_v31, %v198_v28  ;;  %v260_v40 = vadd.f32 %v190_v30, %v188_v27 }
  0xa9   :  { %422 = vst [vmem:[%s674_s4] sm:$0xff] %v421_v32  }
  0xaa   :  { %466 = vst [vmem:[%s674_s4 + $0x10] sm:$0xff] %v431_v33  }
  0xad   :  { %v628_v34 = vpop.f32.mrf.mxu2  ;;  %v630_v35 = vpop.f32.mrf.mxu3 }
  0xae   :  { %v193_v36 = vpop.f32.mrf.mxu0  ;;  %v203_v37 = vpop.f32.mrf.mxu1  ;;  %v441_v38 = vpack.c.bf16 %v628_v34, %v618_v29  ;;  %v451_v39 = vpack.c.bf16 %v630_v35, %v620_v20 }
  0xaf   :  { %v261_v41 = vadd.f32 %v260_v40, %v193_v36 }
  0xb0   :  { %468 = vst [vmem:[%s674_s4 + $0x20] sm:$0xff] %v441_v38  }
  0xb1   :  { %470 = vst [vmem:[%s674_s4 + $0x30] sm:$0xff] %v451_v39  }
  0xb5   :  { %v213_v42 = vpop.f32.mrf.mxu2  ;;  %v642_v43 = vpop.f32.mrf.mxu3 }
  0xb6   :  { %v195_v44 = vpop.f32.mrf.mxu0  ;;  %v205_v45 = vpop.f32.mrf.mxu1 }
  0xb7   :  { %v426_v46 = vpack.c.bf16 %v195_v44, %v193_v36  ;;  %v262_v47 = vadd.f32 %v261_v41, %v195_v44  ;;  %v436_v48 = vpack.c.bf16 %v205_v45, %v203_v37 }
  0xb9   :  { %465 = vst [vmem:[%s674_s4 + $0x8] sm:$0xff] %v426_v46   ;;  %v263_v49 = vadd.f32 %v262_v47, %v198_v28 }
  0xba   :  { %467 = vst [vmem:[%s674_s4 + $0x18] sm:$0xff] %v436_v48  }
  0xbb   :  { %v264_v50 = vadd.f32 %v263_v49, %v200_v31 }
  0xbd   :  { %v265_v51 = vadd.f32 %v264_v50, %v203_v37  ;;  %v215_v52 = vpop.f32.mrf.mxu2  ;;  %v225_v53 = vpop.f32.mrf.mxu3 }
  0xbe   :  { %v446_v54 = vpack.c.bf16 %v215_v52, %v213_v42  ;;  %v456_v55 = vpack.c.bf16 %v225_v53, %v642_v43 }
  0xbf   :  { %v266_v56 = vadd.f32 %v265_v51, %v205_v45 }
  0xc0   :  { %469 = vst [vmem:[%s674_s4 + $0x28] sm:$0xff] %v446_v54  }
  0xc1   :  { %v267_v57 = vadd.f32 %v266_v56, %v618_v29  ;;  %471 = vst [vmem:[%s674_s4 + $0x38] sm:$0xff] %v456_v55  }
  0xc3   :  { %v268_v58 = vadd.f32 %v267_v57, %v628_v34 }
  0xc5   :  { %v269_v59 = vadd.f32 %v268_v58, %v213_v42 }
  0xc7   :  { %v270_v60 = vadd.f32 %v269_v59, %v215_v52 }
  0xc9   :  { %v271_v61 = vadd.f32 %v270_v60, %v620_v20 }
  0xcb   :  { %v272_v62 = vadd.f32 %v271_v61, %v630_v35 }
  0xcd   :  { %v273_v63 = vadd.f32 %v272_v62, %v642_v43 }
  0xcf   :  { %v274_v0 = vadd.f32 %v273_v63, %v225_v53 }
  0xd1   :  { %v275_v1 = vrot.slane %v274_v0, 4 }
  0xd3   :  { %v276_v2 = vadd.f32 %v275_v1, %v274_v0 }
  0xd5   :  { %v277_v3 = vrot.slane %v276_v2, 2 }
  0xd7   :  { %v278_v4 = vadd.f32 %v277_v3, %v276_v2 }
  0xd9   :  { %v279_v5 = vrot.slane %v278_v4, 1 }
  0xdb   :  { %v280_v6 = vadd.f32 %v279_v5, %v278_v4 }
  0xdd   :  { %v281_v7 = vmul.f32 0.0078125, %v280_v6 }
  0xdf   :  { %v282_v8 = vsub.f32 %v188_v27, %v281_v7  ;;  %v283_v9 = vsub.f32 %v190_v30, %v281_v7  ;;  %v284_v11 = vsub.f32 %v193_v36, %v281_v7  ;;  %v285_v14 = vsub.f32 %v195_v44, %v281_v7 }
  0xe0   :  { %v286_v15 = vsub.f32 %v198_v28, %v281_v7  ;;  %v287_v10 = vsub.f32 %v200_v31, %v281_v7  ;;  %v288_v21 = vsub.f32 %v203_v37, %v281_v7  ;;  %v289_v24 = vsub.f32 %v205_v45, %v281_v7 }
  0xe1   :  { %v298_v12 = vmul.f32 %v282_v8, %v282_v8  ;;  %v299_v13 = vmul.f32 %v283_v9, %v283_v9  ;;  %v300_v16 = vmul.f32 %v284_v11, %v284_v11  ;;  %v301_v18 = vmul.f32 %v285_v14, %v285_v14 }
  0xe2   :  { %v302_v22 = vmul.f32 %v286_v15, %v286_v15  ;;  %v303_v25 = vmul.f32 %v287_v10, %v287_v10  ;;  %v290_v32 = vsub.f32 %v618_v29, %v281_v7  ;;  %v304_v27 = vmul.f32 %v288_v21, %v288_v21 }
  0xe3   :  { %v314_v17 = vadd.f32 %v299_v13, %v298_v12  ;;  %v291_v33 = vsub.f32 %v628_v34, %v281_v7  ;;  %v305_v36 = vmul.f32 %v289_v24, %v289_v24  ;;  %v292_v28 = vsub.f32 %v213_v42, %v281_v7 }
  0xe4   :  { %v306_v39 = vmul.f32 %v290_v32, %v290_v32  ;;  %v293_v31 = vsub.f32 %v215_v52, %v281_v7  ;;  %v294_v37 = vsub.f32 %v620_v20, %v281_v7  ;;  %v295_v47 = vsub.f32 %v630_v35, %v281_v7 }
  0xe5   :  { %v315_v19 = vadd.f32 %v314_v17, %v300_v16  ;;  %v307_v41 = vmul.f32 %v291_v33, %v291_v33  ;;  %v308_v46 = vmul.f32 %v292_v28, %v292_v28  ;;  %v296_v49 = vsub.f32 %v642_v43, %v281_v7 }
  0xe6   :  { %v309_v48 = vmul.f32 %v293_v31, %v293_v31  ;;  %v310_v50 = vmul.f32 %v294_v37, %v294_v37  ;;  %v297_v51 = vsub.f32 %v225_v53, %v281_v7  ;;  %v311_v54 = vmul.f32 %v295_v47, %v295_v47 }
  0xe7   :  { %v316_v23 = vadd.f32 %v315_v19, %v301_v18  ;;  %v312_v55 = vmul.f32 %v296_v49, %v296_v49 }
  0xe8   :  { %v313_v52 = vmul.f32 %v297_v51, %v297_v51 }
  0xe9   :  { %v317_v26 = vadd.f32 %v316_v23, %v302_v22 }
  0xeb   :  { %v318_v30 = vadd.f32 %v317_v26, %v303_v25 }
  0xed   :  { %v319_v38 = vadd.f32 %v318_v30, %v304_v27 }
  0xef   :  { %v320_v40 = vadd.f32 %v319_v38, %v305_v36 }
  0xf1   :  { %v321_v44 = vadd.f32 %v320_v40, %v306_v39 }
  0xf3   :  { %v322_v45 = vadd.f32 %v321_v44, %v307_v41 }
  0xf5   :  { %v323_v29 = vadd.f32 %v322_v45, %v308_v46 }
  0xf7   :  { %v324_v34 = vadd.f32 %v323_v29, %v309_v48 }
  0xf9   :  { %v325_v42 = vadd.f32 %v324_v34, %v310_v50 }
  0xfb   :  { %v326_v56 = vadd.f32 %v325_v42, %v311_v54 }
  0xfd   :  { %v327_v57 = vadd.f32 %v326_v56, %v312_v55 }
  0xff   :  { %v328_v58 = vadd.f32 %v327_v57, %v313_v52 }
 0x101   :  { %v329_v59 = vrot.slane %v328_v58, 4 }
 0x103   :  { %v330_v20 = vadd.f32 %v329_v59, %v328_v58 }
 0x105   :  { %v331_v60 = vrot.slane %v330_v20, 2 }
 0x107   :  { %v332_v61 = vadd.f32 %v331_v60, %v330_v20 }
 0x109   :  { %v333_v62 = vrot.slane %v332_v61, 1 }
 0x10b   :  { %v334_v35 = vadd.f32 %v333_v62, %v332_v61 }
 0x10d   :  { %v336_v63 = vsel %vm335_vm0, %v280_v6, %v334_v35 }
 0x10e   :  { %337 = vst [vmem:[%s675_s5] sm:$0x3] %v336_v63 }

// kernel: _lambda_.8
= control target key start
LH: loop header
LB: loop body
LE: loop exit
PB: predicated region body
PF: predicated region fallthrough
CT: control target
= control target key end

     0   :  { %s1265_s21 = smov 0   ;;  %s1267_s22 = smov 0   ;;  %s1447_s0 = inlined_call_operand.vmem [shape: bf16[2,8,2,8,256], index: 0, kind: input, shape index: {}]   ;;  %s1448_s1 = inlined_call_operand.vmem [shape: bf16[128,128], index: 1, kind: input, shape index: {}]   ;;  %s1449_s2 = inlined_call_operand.vmem [shape: bf16[128,128], index: 2, kind: input, shape index: {}]   ;;  %s1450_s3 = inlined_call_operand.vmem [shape: bf16[2,8,8,128], index: 3, kind: output, shape index: {0}]   ;;  %s1451_s4 = inlined_call_operand.vmem [shape: bf16[2,8,8,128], index: 4, kind: output, shape index: {1}]   ;;  %s1452_s5 = inlined_call_operand.vmem [shape: f32[2,1,2,128], index: 5, kind: output, shape index: {2}]   ;;  %s1453_s6 = inlined_call_operand.vmem [shape: f32[2,1,2,128], index: 6, kind: output, shape index: {3}]  }
   0x1   :  { %s1269_s23 = smov 0   ;;  %s1271_s24 = smov 0  }
   0x2   :  { %s1273_s25 = smov 0  }
   0x3 LB: > { %s29_s26 = sadd.s32 1, %s1224_s24  ;;  %p45_p1 = scmp.ne.s32.totalorder %s1216_s22, %s1212_s21  ;;  %s1228_s25 = sphi %s1273_s25, %s17_s25   ;;  %s1224_s24 = sphi %s1271_s24, %s1457_s24   ;;  %s1220_s23 = sphi %s1269_s23, %s1456_s23   ;;  %s1216_s22 = sphi %s1267_s22, %s1455_s22   ;;  %s1212_s21 = sphi %s1265_s21, %s1454_s21  }
   0x4   : > { %p31_p0 = scmp.ge.s32.totalorder %s29_s26, 2  ;;  %p46_p2 = scmp.eq.s32.totalorder %s1228_s25, 0 }
   0x5   : > { %s38_s28 = sadd.s32 1, %s1216_s22  ;;  %p971_p5 = scmp.ge.s32.totalorder %s1228_s25, 2 }
   0x6   : > { %s1459_s26 = smov (%p31_p0, %s29_s26), 0  ;;  %p47_p3 = por %p46_p2, %p45_p1 }
   0x7   : > { %s33_s27 = ssub.s32 %s1224_s24, %s1459_s26  ;;  %231 = sbr.rel (%p971_p5) target bundleno = 24 (0x18), region = 24 }
   0x8   : > { %p36_p4 = scmp.eq.s32.totalorder %s33_s27, 0 }
   0xa   : > { %s1300_s29 = scalar_select %p36_p4, %s1216_s22, %s38_s28  }
   0xc   : > { %234 = sbr.rel (!%p47_p3) target bundleno = 24 (0x18), region = 28  ;;  %s236_s30 = sand.u32 (%p47_p3), 1, %s1216_s22  }
   0xd   : > { %s1065_s7 = sshll.u32 (%p47_p3), %s1224_s24, 7  ;;  %s972_s8 = sshll.u32 (%p47_p3), %s236_s30, 6 }
   0xe   : > { %s244_s11 = scalar_lea.vmem (%p47_p3), %s1447_s0, %s1065_s7  ;;  %s238_s12 = scalar_lea.vmem (%p47_p3), [#allocation2], %s972_s8 }
   0xf   : > { %v287_v0 = vld [vmem:[%s244_s11] sm:$0xff] (%p47_p3)  ;;  %v289_v1 = vld [vmem:[%s244_s11 + $0x10] sm:$0xff] (%p47_p3) }
  0x10   : > { %v291_v2 = vld [vmem:[%s244_s11 + $0x20] sm:$0xff] (%p47_p3)  ;;  %288 = vst [vmem:[%s238_s12] sm:$0xff] (%p47_p3), %v287_v0  ;;  %v293_v3 = vld [vmem:[%s244_s11 + $0x30] sm:$0xff] (%p47_p3) }
  0x11   : > { %290 = vst [vmem:[%s238_s12 + $0x8] sm:$0xff] %v289_v1  ;;  %v295_v4 = vld [vmem:[%s244_s11 + $0x40] sm:$0xff]  ;;  %v297_v5 = vld [vmem:[%s244_s11 + $0x50] sm:$0xff] }
  0x12   : > { %292 = vst [vmem:[%s238_s12 + $0x10] sm:$0xff] %v291_v2  ;;  %v299_v6 = vld [vmem:[%s244_s11 + $0x60] sm:$0xff]  ;;  %v301_v7 = vld [vmem:[%s244_s11 + $0x70] sm:$0xff] }
  0x13   : > { %294 = vst [vmem:[%s238_s12 + $0x18] sm:$0xff] %v293_v3 }
  0x14   : > { %296 = vst [vmem:[%s238_s12 + $0x20] sm:$0xff] %v295_v4 }
  0x15   : > { %298 = vst [vmem:[%s238_s12 + $0x28] sm:$0xff] %v297_v5 }
  0x16   : > { %300 = vst [vmem:[%s238_s12 + $0x30] sm:$0xff] %v299_v6 }
  0x17   : > { %302 = vst [vmem:[%s238_s12 + $0x38] sm:$0xff] %v301_v7 }
  0x18 PF: > { %p975_p6 = scmp.ge.s32.totalorder %s1228_s25, 1  ;;  %p307_p7 = scmp.lt.s32.totalorder %s1228_s25, 3 }
  0x1a   : > { %p308_p8 = pnand %p975_p6, %p307_p7 }
  0x1b   : > { %s314_s16 = sand.u32 (!%p308_p8), 1, %s1212_s21   ;;  %p372_p9 = scmp.lt.s32.totalorder (!%p308_p8), %s1220_s23, 1 }
  0x1c   : > { %311 = sbr.rel (%p308_p8) target bundleno = 272 (0x110), region = 66  ;;  %s976_s27 = sshll.u32 (!%p308_p8), %s314_s16, 6 }
  0x1d   : > { %s316_s10 = scalar_lea.vmem (!%p308_p8), [#allocation2], %s976_s27 }
  0x21   : > { %v1079_v8 = vld [vmem:[%s1448_s1 + $0x38] sm:$0xff]  ;;  %v1078_v10 = vld [vmem:[%s1448_s1 + $0x30] sm:$0xff]  ;;  %v1077_v12 = vld [vmem:[%s1448_s1 + $0x28] sm:$0xff]  ;;  %s1461_s23 = smov (!%p372_p9, %s1220_s23), 1  ;;  %vm698_vm0 = vcmask 1040384  }
  0x22   : > { %v1087_v9 = vld [vmem:[%s1449_s2 + $0x38] sm:$0xff]  ;;  %501 = vmatpush.bf16.msra.mxu0 %v1079_v8  ;;  %1134 = vmatpush.bf16.msra.mxu2 %v1079_v8  ;;  %v1086_v11 = vld [vmem:[%s1449_s2 + $0x30] sm:$0xff]  ;;  %v1085_v13 = vld [vmem:[%s1449_s2 + $0x28] sm:$0xff]  ;;  %s1066_s13 = sshll.u32 %s1461_s23, 5  ;;  %s981_s20 = sshll.u32 %s1461_s23, 1 }
  0x23   : > { %594 = vmatpush.bf16.msra.mxu1 %v1087_v9  ;;  %1142 = vmatpush.bf16.msra.mxu3 %v1087_v9  ;;  %v1076_v14 = vld [vmem:[%s1448_s1 + $0x20] sm:$0xff]  ;;  %v1075_v16 = vld [vmem:[%s1448_s1 + $0x18] sm:$0xff]  ;;  %v1074_v18 = vld [vmem:[%s1448_s1 + $0x10] sm:$0xff]  ;;  %s1375_s16 = scalar_lea.vmem %s1450_s3, %s1066_s13  ;;  %s1381_s19 = scalar_lea.vmem %s1451_s4, %s1066_s13 }
  0x24   : > { %v1084_v15 = vld [vmem:[%s1449_s2 + $0x20] sm:$0xff]  ;;  %v1083_v17 = vld [vmem:[%s1449_s2 + $0x18] sm:$0xff]  ;;  %v1082_v19 = vld [vmem:[%s1449_s2 + $0x10] sm:$0xff]  ;;  %s397_s30 = scalar_lea.vmem %s1452_s5, %s981_s20  ;;  %s404_s8 = scalar_lea.vmem %s1453_s6, %s981_s20 }
  0x25   : > { %v1073_v20 = vld [vmem:[%s1448_s1 + $0x8] sm:$0xff]  ;;  %v1072_v22 = vld [vmem:[%s1448_s1] sm:$0xff]  ;;  %v989_v30 = vld [vmem:[%s316_s10 + $0x10] sm:$0xf] }
  0x26   : > { %502 = vmatpush.bf16.msra.mxu0 %v1078_v10  ;;  %1135 = vmatpush.bf16.msra.mxu2 %v1078_v10  ;;  %v1081_v21 = vld [vmem:[%s1449_s2 + $0x8] sm:$0xff]  ;;  %v985_v23 = vld [vmem:[%s316_s10] sm:$0xf]  ;;  %v1069_v31 = vld [vmem:[%s316_s10 + $0x14] sm:$0xf0] }
  0x27   : > { %595 = vmatpush.bf16.msra.mxu1 %v1086_v11  ;;  %1143 = vmatpush.bf16.msra.mxu3 %v1086_v11  ;;  %v1068_v24 = vld [vmem:[%s316_s10 + $0x4] sm:$0xf0]  ;;  %v993_v25 = vld [vmem:[%s316_s10 + $0x20] sm:$0xf]  ;;  %v997_v32 = vld [vmem:[%s316_s10 + $0x30] sm:$0xf]  ;;  %v990_v34 = vor.u32 %v1069_v31, %v989_v30 }
  0x28   : > { %v1070_v26 = vld [vmem:[%s316_s10 + $0x24] sm:$0xf0]  ;;  %v1080_v27 = vld [vmem:[%s1449_s2] sm:$0xff]  ;;  %v986_v28 = vor.u32 %v1068_v24, %v985_v23  ;;  %v1071_v33 = vld [vmem:[%s316_s10 + $0x34] sm:$0xf0] }
  0x29   : > { %v994_v29 = vor.u32 %v1070_v26, %v993_v25  ;;  %v998_v35 = vor.u32 %v1071_v33, %v997_v32 }
  0x2a   : > { %503 = vmatpush.bf16.msra.mxu0 %v1077_v12  ;;  %1136 = vmatpush.bf16.msra.mxu2 %v1077_v12 }
  0x2b   : > { %596 = vmatpush.bf16.msra.mxu1 %v1085_v13  ;;  %1144 = vmatpush.bf16.msra.mxu3 %v1085_v13 }
  0x2e   : > { %504 = vmatpush.bf16.msra.mxu0 %v1076_v14  ;;  %1137 = vmatpush.bf16.msra.mxu2 %v1076_v14 }
  0x2f   : > { %597 = vmatpush.bf16.msra.mxu1 %v1084_v15  ;;  %1145 = vmatpush.bf16.msra.mxu3 %v1084_v15 }
  0x32   : > { %505 = vmatpush.bf16.msra.mxu0 %v1075_v16  ;;  %1138 = vmatpush.bf16.msra.mxu2 %v1075_v16 }
  0x33   : > { %598 = vmatpush.bf16.msra.mxu1 %v1083_v17  ;;  %1146 = vmatpush.bf16.msra.mxu3 %v1083_v17 }
  0x36   : > { %506 = vmatpush.bf16.msra.mxu0 %v1074_v18  ;;  %1139 = vmatpush.bf16.msra.mxu2 %v1074_v18 }
  0x37   : > { %599 = vmatpush.bf16.msra.mxu1 %v1082_v19  ;;  %1147 = vmatpush.bf16.msra.mxu3 %v1082_v19 }
  0x3a   : > { %507 = vmatpush.bf16.msra.mxu0 %v1073_v20  ;;  %1140 = vmatpush.bf16.msra.mxu2 %v1073_v20 }
  0x3b   : > { %600 = vmatpush.bf16.msra.mxu1 %v1081_v21  ;;  %1148 = vmatpush.bf16.msra.mxu3 %v1081_v21 }
  0x3e   : > { %508 = vmatpush.bf16.msra.mxu0 %v1072_v22  ;;  %1141 = vmatpush.bf16.msra.mxu2 %v1072_v22 }
  0x3f   : > { %601 = vmatpush.bf16.msra.mxu1 %v1080_v27  ;;  %1149 = vmatpush.bf16.msra.mxu3 %v1080_v27 }
  0x41   : > { %509 = vmatmul.bf16.vlgmr.msra.gmra.mxu0 %v986_v28  ;;  %519 = vmatmul.bf16.vlgmr.msra.gmra.mxu2 %v994_v29 }
  0x42   : > { %602 = vmatmul.bf16.vlgmr.msra.gmra.mxu1 %v986_v28  ;;  %612 = vmatmul.bf16.vlgmr.msra.gmra.mxu3 %v994_v29 }
  0x51   : > { %514 = vmatmul.bf16.gmra.mxu0 %v990_v34  ;;  %524 = vmatmul.bf16.gmra.mxu2 %v998_v35 }
  0x52   : > { %607 = vmatmul.bf16.gmra.mxu1 %v990_v34  ;;  %617 = vmatmul.bf16.gmra.mxu3 %v998_v35 }
  0xbe   : > { %v1360_v36 = vpop.f32.mrf.mxu0 }
  0xbf   : > { %v1362_v37 = vpop.f32.mrf.mxu1 }
  0xc4   : > { %v1368_v38 = vpop.f32.mrf.mxu2 }
  0xc5   : > { %v1370_v39 = vpop.f32.mrf.mxu3 }
  0xc6   : > { %v512_v40 = vpop.f32.mrf.mxu0 }
  0xc7   : > { %v1091_v41 = vpack.c.bf16 %v512_v40, %v1360_v36  ;;  %v1383_v42 = vpop.f32.mrf.mxu1  ;;  %v655_v50 = vadd.f32 %v512_v40, %v1360_v36 }
  0xc8   : > { %v1111_v43 = vpack.c.bf16 %v1383_v42, %v1362_v37  ;;  %v701_v51 = vadd.f32 %v1383_v42, %v1362_v37 }
  0xc9   : > { %1092 = vst [vmem:[%s1375_s16] sm:$0xff] %v1091_v41  }
  0xca   : > { %1112 = vst [vmem:[%s1381_s19] sm:$0xff] %v1111_v43  }
  0xcc   : > { %v522_v44 = vpop.f32.mrf.mxu2 }
  0xcd   : > { %v1101_v45 = vpack.c.bf16 %v522_v44, %v1368_v38  ;;  %v1390_v46 = vpop.f32.mrf.mxu3 }
  0xce   : > { %v1121_v47 = vpack.c.bf16 %v1390_v46, %v1370_v39  ;;  %v515_v48 = vpop.f32.mrf.mxu0 }
  0xcf   : > { %1129 = vst [vmem:[%s1375_s16 + $0x10] sm:$0xff] %v1101_v45   ;;  %v608_v49 = vpop.f32.mrf.mxu1  ;;  %v656_v53 = vadd.f32 %v655_v50, %v515_v48 }
  0xd0   : > { %1132 = vst [vmem:[%s1381_s19 + $0x10] sm:$0xff] %v1121_v47   ;;  %v702_v55 = vadd.f32 %v701_v51, %v608_v49 }
  0xd4   : > { %v525_v52 = vpop.f32.mrf.mxu2 }
  0xd5   : > { %v1399_v54 = vpop.f32.mrf.mxu3 }
  0xd6   : > { %v517_v56 = vpop.f32.mrf.mxu0 }
  0xd7   : > { %v1096_v57 = vpack.c.bf16 %v517_v56, %v515_v48  ;;  %v657_v58 = vadd.f32 %v656_v53, %v517_v56  ;;  %v610_v59 = vpop.f32.mrf.mxu1 }
  0xd8   : > { %v1116_v60 = vpack.c.bf16 %v610_v59, %v608_v49  ;;  %v703_v61 = vadd.f32 %v702_v55, %v610_v59 }
  0xd9   : > { %1128 = vst [vmem:[%s1375_s16 + $0x8] sm:$0xff] %v1096_v57   ;;  %v658_v62 = vadd.f32 %v657_v58, %v1368_v38 }
  0xda   : > { %1131 = vst [vmem:[%s1381_s19 + $0x8] sm:$0xff] %v1116_v60   ;;  %v704_v63 = vadd.f32 %v703_v61, %v1370_v39 }
  0xdb   : > { %v659_v0 = vadd.f32 %v658_v62, %v522_v44 }
  0xdc   : > { %v527_v1 = vpop.f32.mrf.mxu2  ;;  %v705_v2 = vadd.f32 %v704_v63, %v1390_v46 }
  0xdd   : > { %v1106_v3 = vpack.c.bf16 %v527_v1, %v525_v52  ;;  %v660_v4 = vadd.f32 %v659_v0, %v525_v52  ;;  %v620_v5 = vpop.f32.mrf.mxu3 }
  0xde   : > { %v1126_v6 = vpack.c.bf16 %v620_v5, %v1399_v54  ;;  %v706_v7 = vadd.f32 %v705_v2, %v1399_v54 }
  0xdf   : > { %1130 = vst [vmem:[%s1375_s16 + $0x18] sm:$0xff] %v1106_v3   ;;  %v661_v8 = vadd.f32 %v660_v4, %v527_v1 }
  0xe0   : > { %1133 = vst [vmem:[%s1381_s19 + $0x18] sm:$0xff] %v1126_v6   ;;  %v707_v9 = vadd.f32 %v706_v7, %v620_v5 }
  0xe1   : > { %v662_v10 = vrot.slane %v661_v8, 4 }
  0xe2   : > { %v708_v11 = vrot.slane %v707_v9, 4 }
  0xe3   : > { %v663_v12 = vadd.f32 %v662_v10, %v661_v8 }
  0xe4   : > { %v709_v13 = vadd.f32 %v708_v11, %v707_v9 }
  0xe5   : > { %v664_v14 = vrot.slane %v663_v12, 2 }
  0xe6   : > { %v710_v15 = vrot.slane %v709_v13, 2 }
  0xe7   : > { %v665_v16 = vadd.f32 %v664_v14, %v663_v12 }
  0xe8   : > { %v711_v17 = vadd.f32 %v710_v15, %v709_v13 }
  0xe9   : > { %v666_v18 = vrot.slane %v665_v16, 1 }
  0xea   : > { %v712_v19 = vrot.slane %v711_v17, 1 }
  0xeb   : > { %v1410_v20 = vadd.f32 %v666_v18, %v665_v16 }
  0xec   : > { %v1412_v21 = vadd.f32 %v712_v19, %v711_v17 }
  0xed   : > { %v668_v22 = vmul.f32 0.015625, %v1410_v20 }
  0xee   : > { %v714_v26 = vmul.f32 0.015625, %v1412_v21 }
  0xef   : > { %v669_v23 = vsub.f32 %v1360_v36, %v668_v22  ;;  %v670_v24 = vsub.f32 %v512_v40, %v668_v22  ;;  %v671_v25 = vsub.f32 %v515_v48, %v668_v22  ;;  %v672_v27 = vsub.f32 %v517_v56, %v668_v22 }
  0xf0   : > { %v673_v30 = vsub.f32 %v1368_v38, %v668_v22  ;;  %v715_v33 = vsub.f32 %v1362_v37, %v714_v26  ;;  %v716_v34 = vsub.f32 %v1383_v42, %v714_v26  ;;  %v717_v35 = vsub.f32 %v608_v49, %v714_v26 }
  0xf1   : > { %v677_v28 = vmul.f32 %v669_v23, %v669_v23  ;;  %v678_v29 = vmul.f32 %v670_v24, %v670_v24  ;;  %v679_v31 = vmul.f32 %v671_v25, %v671_v25  ;;  %v674_v41 = vsub.f32 %v522_v44, %v668_v22 }
  0xf2   : > { %v680_v43 = vmul.f32 %v672_v27, %v672_v27  ;;  %v718_v36 = vsub.f32 %v610_v59, %v714_v26  ;;  %v723_v40 = vmul.f32 %v715_v33, %v715_v33  ;;  %v724_v47 = vmul.f32 %v716_v34, %v716_v34 }
  0xf3   : > { %v685_v32 = vadd.f32 %v678_v29, %v677_v28  ;;  %v675_v48 = vsub.f32 %v525_v52, %v668_v22  ;;  %v681_v50 = vmul.f32 %v673_v30, %v673_v30  ;;  %v719_v53 = vsub.f32 %v1370_v39, %v714_v26 }
  0xf4   : > { %v725_v55 = vmul.f32 %v717_v35, %v717_v35  ;;  %v731_v38 = vadd.f32 %v724_v47, %v723_v40  ;;  %v676_v56 = vsub.f32 %v527_v1, %v668_v22  ;;  %v682_v57 = vmul.f32 %v674_v41, %v674_v41 }
  0xf5   : > { %v686_v45 = vadd.f32 %v685_v32, %v679_v31  ;;  %v720_v37 = vsub.f32 %v1390_v46, %v714_v26  ;;  %v726_v42 = vmul.f32 %v718_v36, %v718_v36  ;;  %v683_v44 = vmul.f32 %v675_v48, %v675_v48 }
  0xf6   : > { %v732_v49 = vadd.f32 %v731_v38, %v725_v55  ;;  %v721_v59 = vsub.f32 %v1399_v54, %v714_v26  ;;  %v727_v61 = vmul.f32 %v719_v53, %v719_v53  ;;  %v684_v52 = vmul.f32 %v676_v56, %v676_v56 }
  0xf7   : > { %v687_v51 = vadd.f32 %v686_v45, %v680_v43  ;;  %v722_v0 = vsub.f32 %v620_v5, %v714_v26  ;;  %v728_v39 = vmul.f32 %v720_v37, %v720_v37 }
  0xf8   : > { %v733_v62 = vadd.f32 %v732_v49, %v726_v42  ;;  %v729_v1 = vmul.f32 %v721_v59, %v721_v59 }
  0xf9   : > { %v688_v58 = vadd.f32 %v687_v51, %v681_v50  ;;  %v730_v7 = vmul.f32 %v722_v0, %v722_v0 }
  0xfa   : > { %v734_v2 = vadd.f32 %v733_v62, %v727_v61 }
  0xfb   : > { %v689_v60 = vadd.f32 %v688_v58, %v682_v57 }
  0xfc   : > { %v735_v4 = vadd.f32 %v734_v2, %v728_v39 }
  0xfd   : > { %v690_v63 = vadd.f32 %v689_v60, %v683_v44 }
  0xfe   : > { %v736_v46 = vadd.f32 %v735_v4, %v729_v1 }
  0xff   : > { %v691_v3 = vadd.f32 %v690_v63, %v684_v52 }
 0x100   : > { %v737_v9 = vadd.f32 %v736_v46, %v730_v7 }
 0x101   : > { %v692_v6 = vrot.slane %v691_v3, 4 }
 0x102   : > { %v738_v11 = vrot.slane %v737_v9, 4 }
 0x103   : > { %v693_v8 = vadd.f32 %v692_v6, %v691_v3 }
 0x104   : > { %v739_v54 = vadd.f32 %v738_v11, %v737_v9 }
 0x105   : > { %v694_v10 = vrot.slane %v693_v8, 2 }
 0x106   : > { %v740_v14 = vrot.slane %v739_v54, 2 }
 0x107   : > { %v695_v12 = vadd.f32 %v694_v10, %v693_v8 }
 0x108   : > { %v741_v15 = vadd.f32 %v740_v14, %v739_v54 }
 0x109   : > { %v696_v13 = vrot.slane %v695_v12, 1 }
 0x10a   : > { %v742_v17 = vrot.slane %v741_v15, 1 }
 0x10b   : > { %v697_v5 = vadd.f32 %v696_v13, %v695_v12 }
 0x10c   : > { %v743_v18 = vadd.f32 %v742_v17, %v741_v15 }
 0x10d   : > { %v699_v16 = vsel %vm698_vm0, %v1410_v20, %v697_v5 }
 0x10e   : > { %700 = vst [vmem:[%s397_s30] sm:$0x3] %v699_v16  ;;  %v744_v19 = vsel %vm698_vm0, %v1412_v21, %v743_v18 }
 0x10f   : > { %745 = vst [vmem:[%s404_s8] sm:$0x3] %v744_v19 }
 0x110 PF: > { %s17_s25 = sadd.s32 1, %s1228_s25   ;;  %s1454_s21 = smov %s1216_s22 }
 0x111   : > { %p14_p10 = scmp.ge.s32.totalorder %s17_s25, 4   ;;  %s1455_s22 = smov %s1300_s29 }
 0x112   : > { %s1456_s23 = smov %s1224_s24  ;;  %s1457_s24 = smov %s1459_s26 }
 0x113   :  { %16 = sbr.rel (!%p14_p10) target bundleno = 3 (0x3), region = 141 }

// kernel: _lambda_.12
= control target key start
LH: loop header
LB: loop body
LE: loop exit
PB: predicated region body
PF: predicated region fallthrough
CT: control target
= control target key end

     0   :  { %vm297_vm0 = vcmask 1040384   ;;  %s579_s1 = inlined_call_operand.vmem [shape: bf16[128,128], index: 1, kind: input, shape index: {}]   ;;  %s580_s0 = inlined_call_operand.vmem [shape: bf16[128,128], index: 0, kind: input, shape index: {}]   ;;  %s581_s2 = inlined_call_operand.vmem [shape: bf16[128,128], index: 2, kind: output, shape index: {0}]   ;;  %s582_s3 = inlined_call_operand.vmem [shape: f32[1,2,128], index: 3, kind: output, shape index: {1}]  }
   0x1   :  { %v387_v0 = vld [vmem:[%s579_s1 + $0x38] sm:$0xff]  ;;  %v386_v1 = vld [vmem:[%s579_s1 + $0x30] sm:$0xff]  ;;  %v385_v2 = vld [vmem:[%s579_s1 + $0x28] sm:$0xff] }
   0x2   :  { %141 = vmatpush.bf16.msra.mxu0 %v387_v0  ;;  %435 = vmatpush.bf16.msra.mxu1 %v387_v0  ;;  %v384_v3 = vld [vmem:[%s579_s1 + $0x20] sm:$0xff]  ;;  %v383_v4 = vld [vmem:[%s579_s1 + $0x18] sm:$0xff]  ;;  %v382_v5 = vld [vmem:[%s579_s1 + $0x10] sm:$0xff] }
   0x3   :  { %436 = vmatpush.bf16.msra.mxu2 %v387_v0  ;;  %437 = vmatpush.bf16.msra.mxu3 %v387_v0  ;;  %v381_v6 = vld [vmem:[%s579_s1 + $0x8] sm:$0xff]  ;;  %v380_v7 = vld [vmem:[%s579_s1] sm:$0xff]  ;;  %v374_v9 = vld [vmem:[%s580_s0 + $0x10] sm:$0xff] }
   0x4   :  { %v372_v8 = vld [vmem:[%s580_s0] sm:$0xff]  ;;  %v378_v11 = vld [vmem:[%s580_s0 + $0x30] sm:$0xff]  ;;  %v373_v12 = vld [vmem:[%s580_s0 + $0x8] sm:$0xff] }
   0x5   :  { %v376_v10 = vld [vmem:[%s580_s0 + $0x20] sm:$0xff]  ;;  %v375_v13 = vld [vmem:[%s580_s0 + $0x18] sm:$0xff]  ;;  %v377_v14 = vld [vmem:[%s580_s0 + $0x28] sm:$0xff] }
   0x6   :  { %142 = vmatpush.bf16.msra.mxu0 %v386_v1  ;;  %438 = vmatpush.bf16.msra.mxu1 %v386_v1  ;;  %v379_v15 = vld [vmem:[%s580_s0 + $0x38] sm:$0xff] }
   0x7   :  { %439 = vmatpush.bf16.msra.mxu2 %v386_v1  ;;  %440 = vmatpush.bf16.msra.mxu3 %v386_v1 }
   0xa   :  { %143 = vmatpush.bf16.msra.mxu0 %v385_v2  ;;  %441 = vmatpush.bf16.msra.mxu1 %v385_v2 }
   0xb   :  { %442 = vmatpush.bf16.msra.mxu2 %v385_v2  ;;  %443 = vmatpush.bf16.msra.mxu3 %v385_v2 }
   0xe   :  { %144 = vmatpush.bf16.msra.mxu0 %v384_v3  ;;  %444 = vmatpush.bf16.msra.mxu1 %v384_v3 }
   0xf   :  { %445 = vmatpush.bf16.msra.mxu2 %v384_v3  ;;  %446 = vmatpush.bf16.msra.mxu3 %v384_v3 }
  0x12   :  { %145 = vmatpush.bf16.msra.mxu0 %v383_v4  ;;  %447 = vmatpush.bf16.msra.mxu1 %v383_v4 }
  0x13   :  { %448 = vmatpush.bf16.msra.mxu2 %v383_v4  ;;  %449 = vmatpush.bf16.msra.mxu3 %v383_v4 }
  0x16   :  { %146 = vmatpush.bf16.msra.mxu0 %v382_v5  ;;  %450 = vmatpush.bf16.msra.mxu1 %v382_v5 }
  0x17   :  { %451 = vmatpush.bf16.msra.mxu2 %v382_v5  ;;  %452 = vmatpush.bf16.msra.mxu3 %v382_v5 }
  0x1a   :  { %147 = vmatpush.bf16.msra.mxu0 %v381_v6  ;;  %453 = vmatpush.bf16.msra.mxu1 %v381_v6 }
  0x1b   :  { %454 = vmatpush.bf16.msra.mxu2 %v381_v6  ;;  %455 = vmatpush.bf16.msra.mxu3 %v381_v6 }
  0x1e   :  { %148 = vmatpush.bf16.msra.mxu0 %v380_v7  ;;  %456 = vmatpush.bf16.msra.mxu1 %v380_v7 }
  0x1f   :  { %457 = vmatpush.bf16.msra.mxu2 %v380_v7  ;;  %458 = vmatpush.bf16.msra.mxu3 %v380_v7 }
  0x21   :  { %149 = vmatmul.bf16.vlgmr.msra.gmra.mxu0 %v372_v8  ;;  %159 = vmatmul.bf16.vlgmr.msra.gmra.mxu1 %v374_v9 }
  0x22   :  { %169 = vmatmul.bf16.vlgmr.msra.gmra.mxu2 %v376_v10  ;;  %179 = vmatmul.bf16.vlgmr.msra.gmra.mxu3 %v378_v11 }
  0x31   :  { %154 = vmatmul.bf16.gmra.mxu0 %v373_v12  ;;  %164 = vmatmul.bf16.gmra.mxu1 %v375_v13 }
  0x32   :  { %174 = vmatmul.bf16.gmra.mxu2 %v377_v14  ;;  %184 = vmatmul.bf16.gmra.mxu3 %v379_v15 }
  0x9e   :  { %v150_v16 = vpop.f32.mrf.mxu0  ;;  %v160_v17 = vpop.f32.mrf.mxu1 }
  0xa5   :  { %v527_v18 = vpop.f32.mrf.mxu2  ;;  %v529_v19 = vpop.f32.mrf.mxu3 }
  0xa6   :  { %v152_v20 = vpop.f32.mrf.mxu0  ;;  %v162_v21 = vpop.f32.mrf.mxu1 }
  0xa7   :  { %v391_v22 = vpack.c.bf16 %v152_v20, %v150_v16  ;;  %v401_v23 = vpack.c.bf16 %v162_v21, %v160_v17  ;;  %v222_v30 = vadd.f32 %v152_v20, %v150_v16 }
  0xa9   :  { %392 = vst [vmem:[%s581_s2] sm:$0xff] %v391_v22  }
  0xaa   :  { %429 = vst [vmem:[%s581_s2 + $0x10] sm:$0xff] %v401_v23  }
  0xad   :  { %v537_v24 = vpop.f32.mrf.mxu2  ;;  %v539_v25 = vpop.f32.mrf.mxu3 }
  0xae   :  { %v155_v26 = vpop.f32.mrf.mxu0  ;;  %v165_v27 = vpop.f32.mrf.mxu1  ;;  %v411_v28 = vpack.c.bf16 %v537_v24, %v527_v18  ;;  %v421_v29 = vpack.c.bf16 %v539_v25, %v529_v19 }
  0xaf   :  { %v223_v31 = vadd.f32 %v222_v30, %v155_v26 }
  0xb0   :  { %431 = vst [vmem:[%s581_s2 + $0x20] sm:$0xff] %v411_v28  }
  0xb1   :  { %433 = vst [vmem:[%s581_s2 + $0x30] sm:$0xff] %v421_v29  }
  0xb5   :  { %v175_v32 = vpop.f32.mrf.mxu2  ;;  %v551_v33 = vpop.f32.mrf.mxu3 }
  0xb6   :  { %v157_v34 = vpop.f32.mrf.mxu0  ;;  %v167_v35 = vpop.f32.mrf.mxu1 }
  0xb7   :  { %v396_v36 = vpack.c.bf16 %v157_v34, %v155_v26  ;;  %v224_v37 = vadd.f32 %v223_v31, %v157_v34  ;;  %v406_v38 = vpack.c.bf16 %v167_v35, %v165_v27 }
  0xb9   :  { %428 = vst [vmem:[%s581_s2 + $0x8] sm:$0xff] %v396_v36   ;;  %v225_v39 = vadd.f32 %v224_v37, %v160_v17 }
  0xba   :  { %430 = vst [vmem:[%s581_s2 + $0x18] sm:$0xff] %v406_v38  }
  0xbb   :  { %v226_v40 = vadd.f32 %v225_v39, %v162_v21 }
  0xbd   :  { %v227_v41 = vadd.f32 %v226_v40, %v165_v27  ;;  %v177_v42 = vpop.f32.mrf.mxu2  ;;  %v187_v43 = vpop.f32.mrf.mxu3 }
  0xbe   :  { %v416_v44 = vpack.c.bf16 %v177_v42, %v175_v32  ;;  %v426_v45 = vpack.c.bf16 %v187_v43, %v551_v33 }
  0xbf   :  { %v228_v46 = vadd.f32 %v227_v41, %v167_v35 }
  0xc0   :  { %432 = vst [vmem:[%s581_s2 + $0x28] sm:$0xff] %v416_v44  }
  0xc1   :  { %v229_v47 = vadd.f32 %v228_v46, %v527_v18  ;;  %434 = vst [vmem:[%s581_s2 + $0x38] sm:$0xff] %v426_v45  }
  0xc3   :  { %v230_v48 = vadd.f32 %v229_v47, %v537_v24 }
  0xc5   :  { %v231_v49 = vadd.f32 %v230_v48, %v175_v32 }
  0xc7   :  { %v232_v50 = vadd.f32 %v231_v49, %v177_v42 }
  0xc9   :  { %v233_v51 = vadd.f32 %v232_v50, %v529_v19 }
  0xcb   :  { %v234_v52 = vadd.f32 %v233_v51, %v539_v25 }
  0xcd   :  { %v235_v53 = vadd.f32 %v234_v52, %v551_v33 }
  0xcf   :  { %v236_v54 = vadd.f32 %v235_v53, %v187_v43 }
  0xd1   :  { %v237_v55 = vrot.slane %v236_v54, 4 }
  0xd3   :  { %v238_v56 = vadd.f32 %v237_v55, %v236_v54 }
  0xd5   :  { %v239_v57 = vrot.slane %v238_v56, 2 }
  0xd7   :  { %v240_v58 = vadd.f32 %v239_v57, %v238_v56 }
  0xd9   :  { %v241_v59 = vrot.slane %v240_v58, 1 }
  0xdb   :  { %v242_v60 = vadd.f32 %v241_v59, %v240_v58 }
  0xdd   :  { %v243_v61 = vmul.f32 0.0078125, %v242_v60 }
  0xdf   :  { %v244_v62 = vsub.f32 %v150_v16, %v243_v61  ;;  %v245_v63 = vsub.f32 %v152_v20, %v243_v61  ;;  %v246_v0 = vsub.f32 %v155_v26, %v243_v61  ;;  %v247_v3 = vsub.f32 %v157_v34, %v243_v61 }
  0xe0   :  { %v248_v4 = vsub.f32 %v160_v17, %v243_v61  ;;  %v249_v7 = vsub.f32 %v162_v21, %v243_v61  ;;  %v250_v10 = vsub.f32 %v165_v27, %v243_v61  ;;  %v251_v13 = vsub.f32 %v167_v35, %v243_v61 }
  0xe1   :  { %v260_v1 = vmul.f32 %v244_v62, %v244_v62  ;;  %v261_v2 = vmul.f32 %v245_v63, %v245_v63  ;;  %v262_v5 = vmul.f32 %v246_v0, %v246_v0  ;;  %v263_v8 = vmul.f32 %v247_v3, %v247_v3 }
  0xe2   :  { %v264_v11 = vmul.f32 %v248_v4, %v248_v4  ;;  %v265_v14 = vmul.f32 %v249_v7, %v249_v7  ;;  %v252_v22 = vsub.f32 %v527_v18, %v243_v61  ;;  %v266_v16 = vmul.f32 %v250_v10, %v250_v10 }
  0xe3   :  { %v276_v6 = vadd.f32 %v261_v2, %v260_v1  ;;  %v253_v23 = vsub.f32 %v537_v24, %v243_v61  ;;  %v267_v26 = vmul.f32 %v251_v13, %v251_v13  ;;  %v254_v17 = vsub.f32 %v175_v32, %v243_v61 }
  0xe4   :  { %v268_v29 = vmul.f32 %v252_v22, %v252_v22  ;;  %v255_v21 = vsub.f32 %v177_v42, %v243_v61  ;;  %v256_v27 = vsub.f32 %v529_v19, %v243_v61  ;;  %v257_v37 = vsub.f32 %v539_v25, %v243_v61 }
  0xe5   :  { %v277_v9 = vadd.f32 %v276_v6, %v262_v5  ;;  %v269_v31 = vmul.f32 %v253_v23, %v253_v23  ;;  %v270_v36 = vmul.f32 %v254_v17, %v254_v17  ;;  %v258_v39 = vsub.f32 %v551_v33, %v243_v61 }
  0xe6   :  { %v271_v38 = vmul.f32 %v255_v21, %v255_v21  ;;  %v272_v40 = vmul.f32 %v256_v27, %v256_v27  ;;  %v259_v41 = vsub.f32 %v187_v43, %v243_v61  ;;  %v273_v44 = vmul.f32 %v257_v37, %v257_v37 }
  0xe7   :  { %v278_v12 = vadd.f32 %v277_v9, %v263_v8  ;;  %v274_v45 = vmul.f32 %v258_v39, %v258_v39 }
  0xe8   :  { %v275_v42 = vmul.f32 %v259_v41, %v259_v41 }
  0xe9   :  { %v279_v15 = vadd.f32 %v278_v12, %v264_v11 }
  0xeb   :  { %v280_v20 = vadd.f32 %v279_v15, %v265_v14 }
  0xed   :  { %v281_v28 = vadd.f32 %v280_v20, %v266_v16 }
  0xef   :  { %v282_v30 = vadd.f32 %v281_v28, %v267_v26 }
  0xf1   :  { %v283_v34 = vadd.f32 %v282_v30, %v268_v29 }
  0xf3   :  { %v284_v35 = vadd.f32 %v283_v34, %v269_v31 }
  0xf5   :  { %v285_v18 = vadd.f32 %v284_v35, %v270_v36 }
  0xf7   :  { %v286_v24 = vadd.f32 %v285_v18, %v271_v38 }
  0xf9   :  { %v287_v32 = vadd.f32 %v286_v24, %v272_v40 }
  0xfb   :  { %v288_v46 = vadd.f32 %v287_v32, %v273_v44 }
  0xfd   :  { %v289_v47 = vadd.f32 %v288_v46, %v274_v45 }
  0xff   :  { %v290_v48 = vadd.f32 %v289_v47, %v275_v42 }
 0x101   :  { %v291_v49 = vrot.slane %v290_v48, 4 }
 0x103   :  { %v292_v19 = vadd.f32 %v291_v49, %v290_v48 }
 0x105   :  { %v293_v50 = vrot.slane %v292_v19, 2 }
 0x107   :  { %v294_v51 = vadd.f32 %v293_v50, %v292_v19 }
 0x109   :  { %v295_v52 = vrot.slane %v294_v51, 1 }
 0x10b   :  { %v296_v25 = vadd.f32 %v295_v52, %v294_v51 }
 0x10d   :  { %v298_v53 = vsel %vm297_vm0, %v242_v60, %v296_v25 }
 0x10e   :  { %299 = vst [vmem:[%s582_s3] sm:$0x3] %v298_v53 }

// kernel: _lambda_.9
= control target key start
LH: loop header
LB: loop body
LE: loop exit
PB: predicated region body
PF: predicated region fallthrough
CT: control target
= control target key end

     0   :  { %s2568_s18 = smov 0   ;;  %s3098_s0 = inlined_call_operand.vmem [shape: bf16[2,8,8,128], index: 0, kind: input, shape index: {}]   ;;  %s3099_s1 = inlined_call_operand.vmem [shape: f32[1,128], index: 1, kind: input, shape index: {}]   ;;  %s3100_s2 = inlined_call_operand.vmem [shape: f32[1,128], index: 2, kind: input, shape index: {}]   ;;  %s3101_s3 = inlined_call_operand.vmem [shape: bf16[3,384,128], index: 3, kind: input, shape index: {}]   ;;  %s3102_s4 = inlined_call_operand.vmem [shape: bf16[2,8,8,128], index: 4, kind: output, shape index: {0}]   ;;  %s3103_s5 = inlined_call_operand.vmem [shape: f32[2,2,128], index: 5, kind: output, shape index: {1}]  }
   0x1 LB: > { %s1810_s19 = sadd.s32 4294967295, %s2535_s18   ;;  %p1814_p0 = scmp.ge.s32.totalorder %s2535_s18, 1  ;;  %s2535_s18 = sphi %s2568_s18, %s16_s18  }
   0x2   : > { %p190_p1 = scmp.lt.s32.totalorder %s2535_s18, 3 }
   0x4   : > { %p191_p2 = pnand %p1814_p0, %p190_p1 }
   0x5   : > { %p222_p3 = scmp.lt.s32.totalorder (!%p191_p2), %s1810_s19, 1 }
   0x6   : > { %194 = sbr.rel (%p191_p2) target bundleno = 379 (0x17b), region = 36 }
   0xb   : > { %v2371_v0 = vld [vmem:[%s3101_s3 + $0x38] sm:$0xff]  ;;  %v2537_v3 = vmov 0   ;;  %v2370_v4 = vld [vmem:[%s3101_s3 + $0x30] sm:$0xff]  ;;  %s3113_s19 = smov (!%p222_p3, %s1810_s19), 1  ;;  %v2369_v7 = vld [vmem:[%s3101_s3 + $0x28] sm:$0xff]  ;;  %vm299_vm0 = vcmask 1040384  }
   0xc   : > { %v2387_v1 = vld [vmem:[%s3101_s3 + $0xb8] sm:$0xff]  ;;  %293 = vst [vmem:[#allocation2] sm:$0xff] %v2537_v3  ;;  %790 = vmatpush.bf16.msra.mxu0 %v2371_v0  ;;  %2502 = vmatpush.bf16.msra.mxu1 %v2371_v0  ;;  %v2386_v5 = vld [vmem:[%s3101_s3 + $0xb0] sm:$0xff]  ;;  %s2350_s7 = sshll.u32 %s3113_s19, 5  ;;  %vm300_vm1 = vsmask.f32 256 }
   0xd   : > { %v2407_v2 = vld [vmem:[%s3101_s3 + $0xf8] sm:$0xff]  ;;  %296 = vst [vmem:[#allocation2 + $0x6c] sm:$0xff] %v2537_v3  ;;  %848 = vmatpush.bf16.msra.mxu2 %v2387_v1  ;;  %v2406_v6 = vld [vmem:[%s3101_s3 + $0xf0] sm:$0xff]  ;;  %s2602_s10 = scalar_lea.vmem %s3098_s0, %s2350_s7  ;;  %v2385_v8 = vld [vmem:[%s3101_s3 + $0xa8] sm:$0xff]  ;;  %vm326_vm3 = vcmask 1043459   ;;  %vm425_vm4 = vcmask 1043456   ;;  %s3059_s20 = scalar_lea.vmem %s3102_s4, %s2350_s7 }
   0xe   : > { %1166 = vmatpush.bf16.msra.mxu3 %v2407_v2  ;;  %294 = vst [vmem:[#allocation2 + $0x8] sm:$0xf] %v2537_v3  ;;  %v2405_v9 = vld [vmem:[%s3101_s3 + $0xe8] sm:$0xff]  ;;  %v2461_v10 = vld [vmem:[%s2602_s10] sm:$0xff]   ;;  %vm2625_vm2 = vmand %vm299_vm0, %vm300_vm1  ;;  %vm426_vm5 = vsmask.f32 7938 }
   0xf   : > { %297 = vst [vmem:[#allocation2 + $0x74] sm:$0xf] %v2537_v3  ;;  %v2462_v11 = vunpack.c.l.bf16 %v2461_v10  ;;  %v2617_v12 = vld [vmem:[%s3099_s1] ss:$0 sm:$0xff]  ;;  %v2463_v13 = vunpack.c.h.bf16 %v2461_v10  ;;  %v302_v16 = vld [vmem:[#allocation2 + $0xc] sm:$0x1]  ;;  %vm2711_vm9 = vmand %vm425_vm4, %vm426_vm5 }
  0x10   : > { %791 = vmatpush.bf16.msra.mxu0 %v2370_v4  ;;  %2503 = vmatpush.bf16.msra.mxu1 %v2370_v4  ;;  %v2622_v14 = vld [vmem:[%s3100_s2] ss:$0 sm:$0xff]  ;;  %v303_v20 = vsel %vm2625_vm2, 0, %v302_v16  ;;  %v2496_v21 = vld [vmem:[%s2602_s10 + $0x8] sm:$0xff]   ;;  %vm327_vm6 = vsmask.f32 7950 }
  0x11   : > { %849 = vmatpush.bf16.msra.mxu2 %v2386_v5  ;;  %v2368_v17 = vld [vmem:[%s3101_s3 + $0x20] sm:$0xff]  ;;  %v258_v19 = vmul.f32 %v2617_v12, %v2462_v11  ;;  %v259_v22 = vmul.f32 %v2617_v12, %v2463_v13  ;;  %304 = vst [vmem:[#allocation2 + $0xc] sm:$0x1] %v303_v20  ;;  %v2467_v24 = vunpack.c.h.bf16 %v2496_v21  ;;  %v2497_v25 = vld [vmem:[%s2602_s10 + $0x10] sm:$0xff]   ;;  %v2466_v27 = vunpack.c.l.bf16 %v2496_v21  ;;  %v314_v31 = vld [vmem:[#allocation2 + $0x3c] sm:$0x1] }
  0x12   : > { %1167 = vmatpush.bf16.msra.mxu3 %v2406_v6  ;;  %v2384_v18 = vld [vmem:[%s3101_s3 + $0xa0] sm:$0xff]  ;;  %v311_v26 = vld [vmem:[#allocation2 + $0x30] sm:$0x1]  ;;  %v2470_v29 = vunpack.c.l.bf16 %v2497_v25  ;;  %v315_v34 = vsel %vm2625_vm2, 0, %v314_v31  ;;  %vm2653_vm7 = vmand %vm326_vm3, %vm327_vm6  ;;  %v2471_v38 = vunpack.c.h.bf16 %v2497_v25  ;;  %vm492_vm8 = vsmask.f32 3328 }
  0x13   : > { %v2404_v23 = vld [vmem:[%s3101_s3 + $0xe0] sm:$0xff]  ;;  %v269_v28 = vadd.f32 %v2622_v14, %v258_v19  ;;  %v312_v30 = vsel %vm2625_vm2, 0, %v311_v26  ;;  %v270_v32 = vadd.f32 %v2622_v14, %v259_v22  ;;  %v261_v33 = vmul.f32 %v2617_v12, %v2467_v24  ;;  %v329_v36 = vld [vmem:[#allocation2 + $0x14] sm:$0x8]  ;;  %v2367_v39 = vld [vmem:[%s3101_s3 + $0x18] sm:$0xff]  ;;  %s1819_s7 = sshll.u32 %s3113_s19, 1 }
  0x14   : > { %792 = vmatpush.bf16.msra.mxu0 %v2369_v7  ;;  %2504 = vmatpush.bf16.msra.mxu1 %v2369_v7  ;;  %313 = vst [vmem:[#allocation2 + $0x30] sm:$0x1] %v312_v30  ;;  %v260_v37 = vmul.f32 %v2617_v12, %v2466_v27  ;;  %v2383_v40 = vld [vmem:[%s3101_s3 + $0x98] sm:$0xff]  ;;  %v262_v42 = vmul.f32 %v2617_v12, %v2470_v29  ;;  %v330_v43 = vsel %vm2653_vm7, 0, %v329_v36  ;;  %v2366_v49 = vld [vmem:[%s3101_s3 + $0x10] sm:$0xff]  ;;  %v2365_v3 = vld [vmem:[%s3101_s3 + $0x8] sm:$0xff]  ;;  %s235_s23 = scalar_lea.vmem %s3103_s5, %s1819_s7 }
  0x15   : > { %850 = vmatpush.bf16.msra.mxu2 %v2385_v8  ;;  %v277_v41 = vmax.f32 %v269_v28, 0.0  ;;  %316 = vst [vmem:[#allocation2 + $0x3c] sm:$0x1] %v315_v34  ;;  %v2403_v44 = vld [vmem:[%s3101_s3 + $0xd8] sm:$0xff]  ;;  %v272_v45 = vadd.f32 %v2622_v14, %v261_v33  ;;  %v278_v46 = vmax.f32 %v270_v32, 0.0  ;;  %v263_v53 = vmul.f32 %v2617_v12, %v2471_v38  ;;  %v2382_v54 = vld [vmem:[%s3101_s3 + $0x90] sm:$0xff]  ;;  %vm2731_vm10 = vmand %vm425_vm4, %vm492_vm8 }
  0x16   : > { %1168 = vmatpush.bf16.msra.mxu3 %v2405_v9  ;;  %331 = vst [vmem:[#allocation2 + $0x14] sm:$0x8] %v330_v43  ;;  %v305_v47 = vld [vmem:[#allocation2 + $0x18] sm:$0x1]  ;;  %v271_v48 = vadd.f32 %v2622_v14, %v260_v37  ;;  %v273_v51 = vadd.f32 %v2622_v14, %v262_v42  ;;  %v2402_v55 = vld [vmem:[%s3101_s3 + $0xd0] sm:$0xff]  ;;  %v2381_v8 = vld [vmem:[%s3101_s3 + $0x88] sm:$0xff] }
  0x17   : > { %v285_v50 = vpack.c.bf16 %v277_v41, %v277_v41  ;;  %v306_v52 = vsel %vm2625_vm2, 0, %v305_v47  ;;  %v280_v56 = vmax.f32 %v272_v45, 0.0  ;;  %v2685_v57 = vpack.c.bf16 %v278_v46, %v278_v46  ;;  %v2696_v2 = vld [vmem:[%s2602_s10 + $0x18] sm:$0xff]   ;;  %v2401_v9 = vld [vmem:[%s3101_s3 + $0xc8] sm:$0xff]  ;;  %v308_v24 = vld [vmem:[#allocation2 + $0x24] sm:$0x1] }
  0x18   : > { %793 = vmatpush.bf16.msra.mxu0 %v2368_v17  ;;  %2505 = vmatpush.bf16.msra.mxu1 %v2368_v17  ;;  %307 = vst [vmem:[#allocation2 + $0x18] sm:$0x1] %v306_v52  ;;  %v279_v58 = vmax.f32 %v271_v48, 0.0  ;;  %v2688_v61 = vadd.f32 %v2622_v14, %v263_v53  ;;  %v281_v62 = vmax.f32 %v273_v51, 0.0  ;;  %v428_v11 = vld [vmem:[#allocation2 + $0xc] sm:$0xf] }
  0x19   : > { %851 = vmatpush.bf16.msra.mxu2 %v2384_v18  ;;  %v362_v59 = vshrl.u32 %v285_v50, 16  ;;  %v365_v60 = vshll.u32 %v285_v50, 16  ;;  %353 = vst [vmem:[#allocation2 + $0x10] sm:$0xf] %v285_v50  ;;  %v2690_v63 = vpack.c.bf16 %v280_v56, %v280_v56  ;;  %v369_v0 = vshrl.u32 %v2685_v57, 16  ;;  %v2364_v38 = vld [vmem:[%s3101_s3] sm:$0xff] }
  0x1a   : > { %1169 = vmatpush.bf16.msra.mxu3 %v2404_v23  ;;  %v372_v1 = vshll.u32 %v2685_v57, 16  ;;  %354 = vst [vmem:[#allocation2 + $0x1c] sm:$0xf] %v2685_v57  ;;  %v2701_v7 = vpack.c.bf16 %v279_v58, %v279_v58  ;;  %v2715_v13 = vpack.c.bf16 %v281_v62, %v281_v62  ;;  %v2474_v18 = vunpack.c.l.bf16 %v2696_v2  ;;  %v317_v42 = vld [vmem:[#allocation2 + $0x48] sm:$0x1]  ;;  %v2380_v48 = vld [vmem:[%s3101_s3 + $0x80] sm:$0xff] }
  0x1b   : > { %v364_v4 = vrot.slane %v362_v59, 7  ;;  %v452_v5 = vrot.slane %v362_v59, 4  ;;  %v453_v6 = vrot.slane %v365_v60, 5  ;;  %v383_v16 = vshrl.u32 %v2690_v63, 16  ;;  %356 = vst [vmem:[#allocation2 + $0x34] sm:$0xf] %v2690_v63 }
  0x1c   : > { %794 = vmatpush.bf16.msra.mxu0 %v2367_v39  ;;  %2506 = vmatpush.bf16.msra.mxu1 %v2367_v39  ;;  %v386_v17 = vshll.u32 %v2690_v63, 16  ;;  %v437_v20 = vld [vmem:[#allocation2 + $0x30] sm:$0xf]  ;;  %v371_v23 = vrot.slane %v369_v0, 7  ;;  %v376_v25 = vshrl.u32 %v2701_v7, 16  ;;  %v390_v27 = vshrl.u32 %v2715_v13, 16 }
  0x1d   : > { %852 = vmatpush.bf16.msra.mxu2 %v2383_v40  ;;  %v367_v19 = vor.u32 %v365_v60, %v364_v4  ;;  %v454_v21 = vor.u32 %v453_v6, %v452_v5  ;;  %v494_v22 = vld [vmem:[#allocation2 + $0x14] sm:$0xf]  ;;  %v385_v26 = vrot.slane %v383_v16, 7  ;;  %v393_v28 = vshll.u32 %v2715_v13, 16  ;;  %357 = vst [vmem:[#allocation2 + $0x40] sm:$0xf] %v2715_v13 }
  0x1e   : > { %1170 = vmatpush.bf16.msra.mxu3 %v2403_v44  ;;  %v309_v30 = vsel %vm2625_vm2, 0, %v308_v24  ;;  %v440_v32 = vld [vmem:[#allocation2 + $0x3c] sm:$0xf]  ;;  %v374_v34 = vor.u32 %v372_v1, %v371_v23  ;;  %v378_v37 = vrot.slane %v376_v25, 7  ;;  %v392_v40 = vrot.slane %v390_v27, 7  ;;  %v2378_v62 = vld [vmem:[%s3101_s3 + $0x70] sm:$0xff] }
  0x1f   : > { %v429_v31 = vsel %vm2711_vm9, %v367_v19, %v428_v11  ;;  %v455_v33 = vrot.slane %v454_v21, 4  ;;  %v431_v36 = vld [vmem:[#allocation2 + $0x18] sm:$0xf]  ;;  %310 = vst [vmem:[#allocation2 + $0x24] sm:$0x1] %v309_v30  ;;  %v388_v39 = vor.u32 %v386_v17, %v385_v26  ;;  %v264_v41 = vmul.f32 %v2617_v12, %v2474_v18  ;;  %v2414_v6 = vld [vmem:[%s3101_s3 + $0x130] sm:$0xff] }
  0x20   : > { %795 = vmatpush.bf16.msra.mxu0 %v2366_v49  ;;  %2507 = vmatpush.bf16.msra.mxu1 %v2366_v49  ;;  %430 = vst [vmem:[#allocation2 + $0xc] sm:$0xf] %v429_v31  ;;  %v432_v44 = vsel %vm2711_vm9, %v374_v34, %v431_v36  ;;  %v379_v45 = vshll.u32 %v2701_v7, 16  ;;  %v282_v46 = vmax.f32 %v2688_v61, 0.0  ;;  %v320_v47 = vld [vmem:[#allocation2 + $0x54] sm:$0x1]  ;;  %v395_v49 = vor.u32 %v393_v28, %v392_v40 }
  0x21   : > { %853 = vmatpush.bf16.msra.mxu2 %v2382_v54  ;;  %v495_v43 = vsel %vm2731_vm10, %v455_v33, %v494_v22  ;;  %355 = vst [vmem:[#allocation2 + $0x28] sm:$0xf] %v2701_v7  ;;  %v438_v50 = vsel %vm2711_vm9, %v388_v39, %v437_v20  ;;  %v2379_v51 = vld [vmem:[%s3101_s3 + $0x78] sm:$0xff]  ;;  %v2768_v52 = vld [vmem:[#allocation2 + $0x20] sm:$0x8]  ;;  %v275_v58 = vadd.f32 %v2622_v14, %v264_v41  ;;  %v318_v60 = vsel %vm2625_vm2, 0, %v317_v42 }
  0x22   : > { %1171 = vmatpush.bf16.msra.mxu3 %v2402_v55  ;;  %496 = vst [vmem:[#allocation2 + $0x14] sm:$0xf] %v495_v43  ;;  %v1822_v53 = vld [vmem:[#allocation2] sm:$0xf]  ;;  %v2415_v55 = vld [vmem:[%s3101_s3 + $0x138] sm:$0xff]  ;;  %v381_v56 = vor.u32 %v379_v45, %v378_v37  ;;  %v2777_v59 = vpack.c.bf16 %v282_v46, %v282_v46  ;;  %v441_v61 = vsel %vm2711_vm9, %v395_v49, %v440_v32  ;;  %v321_v4 = vsel %vm2625_vm2, 0, %v320_v47 }
  0x23   : > { %439 = vst [vmem:[#allocation2 + $0x30] sm:$0xf] %v438_v50  ;;  %v2400_v54 = vld [vmem:[%s3101_s3 + $0xc0] sm:$0xff]  ;;  %v1830_v5 = vld [vmem:[#allocation2 + $0x8] sm:$0xf]  ;;  %v333_v11 = vsel %vm2653_vm7, 0, %v2768_v52 }
  0x24   : > { %796 = vmatpush.bf16.msra.mxu0 %v2365_v3  ;;  %2508 = vmatpush.bf16.msra.mxu1 %v2365_v3  ;;  %433 = vst [vmem:[#allocation2 + $0x18] sm:$0xf] %v432_v44  ;;  %v2443_v3 = vld [vmem:[%s3101_s3 + $0x1b8] sm:$0xff]  ;;  %v335_v18 = vld [vmem:[#allocation2 + $0x2c] sm:$0x8]  ;;  %v2800_v19 = vrot.slane %v369_v0, 4 }
  0x25   : > { %854 = vmatpush.bf16.msra.mxu2 %v2381_v8  ;;  %442 = vst [vmem:[#allocation2 + $0x3c] sm:$0xf] %v441_v61  ;;  %v283_v8 = vmax.f32 %v275_v58, 0.0  ;;  %v400_v21 = vshll.u32 %v2777_v59, 16  ;;  %v457_v22 = vrot.slane %v372_v1, 5  ;;  %v460_v0 = vrot.slane %v376_v25, 4 }
  0x26   : > { %1172 = vmatpush.bf16.msra.mxu3 %v2401_v9  ;;  %v397_v9 = vshrl.u32 %v2777_v59, 16  ;;  %v434_v20 = vld [vmem:[#allocation2 + $0x24] sm:$0xf]  ;;  %319 = vst [vmem:[#allocation2 + $0x48] sm:$0x1] %v318_v60  ;;  %v461_v30 = vrot.slane %v379_v45, 5  ;;  %v2475_v60 = vunpack.c.h.bf16 %v2696_v2 }
  0x27   : > { %v2353_v23 = vld [vmem:[#allocation2 + $0x8] sm:$0xf0]  ;;  %v435_v24 = vsel %vm2711_vm9, %v381_v56, %v434_v20  ;;  %v2807_v26 = vpack.c.bf16 %v283_v8, %v283_v8  ;;  %322 = vst [vmem:[#allocation2 + $0x54] sm:$0x1] %v321_v4  ;;  %v2442_v1 = vld [vmem:[%s3101_s3 + $0x1b0] sm:$0xff]  ;;  %v336_v39 = vsel %vm2653_vm7, 0, %v335_v18  ;;  %v458_v46 = vor.u32 %v457_v22, %v2800_v19 }
  0x28   : > { %797 = vmatpush.bf16.msra.mxu0 %v2364_v38  ;;  %2509 = vmatpush.bf16.msra.mxu1 %v2364_v38  ;;  %v1823_v31 = vor.u32 %v2353_v23, %v1822_v53  ;;  %v2014_v32 = vld [vmem:[#allocation2 + $0xc] sm:$0xf]  ;;  %436 = vst [vmem:[#allocation2 + $0x24] sm:$0xf] %v435_v24  ;;  %v399_v57 = vrot.slane %v397_v9, 7  ;;  %v2451_v43 = vld [vmem:[%s3101_s3 + $0x1f8] sm:$0xff]  ;;  %v462_v50 = vor.u32 %v461_v30, %v460_v0 }
  0x29   : > { %855 = vmatpush.bf16.msra.mxu2 %v2380_v48  ;;  %v2354_v33 = vld [vmem:[#allocation2 + $0x10] sm:$0xf0]  ;;  %v404_v34 = vshrl.u32 %v2807_v26, 16  ;;  %v407_v36 = vshll.u32 %v2807_v26, 16  ;;  %358 = vst [vmem:[#allocation2 + $0x4c] sm:$0xf] %v2777_v59 }
  0x2a   : > { %1173 = vmatpush.bf16.msra.mxu3 %v2400_v54  ;;  %v1846_v7 = vld [vmem:[#allocation2 + $0x30] sm:$0xf]  ;;  %v1831_v25 = vor.u32 %v2354_v33, %v1830_v5  ;;  %v2377_v37 = vld [vmem:[%s3101_s3 + $0x68] sm:$0xff]  ;;  %v402_v38 = vor.u32 %v400_v21, %v399_v57  ;;  %359 = vst [vmem:[#allocation2 + $0x58] sm:$0xf] %v2807_v26  ;;  %v2376_v52 = vld [vmem:[%s3101_s3 + $0x60] sm:$0xff] }
  0x2b   : > { %798 = vmatmul.bf16.vlgmr.msra.gmra.mxu0 %v1823_v31  ;;  %v2389_v40 = vld [vmem:[#allocation2 + $0x14] sm:$0xf0]  ;;  %v2413_v41 = vld [vmem:[%s3101_s3 + $0x128] sm:$0xff]  ;;  %v406_v42 = vrot.slane %v404_v34, 7  ;;  %334 = vst [vmem:[#allocation2 + $0x20] sm:$0x8] %v333_v11 }
  0x2c   : > { %819 = vmatpush.bf16.msrb.mxu1 %v2379_v51  ;;  %1195 = vmatpush.bf16.msrb.mxu0 %v2415_v55  ;;  %v2359_v44 = vld [vmem:[#allocation2 + $0x38] sm:$0xf0]  ;;  %v2015_v45 = vor.u32 %v2389_v40, %v2014_v32  ;;  %337 = vst [vmem:[#allocation2 + $0x2c] sm:$0x8] %v336_v39  ;;  %v2441_v51 = vld [vmem:[%s3101_s3 + $0x1a8] sm:$0xff]  ;;  %v2412_v55 = vld [vmem:[%s3101_s3 + $0x120] sm:$0xff] }
  0x2d   : > { %1551 = vmatpush.bf16.msrb.mxu2 %v2443_v3  ;;  %v1847_v47 = vor.u32 %v2359_v44, %v1846_v7  ;;  %v409_v48 = vor.u32 %v407_v36, %v406_v42  ;;  %v443_v49 = vld [vmem:[#allocation2 + $0x48] sm:$0xf]  ;;  %v464_v58 = vrot.slane %v383_v16, 4  ;;  %v2375_v61 = vld [vmem:[%s3101_s3 + $0x58] sm:$0xff]  ;;  %v465_v16 = vrot.slane %v386_v17, 5  ;;  %v2450_v20 = vld [vmem:[%s3101_s3 + $0x1f0] sm:$0xff] }
  0x2e   : > { %856 = vmatmul.bf16.vlgmr.msra.gmra.mxu2 %v1831_v25  ;;  %1580 = vmatpush.bf16.msrb.mxu3 %v2451_v43  ;;  %v444_v53 = vsel %vm2711_vm9, %v402_v38, %v443_v49  ;;  %v446_v54 = vld [vmem:[#allocation2 + $0x54] sm:$0xf]  ;;  %v1834_v3 = vld [vmem:[#allocation2 + $0x18] sm:$0xf]  ;;  %v341_v11 = vld [vmem:[#allocation2 + $0x44] sm:$0x8] }
  0x2f   : > { %1174 = vmatmul.bf16.vlgmr.msra.gmra.mxu3 %v2015_v45  ;;  %808 = vmatmul.bf16.vlgmr.msra.gmra.mxu1 %v1847_v47  ;;  %445 = vst [vmem:[#allocation2 + $0x48] sm:$0xf] %v444_v53  ;;  %v447_v56 = vsel %vm2711_vm9, %v409_v48, %v446_v54  ;;  %v2356_v4 = vld [vmem:[#allocation2 + $0x20] sm:$0xf0]  ;;  %v2411_v5 = vld [vmem:[%s3101_s3 + $0x118] sm:$0xff]  ;;  %v468_v18 = vrot.slane %v390_v27, 4  ;;  %v466_v17 = vor.u32 %v465_v16, %v464_v58 }
  0x30   : > { %820 = vmatpush.bf16.msrb.mxu1 %v2378_v62  ;;  %1196 = vmatpush.bf16.msrb.mxu0 %v2414_v6  ;;  %448 = vst [vmem:[#allocation2 + $0x54] sm:$0xf] %v447_v56  ;;  %v459_v62 = vrot.slane %v458_v46, 4  ;;  %v463_v6 = vrot.slane %v462_v50, 4  ;;  %v338_v8 = vld [vmem:[#allocation2 + $0x38] sm:$0x8]  ;;  %v265_v27 = vmul.f32 %v2617_v12, %v2475_v60  ;;  %v1835_v31 = vor.u32 %v2356_v4, %v1834_v3 }
  0x31   : > { %1552 = vmatpush.bf16.msrb.mxu2 %v2442_v1  ;;  %v339_v2 = vsel %vm2653_vm7, 0, %v338_v8  ;;  %v469_v19 = vrot.slane %v393_v28, 5  ;;  %v342_v63 = vsel %vm2653_vm7, 0, %v341_v11  ;;  %v2440_v23 = vld [vmem:[%s3101_s3 + $0x1a0] sm:$0xff]  ;;  %v2449_v30 = vld [vmem:[%s3101_s3 + $0x1e8] sm:$0xff]  ;;  %v2439_v12 = vld [vmem:[%s3101_s3 + $0x198] sm:$0xff] }
  0x32   : > { %v497_v22 = vld [vmem:[#allocation2 + $0x20] sm:$0xf]  ;;  %340 = vst [vmem:[#allocation2 + $0x38] sm:$0x8] %v339_v2  ;;  %1581 = vmatpush.bf16.msrb.mxu3 %v2450_v20  ;;  %v2374_v32 = vld [vmem:[%s3101_s3 + $0x50] sm:$0xff]  ;;  %v467_v25 = vrot.slane %v466_v17, 4  ;;  %v276_v38 = vadd.f32 %v2622_v14, %v265_v27 }
  0x33   : > { %v498_v13 = vsel %vm2731_vm10, %v459_v62, %v497_v22  ;;  %v500_v28 = vld [vmem:[#allocation2 + $0x2c] sm:$0xf]  ;;  %343 = vst [vmem:[#allocation2 + $0x44] sm:$0x8] %v342_v63  ;;  %v470_v24 = vor.u32 %v469_v19, %v468_v18  ;;  %v2392_v57 = vld [vmem:[#allocation2 + $0x2c] sm:$0xf0] }
  0x34   : > { %821 = vmatpush.bf16.msrb.mxu1 %v2377_v37  ;;  %1197 = vmatpush.bf16.msrb.mxu0 %v2413_v41  ;;  %499 = vst [vmem:[#allocation2 + $0x20] sm:$0xf] %v498_v13  ;;  %v501_v0 = vsel %vm2731_vm10, %v463_v6, %v500_v28  ;;  %v2410_v1 = vld [vmem:[%s3101_s3 + $0x110] sm:$0xff]  ;;  %v2026_v7 = vld [vmem:[#allocation2 + $0x24] sm:$0xf]  ;;  %v2373_v40 = vld [vmem:[%s3101_s3 + $0x48] sm:$0xff] }
  0x35   : > { %1553 = vmatpush.bf16.msrb.mxu2 %v2441_v51  ;;  %502 = vst [vmem:[#allocation2 + $0x2c] sm:$0xf] %v501_v0  ;;  %v471_v37 = vrot.slane %v470_v24, 4  ;;  %v344_v41 = vld [vmem:[#allocation2 + $0x50] sm:$0x8]  ;;  %v2409_v43 = vld [vmem:[%s3101_s3 + $0x108] sm:$0xff]  ;;  %v2027_v47 = vor.u32 %v2392_v57, %v2026_v7 }
  0x36   : > { %v1858_v33 = vld [vmem:[#allocation2 + $0x48] sm:$0xf]  ;;  %1582 = vmatpush.bf16.msrb.mxu3 %v2449_v30  ;;  %v347_v42 = vld [vmem:[#allocation2 + $0x5c] sm:$0x8]  ;;  %v345_v44 = vsel %vm2653_vm7, 0, %v344_v41  ;;  %v472_v14 = vrot.slane %v397_v9, 4 }
  0x37   : > { %v2362_v39 = vld [vmem:[#allocation2 + $0x50] sm:$0xf0]  ;;  %v348_v45 = vsel %vm2653_vm7, 0, %v347_v42  ;;  %v323_v46 = vld [vmem:[#allocation2 + $0x60] sm:$0x1]  ;;  %v473_v49 = vrot.slane %v400_v21, 5 }
  0x38   : > { %822 = vmatpush.bf16.msrb.mxu1 %v2376_v52  ;;  %1198 = vmatpush.bf16.msrb.mxu0 %v2412_v55  ;;  %346 = vst [vmem:[#allocation2 + $0x50] sm:$0x8] %v345_v44  ;;  %v476_v50 = vrot.slane %v404_v34, 4  ;;  %v1859_v51 = vor.u32 %v2362_v39, %v1858_v33  ;;  %v477_v9 = vrot.slane %v407_v36, 5  ;;  %v284_v54 = vmax.f32 %v276_v38, 0.0  ;;  %v2372_v26 = vld [vmem:[%s3101_s3 + $0x40] sm:$0xff] }
  0x39   : > { %1554 = vmatpush.bf16.msrb.mxu2 %v2440_v23  ;;  %v503_v48 = vld [vmem:[#allocation2 + $0x38] sm:$0xf]  ;;  %349 = vst [vmem:[#allocation2 + $0x5c] sm:$0x8] %v348_v45  ;;  %v474_v21 = vor.u32 %v473_v49, %v472_v14  ;;  %v2408_v36 = vld [vmem:[%s3101_s3 + $0x100] sm:$0xff]  ;;  %v324_v3 = vsel %vm2625_vm2, 0, %v323_v46 }
  0x3a   : > { %v504_v52 = vsel %vm2731_vm10, %v467_v25, %v503_v48  ;;  %v506_v53 = vld [vmem:[#allocation2 + $0x44] sm:$0xf]  ;;  %v478_v34 = vor.u32 %v477_v9, %v476_v50  ;;  %v2916_v58 = vpack.c.bf16 %v284_v54, %v284_v54  ;;  %v2423_v4 = vld [vmem:[%s3101_s3 + $0x178] sm:$0xff]  ;;  %325 = vst [vmem:[#allocation2 + $0x60] sm:$0x1] %v324_v3  ;;  %v2438_v15 = vld [vmem:[%s3101_s3 + $0x190] sm:$0xff] }
  0x3b   : > { %803 = vmatmul.bf16.gmra.mxu0 %v1835_v31  ;;  %v1842_v55 = vld [vmem:[#allocation2 + $0x20] sm:$0xf]  ;;  %505 = vst [vmem:[#allocation2 + $0x38] sm:$0xf] %v504_v52  ;;  %v507_v59 = vsel %vm2731_vm10, %v471_v37, %v506_v53  ;;  %v475_v62 = vrot.slane %v474_v21, 4  ;;  %v2459_v16 = vld [vmem:[%s3101_s3 + $0x238] sm:$0xff] }
  0x3c   : > { %823 = vmatpush.bf16.msrb.mxu1 %v2375_v61  ;;  %1199 = vmatpush.bf16.msrb.mxu0 %v2411_v5  ;;  %v2357_v56 = vld [vmem:[#allocation2 + $0x28] sm:$0xf0]  ;;  %508 = vst [vmem:[#allocation2 + $0x44] sm:$0xf] %v507_v59  ;;  %v2448_v61 = vld [vmem:[%s3101_s3 + $0x1e0] sm:$0xff]  ;;  %v479_v5 = vrot.slane %v478_v34, 4 }
  0x3d   : > { %1555 = vmatpush.bf16.msrb.mxu2 %v2439_v12  ;;  %v1843_v60 = vor.u32 %v2357_v56, %v1842_v55  ;;  %v411_v6 = vshrl.u32 %v2916_v58, 16  ;;  %v414_v8 = vshll.u32 %v2916_v58, 16  ;;  %1583 = vmatpush.bf16.msrb.mxu3 %v2448_v61  ;;  %360 = vst [vmem:[#allocation2 + $0x64] sm:$0xf] %v2916_v58  ;;  %v2447_v2 = vld [vmem:[%s3101_s3 + $0x1d8] sm:$0xff]  ;;  %v2422_v17 = vld [vmem:[%s3101_s3 + $0x170] sm:$0xff] }
  0x3e   : > { %v2388_v19 = vld [vmem:[#allocation2 + $0x10] sm:$0xf]  ;;  %v2016_v63 = vld [vmem:[#allocation2 + $0x18] sm:$0xf0]  ;;  %v2437_v13 = vld [vmem:[%s3101_s3 + $0x188] sm:$0xff] }
  0x3f   : > { %1179 = vmatmul.bf16.gmra.mxu3 %v2027_v47  ;;  %813 = vmatmul.bf16.gmra.mxu1 %v1859_v51  ;;  %v509_v11 = vld [vmem:[#allocation2 + $0x50] sm:$0xf]  ;;  %v413_v18 = vrot.slane %v411_v6, 7  ;;  %v2352_v0 = vld [vmem:[#allocation2 + $0x4] sm:$0xf]  ;;  %v2019_v30 = vor.u32 %v2388_v19, %v2016_v63  ;;  %v2445_v25 = vld [vmem:[%s3101_s3 + $0x1c8] sm:$0xff] }
  0x40   : > { %824 = vmatpush.bf16.msrb.mxu1 %v2374_v32  ;;  %1200 = vmatpush.bf16.msrb.mxu0 %v2410_v1  ;;  %v510_v20 = vsel %vm2731_vm10, %v475_v62, %v509_v11  ;;  %v512_v22 = vld [vmem:[#allocation2 + $0x5c] sm:$0xf]  ;;  %v2458_v28 = vld [vmem:[%s3101_s3 + $0x230] sm:$0xff]  ;;  %v2436_v31 = vld [vmem:[%s3101_s3 + $0x180] sm:$0xff] }
  0x41   : > { %861 = vmatmul.bf16.gmra.mxu2 %v1843_v60  ;;  %511 = vst [vmem:[#allocation2 + $0x50] sm:$0xf] %v510_v20  ;;  %v513_v23 = vsel %vm2731_vm10, %v479_v5, %v512_v22  ;;  %v416_v27 = vor.u32 %v414_v8, %v413_v18  ;;  %1584 = vmatpush.bf16.msrb.mxu3 %v2447_v2  ;;  %v2446_v24 = vld [vmem:[%s3101_s3 + $0x1d0] sm:$0xff]  ;;  %v449_v12 = vld [vmem:[#allocation2 + $0x60] sm:$0xf]  ;;  %v2421_v1 = vld [vmem:[%s3101_s3 + $0x168] sm:$0xff] }
  0x42   : > { %1556 = vmatpush.bf16.msrb.mxu2 %v2438_v15  ;;  %514 = vst [vmem:[#allocation2 + $0x5c] sm:$0xf] %v513_v23  ;;  %v2038_v32 = vld [vmem:[#allocation2 + $0x3c] sm:$0xf]  ;;  %v2395_v57 = vld [vmem:[#allocation2 + $0x44] sm:$0xf0] }
  0x43   : > { %v450_v33 = vsel %vm2711_vm9, %v416_v27, %v449_v12  ;;  %v1824_v7 = vld [vmem:[#allocation2 + $0xc] sm:$0xf0]  ;;  %v2457_v37 = vld [vmem:[%s3101_s3 + $0x228] sm:$0xff]  ;;  %v1854_v38 = vld [vmem:[#allocation2 + $0x38] sm:$0xf] }
  0x44   : > { %825 = vmatpush.bf16.msrb.mxu1 %v2373_v40  ;;  %1201 = vmatpush.bf16.msrb.mxu0 %v2409_v43  ;;  %451 = vst [vmem:[#allocation2 + $0x60] sm:$0xf] %v450_v33  ;;  %v2360_v39 = vld [vmem:[#allocation2 + $0x40] sm:$0xf0]  ;;  %v2039_v40 = vor.u32 %v2395_v57, %v2038_v32  ;;  %v1827_v41 = vor.u32 %v2352_v0, %v1824_v7  ;;  %v2419_v44 = vld [vmem:[%s3101_s3 + $0x158] sm:$0xff]  ;;  %v2418_v48 = vld [vmem:[%s3101_s3 + $0x150] sm:$0xff] }
  0x45   : > { %1585 = vmatpush.bf16.msrb.mxu3 %v2446_v24  ;;  %v1855_v10 = vor.u32 %v2360_v39, %v1854_v38  ;;  %v2420_v42 = vld [vmem:[%s3101_s3 + $0x160] sm:$0xff]  ;;  %v2455_v14 = vld [vmem:[%s3101_s3 + $0x218] sm:$0xff]  ;;  %v2391_v46 = vld [vmem:[#allocation2 + $0x28] sm:$0xf]  ;;  %v481_v32 = vrot.slane %v414_v8, 5 }
  0x46   : > { %1557 = vmatpush.bf16.msrb.mxu2 %v2437_v13  ;;  %v2444_v43 = vld [vmem:[%s3101_s3 + $0x1c0] sm:$0xff]  ;;  %v2028_v47 = vld [vmem:[#allocation2 + $0x30] sm:$0xf0]  ;;  %v2355_v52 = vld [vmem:[#allocation2 + $0x1c] sm:$0xf] }
  0x47   : > { %v2456_v45 = vld [vmem:[%s3101_s3 + $0x220] sm:$0xff]  ;;  %v2031_v49 = vor.u32 %v2391_v46, %v2028_v47  ;;  %v2050_v50 = vld [vmem:[#allocation2 + $0x54] sm:$0xf]  ;;  %v1836_v53 = vld [vmem:[#allocation2 + $0x24] sm:$0xf0] }
  0x48   : > { %826 = vmatpush.bf16.msrb.mxu1 %v2372_v26  ;;  %1202 = vmatpush.bf16.msrb.mxu0 %v2408_v36  ;;  %v1866_v9 = vld [vmem:[#allocation2 + $0x50] sm:$0xf]  ;;  %v1839_v59 = vor.u32 %v2355_v52, %v1836_v53  ;;  %v2417_v56 = vld [vmem:[%s3101_s3 + $0x148] sm:$0xff]  ;;  %v2416_v60 = vld [vmem:[%s3101_s3 + $0x140] sm:$0xff] }
  0x49   : > { %1586 = vmatpush.bf16.msrb.mxu3 %v2445_v25  ;;  %v2363_v54 = vld [vmem:[#allocation2 + $0x58] sm:$0xf0]  ;;  %v2454_v34 = vld [vmem:[%s3101_s3 + $0x210] sm:$0xff]  ;;  %v2453_v26 = vld [vmem:[%s3101_s3 + $0x208] sm:$0xff] }
  0x4a   : > { %1558 = vmatpush.bf16.msrb.mxu2 %v2436_v31  ;;  %v1867_v21 = vor.u32 %v2363_v54, %v1866_v9  ;;  %v2394_v36 = vld [vmem:[#allocation2 + $0x40] sm:$0xf]  ;;  %v2040_v61 = vld [vmem:[#allocation2 + $0x48] sm:$0xf0]  ;;  %v2424_v3 = vld [vmem:[#allocation2 + $0x1c] sm:$0xf] }
  0x4b   : > { %1203 = vmatmul.bf16.vlgmr.msrb.gmra.mxu0 %v2019_v30  ;;  %v2398_v51 = vld [vmem:[#allocation2 + $0x5c] sm:$0xf0]  ;;  %v2043_v62 = vor.u32 %v2394_v36, %v2040_v61  ;;  %v2206_v2 = vld [vmem:[#allocation2 + $0x18] sm:$0xf]  ;;  %v2425_v11 = vld [vmem:[#allocation2 + $0x20] sm:$0xf0] }
  0x4c   : > { %1224 = vmatpush.bf16.msra.mxu1 %v2423_v4  ;;  %1609 = vmatpush.bf16.msra.mxu0 %v2459_v16  ;;  %v2051_v55 = vor.u32 %v2398_v51, %v2050_v50  ;;  %v2208_v4 = vld [vmem:[#allocation2 + $0x24] sm:$0xf0]  ;;  %v2452_v5 = vld [vmem:[%s3101_s3 + $0x200] sm:$0xff]  ;;  %v2207_v20 = vor.u32 %v2425_v11, %v2206_v2  ;;  %v2397_v22 = vld [vmem:[#allocation2 + $0x58] sm:$0xf]  ;;  %v480_v31 = vrot.slane %v411_v6, 4 }
  0x4d   : > { %1587 = vmatpush.bf16.msrb.mxu3 %v2444_v43  ;;  %v1848_v15 = vld [vmem:[#allocation2 + $0x3c] sm:$0xf0]  ;;  %v2211_v18 = vor.u32 %v2424_v3, %v2208_v4  ;;  %v2052_v63 = vld [vmem:[#allocation2 + $0x60] sm:$0xf0]  ;;  %v2427_v23 = vld [vmem:[#allocation2 + $0x34] sm:$0xf] }
  0x4e   : > { %2510 = vmatpush.bf16.msra.mxu2 %v2459_v16  ;;  %v2358_v16 = vld [vmem:[#allocation2 + $0x34] sm:$0xf]  ;;  %v2220_v27 = vld [vmem:[#allocation2 + $0x3c] sm:$0xf0]  ;;  %v2361_v13 = vld [vmem:[#allocation2 + $0x4c] sm:$0xf]  ;;  %v482_v7 = vor.u32 %v481_v32, %v480_v31 }
  0x4f   : > { %1184 = vmatmul.bf16.gmra.mxu3 %v2039_v40  ;;  %827 = vmatmul.bf16.vlgmr.msrb.gmra.mxu1 %v1827_v41  ;;  %v1851_v19 = vor.u32 %v2358_v16, %v1848_v15  ;;  %v2218_v24 = vld [vmem:[#allocation2 + $0x30] sm:$0xf]  ;;  %v2428_v0 = vld [vmem:[#allocation2 + $0x38] sm:$0xf0]  ;;  %v2223_v30 = vor.u32 %v2427_v23, %v2220_v27  ;;  %v2214_v25 = vld [vmem:[#allocation2 + $0x20] sm:$0xf] }
  0x50   : > { %1225 = vmatpush.bf16.msra.mxu1 %v2422_v17  ;;  %1610 = vmatpush.bf16.msra.mxu0 %v2458_v28  ;;  %v2055_v17 = vor.u32 %v2397_v22, %v2052_v63  ;;  %v2219_v57 = vor.u32 %v2428_v0, %v2218_v24  ;;  %v483_v38 = vrot.slane %v482_v7, 4  ;;  %v2430_v58 = vld [vmem:[#allocation2 + $0x4c] sm:$0xf]  ;;  %v2232_v8 = vld [vmem:[#allocation2 + $0x54] sm:$0xf0] }
  0x51   : > { %866 = vmatmul.bf16.gmra.mxu2 %v1855_v10  ;;  %v2022_v41 = vld [vmem:[#allocation2 + $0x14] sm:$0xf]  ;;  %v2390_v10 = vld [vmem:[#allocation2 + $0x1c] sm:$0xf0]  ;;  %v2230_v35 = vld [vmem:[#allocation2 + $0x48] sm:$0xf]  ;;  %v2235_v43 = vor.u32 %v2430_v58, %v2232_v8 }
  0x52   : > { %2511 = vmatpush.bf16.msra.mxu2 %v2458_v28  ;;  %v1860_v28 = vld [vmem:[#allocation2 + $0x54] sm:$0xf0]  ;;  %v2429_v46 = vld [vmem:[#allocation2 + $0x40] sm:$0xf0]  ;;  %v2244_v29 = vld [vmem:[#allocation2 + $0x6c] sm:$0xf0] }
  0x53   : > { %v1863_v12 = vor.u32 %v2361_v13, %v1860_v28  ;;  %v2393_v50 = vld [vmem:[#allocation2 + $0x34] sm:$0xf0]  ;;  %v2242_v51 = vld [vmem:[#allocation2 + $0x60] sm:$0xf]  ;;  %v2434_v52 = vld [vmem:[#allocation2 + $0x68] sm:$0xf0] }
  0x54   : > { %1226 = vmatpush.bf16.msra.mxu1 %v2421_v1  ;;  %1611 = vmatpush.bf16.msra.mxu0 %v2457_v37  ;;  %v350_v1 = vld [vmem:[#allocation2 + $0x68] sm:$0x8]  ;;  %v2243_v54 = vor.u32 %v2434_v52, %v2242_v51  ;;  %v2435_v36 = vld [vmem:[#allocation2 + $0x70] sm:$0xf0]  ;;  %v2058_v11 = vld [vmem:[#allocation2 + $0x5c] sm:$0xf] }
  0x55   : > { %v351_v33 = vsel %vm2653_vm7, 0, %v350_v1 }
  0x56   : > { %2512 = vmatpush.bf16.msra.mxu2 %v2457_v37  ;;  %352 = vst [vmem:[#allocation2 + $0x68] sm:$0x8] %v351_v33  ;;  %v2426_v37 = vld [vmem:[#allocation2 + $0x28] sm:$0xf0] }
  0x57   : > { %v2215_v40 = vor.u32 %v2426_v37, %v2214_v25 }
  0x58   : > { %1227 = vmatpush.bf16.msra.mxu1 %v2420_v42  ;;  %1612 = vmatpush.bf16.msra.mxu0 %v2456_v45  ;;  %v2431_v42 = vld [vmem:[#allocation2 + $0x50] sm:$0xf0] }
  0x5a   : > { %2513 = vmatpush.bf16.msra.mxu2 %v2456_v45  ;;  %v2231_v45 = vor.u32 %v2431_v42, %v2230_v35 }
  0x5b   : > { %1208 = vmatmul.bf16.gmra.mxu0 %v2031_v49  ;;  %v2034_v49 = vld [vmem:[#allocation2 + $0x2c] sm:$0xf] }
  0x5c   : > { %1228 = vmatpush.bf16.msra.mxu1 %v2419_v44  ;;  %1613 = vmatpush.bf16.msra.mxu0 %v2455_v14  ;;  %v2023_v44 = vor.u32 %v2390_v10, %v2022_v41  ;;  %v2035_v9 = vor.u32 %v2393_v50, %v2034_v49 }
  0x5d   : > { %v515_v39 = vld [vmem:[#allocation2 + $0x68] sm:$0xf] }
  0x5e   : > { %2514 = vmatpush.bf16.msra.mxu2 %v2455_v14  ;;  %v516_v6 = vsel %vm2731_vm10, %v483_v38, %v515_v39  ;;  %v2226_v14 = vld [vmem:[#allocation2 + $0x38] sm:$0xf] }
  0x5f   : > { %1189 = vmatmul.bf16.gmra.mxu3 %v2051_v55  ;;  %832 = vmatmul.bf16.gmra.mxu1 %v1839_v59  ;;  %517 = vst [vmem:[#allocation2 + $0x68] sm:$0xf] %v516_v6  ;;  %v2227_v47 = vor.u32 %v2429_v46, %v2226_v14  ;;  %v2238_v55 = vld [vmem:[#allocation2 + $0x50] sm:$0xf]  ;;  %v2432_v59 = vld [vmem:[#allocation2 + $0x58] sm:$0xf0] }
  0x60   : > { %1229 = vmatpush.bf16.msra.mxu1 %v2418_v48  ;;  %1614 = vmatpush.bf16.msra.mxu0 %v2454_v34  ;;  %v2433_v48 = vld [vmem:[#allocation2 + $0x64] sm:$0xf] }
  0x61   : > { %871 = vmatmul.bf16.gmra.mxu2 %v1867_v21  ;;  %v2247_v53 = vor.u32 %v2433_v48, %v2244_v29  ;;  %v2239_v21 = vor.u32 %v2432_v59, %v2238_v55 }
  0x62   : > { %2515 = vmatpush.bf16.msra.mxu2 %v2454_v34  ;;  %v2046_v34 = vld [vmem:[#allocation2 + $0x44] sm:$0xf] }
  0x64   : > { %1230 = vmatpush.bf16.msra.mxu1 %v2417_v56  ;;  %1615 = vmatpush.bf16.msra.mxu0 %v2453_v26 }
  0x66   : > { %2516 = vmatpush.bf16.msra.mxu2 %v2453_v26  ;;  %v2250_v26 = vld [vmem:[#allocation2 + $0x68] sm:$0xf] }
  0x67   : > { %v2251_v3 = vor.u32 %v2435_v36, %v2250_v26 }
  0x68   : > { %1231 = vmatpush.bf16.msra.mxu1 %v2416_v60  ;;  %1616 = vmatpush.bf16.msra.mxu0 %v2452_v5  ;;  %v2396_v60 = vld [vmem:[#allocation2 + $0x4c] sm:$0xf0] }
  0x69   : > { %v2047_v61 = vor.u32 %v2396_v60, %v2046_v34 }
  0x6a   : > { %2517 = vmatpush.bf16.msra.mxu2 %v2452_v5 }
  0x6b   : > { %1213 = vmatmul.bf16.gmra.mxu0 %v2043_v62 }
  0x6f   : > { %1588 = vmatmul.bf16.vlgmr.msrb.gmra.mxu3 %v2211_v18  ;;  %837 = vmatmul.bf16.gmra.mxu1 %v1851_v19  ;;  %v2399_v18 = vld [vmem:[#allocation2 + $0x64] sm:$0xf0] }
  0x70   : > { %v2059_v22 = vor.u32 %v2399_v18, %v2058_v11 }
  0x71   : > { %1559 = vmatmul.bf16.vlgmr.msrb.gmra.mxu2 %v2207_v20 }
  0x7b   : > { %1218 = vmatmul.bf16.gmra.mxu0 %v2055_v17 }
  0x7f   : > { %1593 = vmatmul.bf16.gmra.mxu3 %v2223_v30  ;;  %842 = vmatmul.bf16.gmra.mxu1 %v1863_v12 }
  0x81   : > { %1564 = vmatmul.bf16.gmra.mxu2 %v2219_v57 }
  0x8b   : > { %1617 = vmatmul.bf16.vlgmr.msra.gmra.mxu0 %v2215_v40 }
  0x8f   : > { %1598 = vmatmul.bf16.gmra.mxu3 %v2235_v43  ;;  %1232 = vmatmul.bf16.vlgmr.msra.gmra.mxu1 %v2023_v44 }
  0x91   : > { %1569 = vmatmul.bf16.gmra.mxu2 %v2231_v45 }
  0x9b   : > { %1622 = vmatmul.bf16.gmra.mxu0 %v2227_v47 }
  0x9f   : > { %1603 = vmatmul.bf16.gmra.mxu3 %v2247_v53  ;;  %1237 = vmatmul.bf16.gmra.mxu1 %v2035_v9 }
  0xa1   : > { %1574 = vmatmul.bf16.gmra.mxu2 %v2243_v54 }
  0xa8   : > { %v799_v56 = vpop.f32.mrf.mxu0 }
  0xab   : > { %1627 = vmatmul.bf16.gmra.mxu0 %v2239_v21 }
  0xac   : > { %v809_v62 = vpop.f32.mrf.mxu1 }
  0xaf   : > { %1242 = vmatmul.bf16.gmra.mxu1 %v2047_v61 }
  0xb0   : > { %v801_v4 = vpop.f32.mrf.mxu0 }
  0xb1   : > { %v857_v5 = vpop.f32.mrf.mxu2  ;;  %1632 = vmatmul.bf16.vlgmr.msra.gmra.mxu2 %v2251_v3 }
  0xb2   : > { %v1175_v16 = vpop.f32.mrf.mxu3 }
  0xb4   : > { %v811_v15 = vpop.f32.mrf.mxu1 }
  0xb8   : > { %v804_v2 = vpop.f32.mrf.mxu0 }
  0xb9   : > { %v859_v19 = vpop.f32.mrf.mxu2 }
  0xba   : > { %v3019_v20 = vpop.f32.mrf.mxu3 }
  0xbc   : > { %v814_v63 = vpop.f32.mrf.mxu1 }
  0xbf   : > { %1247 = vmatmul.bf16.gmra.mxu1 %v2059_v22 }
  0xc0   : > { %v806_v17 = vpop.f32.mrf.mxu0 }
  0xc2   : > { %v1180_v23 = vpop.f32.mrf.mxu3 }
  0xc4   : > { %v862_v27 = vpop.f32.mrf.mxu2  ;;  %v816_v13 = vpop.f32.mrf.mxu1 }
  0xc8   : > { %v1204_v28 = vpop.f32.mrf.mxu0 }
  0xc9   : > { %v1205_v24 = vadd.f32 %v1204_v28, %v1175_v16 }
  0xca   : > { %v3021_v0 = vpop.f32.mrf.mxu3 }
  0xcc   : > { %v864_v30 = vpop.f32.mrf.mxu2  ;;  %v828_v12 = vpop.f32.mrf.mxu1 }
  0xcd   : > { %v829_v31 = vadd.f32 %v828_v12, %v799_v56 }
  0xcf   : > { %v858_v32 = vadd.f32 %v857_v5, %v829_v31 }
  0xd0   : > { %v1206_v57 = vpop.f32.mrf.mxu0 }
  0xd2   : > { %v1185_v7 = vpop.f32.mrf.mxu3 }
  0xd4   : > { %v867_v1 = vpop.f32.mrf.mxu2  ;;  %v830_v33 = vpop.f32.mrf.mxu1 }
  0xd5   : > { %v831_v25 = vadd.f32 %v830_v33, %v801_v4 }
  0xd7   : > { %v860_v37 = vadd.f32 %v859_v19, %v831_v25 }
  0xd8   : > { %v1209_v38 = vpop.f32.mrf.mxu0 }
  0xd9   : > { %v3023_v39 = vadd.f32 %v1209_v38, %v1180_v23 }
  0xda   : > { %v3025_v8 = vpop.f32.mrf.mxu3 }
  0xdc   : > { %v869_v40 = vpop.f32.mrf.mxu2  ;;  %v833_v6 = vpop.f32.mrf.mxu1 }
  0xdd   : > { %v834_v58 = vadd.f32 %v833_v6, %v804_v2 }
  0xdf   : > { %v863_v41 = vadd.f32 %v862_v27, %v834_v58 }
  0xe0   : > { %v3027_v10 = vpop.f32.mrf.mxu0 }
  0xe2   : > { %v1190_v14 = vpop.f32.mrf.mxu3 }
  0xe4   : > { %v872_v35 = vpop.f32.mrf.mxu2  ;;  %v835_v42 = vpop.f32.mrf.mxu1 }
  0xe5   : > { %v836_v43 = vadd.f32 %v835_v42, %v806_v17  ;;  %v1212_v42 = vadd.f32 %v3027_v10, %v3021_v0 }
  0xe7   : > { %v3029_v44 = vadd.f32 %v864_v30, %v836_v43 }
  0xe8   : > { %v1214_v45 = vpop.f32.mrf.mxu0 }
  0xe9   : > { %v3031_v46 = vadd.f32 %v1214_v45, %v1185_v7 }
  0xea   : > { %v3037_v51 = vpop.f32.mrf.mxu3 }
  0xec   : > { %v874_v47 = vpop.f32.mrf.mxu2  ;;  %v838_v48 = vpop.f32.mrf.mxu1 }
  0xed   : > { %v839_v29 = vadd.f32 %v838_v48, %v809_v62 }
  0xef   : > { %v3033_v49 = vadd.f32 %v867_v1, %v839_v29 }
  0xf0   : > { %v3035_v50 = vpop.f32.mrf.mxu0 }
  0xf2   : > { %v1589_v56 = vpop.f32.mrf.mxu3 }
  0xf4   : > { %v1560_v52 = vpop.f32.mrf.mxu2  ;;  %v840_v53 = vpop.f32.mrf.mxu1 }
  0xf5   : > { %v841_v9 = vadd.f32 %v840_v53, %v811_v15  ;;  %v1590_v27 = vadd.f32 %v1589_v56, %v1560_v52 }
  0xf7   : > { %v3039_v54 = vadd.f32 %v869_v40, %v841_v9 }
  0xf8   : > { %v1219_v55 = vpop.f32.mrf.mxu0 }
  0xf9   : > { %v3041_v59 = vadd.f32 %v1219_v55, %v1190_v14 }
  0xfa   : > { %v1591_v4 = vpop.f32.mrf.mxu3 }
  0xfc   : > { %v1562_v21 = vpop.f32.mrf.mxu2  ;;  %v843_v34 = vpop.f32.mrf.mxu1 }
  0xfd   : > { %v844_v60 = vadd.f32 %v843_v34, %v814_v63  ;;  %v1207_v63 = vadd.f32 %v1206_v57, %v3019_v20  ;;  %v1592_v28 = vadd.f32 %v1591_v4, %v1562_v21 }
  0xff   : > { %v3043_v26 = vadd.f32 %v872_v35, %v844_v60 }
 0x100   : > { %v3045_v36 = vpop.f32.mrf.mxu0 }
 0x102   : > { %v1594_v22 = vpop.f32.mrf.mxu3 }
 0x104   : > { %v1565_v61 = vpop.f32.mrf.mxu2  ;;  %v845_v62 = vpop.f32.mrf.mxu1 }
 0x105   : > { %v846_v3 = vadd.f32 %v845_v62, %v816_v13 }
 0x107   : > { %v3047_v5 = vadd.f32 %v874_v47, %v846_v3 }
 0x108   : > { %v1618_v16 = vpop.f32.mrf.mxu0 }
 0x109   : > { %v1619_v12 = vadd.f32 %v1618_v16, %v1590_v27 }
 0x10c   : > { %v1567_v15 = vpop.f32.mrf.mxu2  ;;  %v1233_v2 = vpop.f32.mrf.mxu1 }
 0x10d   : > { %v1234_v11 = vadd.f32 %v1233_v2, %v1205_v24  ;;  %v1596_v24 = vpop.f32.mrf.mxu3 }
 0x10e   : > { %v1597_v47 = vadd.f32 %v1596_v24, %v1567_v15 }
 0x10f   : > { %v1253_v18 = vadd.f32 %v1234_v11, %v858_v32 }
 0x110   : > { %v1620_v19 = vpop.f32.mrf.mxu0 }
 0x111   : > { %v1621_v31 = vadd.f32 %v1620_v19, %v1592_v28  ;;  %v3050_v33 = vadd.f32 %v1619_v12, %v1253_v18 }
 0x114   : > { %v1570_v17 = vpop.f32.mrf.mxu2  ;;  %v1235_v23 = vpop.f32.mrf.mxu1 }
 0x115   : > { %v1236_v30 = vadd.f32 %v1235_v23, %v1207_v63  ;;  %v1599_v45 = vpop.f32.mrf.mxu3 }
 0x116   : > { %v1600_v56 = vadd.f32 %v1599_v45, %v1570_v17 }
 0x117   : > { %v1254_v13 = vadd.f32 %v1236_v30, %v860_v37  ;;  %v1595_v37 = vadd.f32 %v1594_v22, %v1565_v61 }
 0x118   : > { %v1623_v1 = vpop.f32.mrf.mxu0 }
 0x119   : > { %v3052_v7 = vadd.f32 %v1621_v31, %v1254_v13  ;;  %v1624_v6 = vadd.f32 %v1623_v1, %v1595_v37 }
 0x11b   : > { %v2479_v20 = vpack.c.bf16 %v3052_v7, %v3050_v33  ;;  %v1678_v32 = vadd.f32 %v3052_v7, %v3050_v33 }
 0x11c   : > { %v1238_v57 = vpop.f32.mrf.mxu1  ;;  %v1572_v25 = vpop.f32.mrf.mxu2 }
 0x11d   : > { %2480 = vst [vmem:[%s3059_s20] sm:$0xff] %v2479_v20   ;;  %v1239_v38 = vadd.f32 %v1238_v57, %v3023_v39  ;;  %v1601_v10 = vpop.f32.mrf.mxu3 }
 0x11e   : > { %v1602_v15 = vadd.f32 %v1601_v10, %v1572_v25 }
 0x11f   : > { %v1255_v40 = vadd.f32 %v1239_v38, %v863_v41 }
 0x120   : > { %v1625_v58 = vpop.f32.mrf.mxu0 }
 0x121   : > { %v3067_v35 = vadd.f32 %v1624_v6, %v1255_v40  ;;  %v1626_v53 = vadd.f32 %v1625_v58, %v1597_v47 }
 0x123   : > { %v1679_v43 = vadd.f32 %v1678_v32, %v3067_v35 }
 0x124   : > { %v1240_v14 = vpop.f32.mrf.mxu1  ;;  %v1575_v29 = vpop.f32.mrf.mxu2 }
 0x125   : > { %v1241_v48 = vadd.f32 %v1240_v14, %v1212_v42  ;;  %v1604_v19 = vpop.f32.mrf.mxu3 }
 0x126   : > { %v1605_v23 = vadd.f32 %v1604_v19, %v1575_v29 }
 0x127   : > { %v1256_v52 = vadd.f32 %v1241_v48, %v3029_v44  ;;  %v1217_v44 = vadd.f32 %v3035_v50, %v3025_v8 }
 0x128   : > { %v1628_v41 = vpop.f32.mrf.mxu0 }
 0x129   : > { %v1641_v39 = vadd.f32 %v1626_v53, %v1256_v52  ;;  %v1629_v60 = vadd.f32 %v1628_v41, %v1600_v56 }
 0x12b   : > { %v2484_v9 = vpack.c.bf16 %v1641_v39, %v3067_v35  ;;  %v1680_v55 = vadd.f32 %v1679_v43, %v1641_v39 }
 0x12c   : > { %v1243_v21 = vpop.f32.mrf.mxu1  ;;  %v1577_v61 = vpop.f32.mrf.mxu2 }
 0x12d   : > { %2499 = vst [vmem:[%s3059_s20 + $0x8] sm:$0xff] %v2484_v9   ;;  %v1244_v0 = vadd.f32 %v1243_v21, %v3031_v46  ;;  %v1606_v30 = vpop.f32.mrf.mxu3 }
 0x12e   : > { %v1607_v1 = vadd.f32 %v1606_v30, %v1577_v61 }
 0x12f   : > { %v1257_v34 = vadd.f32 %v1244_v0, %v3033_v49 }
 0x130   : > { %v1630_v16 = vpop.f32.mrf.mxu0 }
 0x131   : > { %v1642_v62 = vadd.f32 %v1629_v60, %v1257_v34  ;;  %v1631_v18 = vadd.f32 %v1630_v16, %v1602_v15 }
 0x133   : > { %v1681_v3 = vadd.f32 %v1680_v55, %v1642_v62 }
 0x134   : > { %v1245_v4 = vpop.f32.mrf.mxu1  ;;  %v1633_v22 = vpop.f32.mrf.mxu2 }
 0x135   : > { %v1246_v2 = vadd.f32 %v1245_v4, %v1217_v44  ;;  %v1634_v8 = vadd.f32 %v1633_v22, %v1605_v23 }
 0x137   : > { %v1258_v11 = vadd.f32 %v1246_v2, %v3039_v54  ;;  %v1222_v54 = vadd.f32 %v3045_v36, %v3037_v51 }
 0x139   : > { %v1643_v46 = vadd.f32 %v1631_v18, %v1258_v11 }
 0x13b   : > { %v2489_v63 = vpack.c.bf16 %v1643_v46, %v1642_v62  ;;  %v1682_v49 = vadd.f32 %v1681_v3, %v1643_v46 }
 0x13c   : > { %v1248_v17 = vpop.f32.mrf.mxu1  ;;  %v1635_v13 = vpop.f32.mrf.mxu2 }
 0x13d   : > { %2500 = vst [vmem:[%s3059_s20 + $0x10] sm:$0xff] %v2489_v63   ;;  %v1249_v27 = vadd.f32 %v1248_v17, %v3041_v59  ;;  %v1636_v20 = vadd.f32 %v1635_v13, %v1607_v1 }
 0x13f   : > { %v1259_v50 = vadd.f32 %v1249_v27, %v3043_v26 }
 0x141   : > { %v1644_v28 = vadd.f32 %v1634_v8, %v1259_v50 }
 0x143   : > { %v1683_v12 = vadd.f32 %v1682_v49, %v1644_v28 }
 0x144   : > { %v1250_v31 = vpop.f32.mrf.mxu1 }
 0x145   : > { %v1251_v24 = vadd.f32 %v1250_v31, %v1222_v54 }
 0x147   : > { %v1260_v32 = vadd.f32 %v1251_v24, %v3047_v5 }
 0x149   : > { %v1645_v57 = vadd.f32 %v1636_v20, %v1260_v32 }
 0x14b   : > { %v2494_v25 = vpack.c.bf16 %v1645_v57, %v1644_v28  ;;  %v1684_v59 = vadd.f32 %v1683_v12, %v1645_v57 }
 0x14d   : > { %2501 = vst [vmem:[%s3059_s20 + $0x18] sm:$0xff] %v2494_v25   ;;  %v1685_v37 = vrot.slane %v1684_v59, 4 }
 0x14f   : > { %v1686_v38 = vadd.f32 %v1685_v37, %v1684_v59 }
 0x151   : > { %v1687_v26 = vrot.slane %v1686_v38, 2 }
 0x153   : > { %v1688_v40 = vadd.f32 %v1687_v26, %v1686_v38 }
 0x155   : > { %v1689_v6 = vrot.slane %v1688_v40, 1 }
 0x157   : > { %v1690_v58 = vadd.f32 %v1689_v6, %v1688_v40 }
 0x159   : > { %v1691_v42 = vmul.f32 0.015625, %v1690_v58 }
 0x15b   : > { %v1692_v51 = vsub.f32 %v3050_v33, %v1691_v42  ;;  %v1693_v36 = vsub.f32 %v3052_v7, %v1691_v42  ;;  %v1694_v43 = vsub.f32 %v3067_v35, %v1691_v42  ;;  %v1695_v45 = vsub.f32 %v1641_v39, %v1691_v42 }
 0x15c   : > { %v1696_v14 = vsub.f32 %v1642_v62, %v1691_v42  ;;  %v1697_v5 = vsub.f32 %v1643_v46, %v1691_v42  ;;  %v1698_v47 = vsub.f32 %v1644_v28, %v1691_v42  ;;  %v1699_v48 = vsub.f32 %v1645_v57, %v1691_v42 }
 0x15d   : > { %v1700_v29 = vmul.f32 %v1692_v51, %v1692_v51  ;;  %v1701_v52 = vmul.f32 %v1693_v36, %v1693_v36  ;;  %v1702_v53 = vmul.f32 %v1694_v43, %v1694_v43  ;;  %v1703_v9 = vmul.f32 %v1695_v45, %v1695_v45 }
 0x15e   : > { %v1704_v21 = vmul.f32 %v1696_v14, %v1696_v14  ;;  %v1705_v0 = vmul.f32 %v1697_v5, %v1697_v5  ;;  %v1706_v10 = vmul.f32 %v1698_v47, %v1698_v47  ;;  %v1707_v34 = vmul.f32 %v1699_v48, %v1699_v48 }
 0x15f   : > { %v1708_v41 = vadd.f32 %v1701_v52, %v1700_v29 }
 0x161   : > { %v1709_v55 = vadd.f32 %v1708_v41, %v1702_v53 }
 0x163   : > { %v1710_v56 = vadd.f32 %v1709_v55, %v1703_v9 }
 0x165   : > { %v1711_v33 = vadd.f32 %v1710_v56, %v1704_v21 }
 0x167   : > { %v1712_v7 = vadd.f32 %v1711_v33, %v1705_v0 }
 0x169   : > { %v1713_v35 = vadd.f32 %v1712_v7, %v1706_v10 }
 0x16b   : > { %v1714_v39 = vadd.f32 %v1713_v35, %v1707_v34 }
 0x16d   : > { %v1715_v60 = vrot.slane %v1714_v39, 4 }
 0x16f   : > { %v1716_v61 = vadd.f32 %v1715_v60, %v1714_v39 }
 0x171   : > { %v1717_v62 = vrot.slane %v1716_v61, 2 }
 0x173   : > { %v1718_v44 = vadd.f32 %v1717_v62, %v1716_v61 }
 0x175   : > { %v1719_v3 = vrot.slane %v1718_v44, 1 }
 0x177   : > { %v1720_v4 = vadd.f32 %v1719_v3, %v1718_v44 }
 0x179   : > { %v1722_v16 = vsel %vm299_vm0, %v1690_v58, %v1720_v4 }
 0x17a   : > { %1723 = vst [vmem:[%s235_s23] sm:$0x3] %v1722_v16 }
 0x17b PF: > { %s16_s18 = sadd.s32 1, %s2535_s18  }
 0x17c   : > { %p13_p4 = scmp.ge.s32.totalorder %s16_s18, 4  }
 0x17e   :  { %15 = sbr.rel (!%p13_p4) target bundleno = 1 (0x1), region = 83 }

</bundles_post_ra>
